<compile_context>
chip_gen: v6e
topology: v6e:2x2x1
jax: 0.10.0
libtpu: 0.0.40
codegen_flags: <defaults>
</compile_context>

<pallas_src>
import functools

import jax
import jax.numpy as jnp
from jax import lax
from jax.experimental import pallas as pl
from jax.experimental.pallas import tpu as pltpu

_LANE = 128


def _round_up(x, m):
    return ((x + m - 1) // m) * m


def _im2col_3x3(src, out_h, out_w):
    """src: (out_h+2, out_w+2, C) value -> (out_h*out_w, 9*C) patch matrix.

    Tap order is kh-major / kw-minor, matching weight.reshape(9*C, Cout).
    """
    c = src.shape[-1]
    taps = [src[kh:kh + out_h, kw:kw + out_w, :]
            for kh in range(3) for kw in range(3)]
    return jnp.concatenate(taps, axis=-1).reshape(out_h * out_w, 9 * c)


def _double_conv_kernel(x_ref, w1_ref, b1_ref, w2_ref, b2_ref,
                        o_ref, xpad_ref):
    """Fused conv3x3+BN+ReLU -> conv3x3+BN+ReLU for one (batch, H-tile) step.

    x_ref:    (1, H, W, Cin)      full image of batch n (resident across h)
    w1_ref:   (9*Cin, Cp)         im2col conv1 weights, BN1 scale pre-folded
    b1_ref:   (1, Cp) f32         folded (conv1 bias + BN1) bias
    w2_ref:   (9*Cp, Cp)          im2col conv2 weights, BN2 scale pre-folded
    b2_ref:   (1, Cp) f32         folded (conv2 bias + BN2) bias
    o_ref:    (1, tH, W, Cp)      output tile (lane-dense, Cp % 128 == 0)
    xpad_ref: (H+4, W+4, Cin)     VMEM scratch: input zero-padded by 2 px
    """
    H, W = x_ref.shape[1], x_ref.shape[2]
    tH, Cp = o_ref.shape[1], o_ref.shape[3]
    cd = w1_ref.dtype                       # compute dtype (f32 or bf16)
    h = pl.program_id(1)

    # Build the zero-padded input once per batch element (in-kernel padding).
    # The scratch persists across the H tiles; h is "arbitrary" so every n
    # sees h == 0 first on its core.
    @pl.when(h == 0)
    def _():
        xpad_ref[...] = jnp.zeros_like(xpad_ref)
        xpad_ref[2:H + 2, 2:W + 2, :] = x_ref[0]

    r0 = pl.multiple_of(h * tH, tH)          # first output row of this tile

    # ---------- conv1 (+BN scale folded) + bias + ReLU on tile + 1-px halo ---
    xs = xpad_ref[pl.ds(r0, tH + 4), :, :]               # (tH+4, W+4, Cin)
    p1 = _im2col_3x3(xs, tH + 2, W + 2)                  # (M1, 9*Cin)
    z1 = jnp.dot(p1, w1_ref[...], preferred_element_type=jnp.float32)
    a1 = jnp.maximum(z1 + b1_ref[0, :], 0.0)             # f32 epilogue
    a1 = a1.reshape(tH + 2, W + 2, Cp)

    # Halo positions outside the image are conv2's zero padding, NOT conv1
    # outputs -> mask them to zero (matches PyTorch padding=1 semantics).
    rows = lax.broadcasted_iota(jnp.int32, (tH + 2, W + 2, 1), 0)
    cols = lax.broadcasted_iota(jnp.int32, (tH + 2, W + 2, 1), 1)
    lo = jnp.where(r0 == 0, 1, 0)
    hi = jnp.where(r0 + tH == H, tH, tH + 1)
    valid = (rows >= lo) & (rows <= hi) & (cols >= 1) & (cols <= W)
    a1 = jnp.where(valid, a1, 0.0).astype(cd)

    # ---------- conv2 (+BN scale folded) + bias + ReLU: lane-dense store -----
    p2 = _im2col_3x3(a1, tH, W)                          # (tH*W, 9*Cp)
    z2 = jnp.dot(p2, w2_ref[...], preferred_element_type=jnp.float32)
    a2 = jnp.maximum(z2 + b2_ref[0, :], 0.0)             # f32 epilogue
    o_ref[0, :, :, :] = a2.reshape(tH, W, Cp).astype(o_ref.dtype)


def fold_bn(conv_bias, gamma, beta, running_mean, running_var, eps=1e-5):
    """Fold eval-mode BN + conv bias into per-channel (scale, bias)."""
    scale = gamma / jnp.sqrt(running_var + eps)
    bias = (conv_bias - running_mean) * scale + beta
    return scale, bias


def double_conv_fused(x_nhwc, params, *, tile_h=8, compute_dtype=jnp.float32):
    """Fused double_conv. x_nhwc: (N,H,W,Cin) f32. Returns (N,H,W,Cout) f32."""
    N, H, W, Cin = x_nhwc.shape
    w1, b1, bn1 = params["w1"], params["b1"], params["bn1"]
    w2, b2, bn2 = params["w2"], params["b2"], params["bn2"]
    Cout = w1.shape[-1]
    Cp = _round_up(Cout, _LANE)              # lane-dense padded channel count
    pad_out = Cp - Cout

    if H % tile_h != 0:                      # keep it simple for odd sizes
        tile_h = H
    n_h = H // tile_h

    s1, be1 = fold_bn(b1, bn1["gamma"], bn1["beta"], bn1["mean"], bn1["var"])
    s2, be2 = fold_bn(b2, bn2["gamma"], bn2["beta"], bn2["mean"], bn2["var"])

    # HWIO weights: BN scale folded into the output-channel axis, output (and
    # conv2 input) channels zero-padded, then reshaped for the single im2col
    # matmul: row index = (kh*3 + kw)*Cin + cin.
    w1s = w1 * s1[None, None, None, :]
    w2s = w2 * s2[None, None, None, :]
    w1f = jnp.pad(w1s, ((0, 0), (0, 0), (0, 0), (0, pad_out)))
    w1f = w1f.reshape(9 * Cin, Cp).astype(compute_dtype)
    w2f = jnp.pad(w2s, ((0, 0), (0, 0), (0, pad_out), (0, pad_out)))
    w2f = w2f.reshape(9 * Cp, Cp).astype(compute_dtype)

    b1p = jnp.pad(be1, (0, pad_out)).reshape(1, Cp).astype(jnp.float32)
    b2p = jnp.pad(be2, (0, pad_out)).reshape(1, Cp).astype(jnp.float32)

    xc = x_nhwc.astype(compute_dtype)

    out = pl.pallas_call(
        _double_conv_kernel,
        out_shape=jax.ShapeDtypeStruct((N, H, W, Cp), jnp.float32),
        grid=(N, n_h),
        in_specs=[
            # Full image per batch element; constant over h -> DMA'd once per n.
            pl.BlockSpec((1, H, W, Cin), lambda n, h: (n, 0, 0, 0)),
            pl.BlockSpec((9 * Cin, Cp), lambda n, h: (0, 0)),
            pl.BlockSpec((1, Cp), lambda n, h: (0, 0)),
            pl.BlockSpec((9 * Cp, Cp), lambda n, h: (0, 0)),
            pl.BlockSpec((1, Cp), lambda n, h: (0, 0)),
        ],
        out_specs=pl.BlockSpec((1, tile_h, W, Cp), lambda n, h: (n, h, 0, 0)),
        scratch_shapes=[pltpu.VMEM((H + 4, W + 4, Cin), compute_dtype)],
        compiler_params=pltpu.CompilerParams(
            # n: megacore parallel.  h: "arbitrary" because the padded-input
            # scratch is built at h == 0 and reused by the later h tiles.
            dimension_semantics=("parallel", "arbitrary"),
            vmem_limit_bytes=64 << 20,
        ),
    )(xc, w1f, b1p, w2f, b2p)

    return out[..., :Cout]                   # drop the lane-padding channels


def init_inconv_params(key, in_ch, out_ch):
    """Deterministic synthetic parameters mirroring the PyTorch module shapes."""
    k1, k2, k3, k4 = jax.random.split(key, 4)
    w1 = jax.random.normal(k1, (3, 3, in_ch, out_ch), jnp.float32) * 0.1   # HWIO
    b1 = jax.random.normal(k2, (out_ch,), jnp.float32) * 0.1
    w2 = jax.random.normal(k3, (3, 3, out_ch, out_ch), jnp.float32) * 0.1  # HWIO
    b2 = jax.random.normal(k4, (out_ch,), jnp.float32) * 0.1
    bn = dict(
        gamma=jnp.ones((out_ch,), jnp.float32),
        beta=jnp.zeros((out_ch,), jnp.float32),
        mean=jnp.zeros((out_ch,), jnp.float32),
        var=jnp.ones((out_ch,), jnp.float32),
    )
    return dict(w1=w1, b1=b1, bn1=bn, w2=w2, b2=b2, bn2=dict(bn))


@functools.partial(jax.jit, static_argnames=("tile_h", "compute_dtype"))
def inconv_forward(x_nchw, params, *, tile_h=8, compute_dtype=jnp.float32):
    """Full inconv forward. Input/output layout: NCHW (PyTorch convention)."""
    x = jnp.transpose(x_nchw, (0, 2, 3, 1))            # NCHW -> NHWC
    y = double_conv_fused(x, params, tile_h=tile_h, compute_dtype=compute_dtype)
    return jnp.transpose(y, (0, 3, 1, 2))              # NHWC -> NCHW


def _reference_forward(x_nchw, params):
    """Pure-JAX reference (lax.conv) for a silent correctness check."""
    def conv_bn_relu(x, w_hwio, conv_b, bn):
        y = lax.conv_general_dilated(
            x, w_hwio, window_strides=(1, 1), padding="SAME",
            dimension_numbers=("NCHW", "HWIO", "NCHW"))
        scale, bias = fold_bn(conv_b, bn["gamma"], bn["beta"],
                              bn["mean"], bn["var"])
        y = y * scale[None, :, None, None] + bias[None, :, None, None]
        return jnp.maximum(y, 0.0)

    x = conv_bn_relu(x_nchw, params["w1"], params["b1"], params["bn1"])
    x = conv_bn_relu(x, params["w2"], params["b2"], params["bn2"])
    return x


if __name__ == "__main__":
    key = jax.random.PRNGKey(0)
    kx, kp = jax.random.split(key)

    N, in_ch, out_ch, H, W = 2, 4, 8, 16, 16
    x = jax.random.normal(kx, (N, in_ch, H, W), jnp.float32)
    params = init_inconv_params(kp, in_ch, out_ch)

    ref = _reference_forward(x, params)

    # f32 compute path (exact-fidelity to the PyTorch module).
    out = jax.block_until_ready(inconv_forward(x, params))
    assert out.shape == (N, out_ch, H, W)
    assert jnp.allclose(out, ref, rtol=1e-4, atol=1e-4), \
        float(jnp.max(jnp.abs(out - ref)))

    # bf16 compute path (recommended on v6e/v7x): f32 accumulate + f32 epilogue.
    out_bf16 = jax.block_until_ready(
        inconv_forward(x, params, compute_dtype=jnp.bfloat16))
    assert jnp.allclose(out_bf16, ref, rtol=5e-2, atol=5e-2), \
        float(jnp.max(jnp.abs(out_bf16 - ref)))

    print("KERNEL_OK")
</pallas_src>

<mosaic_0001>
module attributes {stable_mosaic.version = 11 : i64} {
  func.func @_double_conv_kernel(%arg0: i32, %arg1: i32, %arg2: memref<1x16x16x4xf32, #tpu.memory_space<vmem>>, %arg3: memref<36x128xf32, #tpu.memory_space<vmem>>, %arg4: memref<1x128xf32, #tpu.memory_space<vmem>>, %arg5: memref<1152x128xf32, #tpu.memory_space<vmem>>, %arg6: memref<1x128xf32, #tpu.memory_space<vmem>>, %arg7: memref<1x8x16x128xf32, #tpu.memory_space<vmem>>, %arg8: memref<20x20x4xf32, #tpu.memory_space<vmem>>) attributes {dimension_semantics = [#tpu.dimension_semantics<parallel>, #tpu.dimension_semantics<arbitrary>], iteration_bounds = array<i64: 2, 2>, scalar_prefetch = 0 : i64, scratch_operands = 1 : i64, tpu.core_type = #tpu.core_type<tc>, window_params = [{transform_indices = @transform_0, window_bounds = array<i64: 1, 16, 16, 4>}, {pipeline_mode = #tpu.pipeline_mode<synchronous>, transform_indices = @transform_1, window_bounds = array<i64: 36, 128>}, {pipeline_mode = #tpu.pipeline_mode<synchronous>, transform_indices = @transform_2, window_bounds = array<i64: 1, 128>}, {pipeline_mode = #tpu.pipeline_mode<synchronous>, transform_indices = @transform_3, window_bounds = array<i64: 1152, 128>}, {pipeline_mode = #tpu.pipeline_mode<synchronous>, transform_indices = @transform_4, window_bounds = array<i64: 1, 128>}, {transform_indices = @transform_5, window_bounds = array<i64: 1, 8, 16, 128>}]} {
    %c0_i32 = arith.constant 0 : i32
    %0 = arith.cmpi eq, %arg1, %c0_i32 : i32
    %1 = arith.extui %0 : i1 to i32
    %c0_i32_0 = arith.constant 0 : i32
    %2 = arith.cmpi ne, %1, %c0_i32_0 : i32
    scf.if %2 {
      %cst_24 = arith.constant 0.000000e+00 : f32
      %74 = vector.broadcast %cst_24 : f32 to vector<20x20x4xf32>
      %c0_25 = arith.constant 0 : index
      %c0_26 = arith.constant 0 : index
      %c0_27 = arith.constant 0 : index
      %75 = vector.load %arg8[%c0_25, %c0_26, %c0_27] : memref<20x20x4xf32, #tpu.memory_space<vmem>>, vector<20x20x4xf32>
      tpu.vector_store %arg8[%c0_25, %c0_26, %c0_27], %74 {strides = array<i32>} : memref<20x20x4xf32, #tpu.memory_space<vmem>>, vector<20x20x4xf32>,
      %c0_28 = arith.constant 0 : index
      %c0_29 = arith.constant 0 : index
      %c0_30 = arith.constant 0 : index
      %c0_31 = arith.constant 0 : index
      %76 = vector.load %arg2[%c0_28, %c0_29, %c0_30, %c0_31] : memref<1x16x16x4xf32, #tpu.memory_space<vmem>>, vector<1x16x16x4xf32>
      %77 = vector.shape_cast %76 : vector<1x16x16x4xf32> to vector<16x16x4xf32>
      %c2 = arith.constant 2 : index
      %c2_32 = arith.constant 2 : index
      %c0_33 = arith.constant 0 : index
      %78 = vector.load %arg8[%c2, %c2_32, %c0_33] : memref<20x20x4xf32, #tpu.memory_space<vmem>>, vector<16x16x4xf32>
      tpu.vector_store %arg8[%c2, %c2_32, %c0_33], %77 {strides = array<i32>} : memref<20x20x4xf32, #tpu.memory_space<vmem>>, vector<16x16x4xf32>,
    } else {
    }
    %c8_i32 = arith.constant 8 : i32
    %3 = arith.muli %arg1, %c8_i32 : i32
    %4 = tpu.assume_multiple %3, 8 : i32
    %5 = arith.index_cast %4 : i32 to index
    %c0 = arith.constant 0 : index
    %c0_1 = arith.constant 0 : index
    %6 = vector.load %arg8[%5, %c0, %c0_1] : memref<20x20x4xf32, #tpu.memory_space<vmem>>, vector<12x20x4xf32>
    %7 = vector.extract_strided_slice %6 {offsets = [0, 0, 0], sizes = [10, 18, 4], strides = [1, 1, 1]} : vector<12x20x4xf32> to vector<10x18x4xf32>
    %8 = vector.extract_strided_slice %6 {offsets = [0, 1, 0], sizes = [10, 18, 4], strides = [1, 1, 1]} : vector<12x20x4xf32> to vector<10x18x4xf32>
    %9 = vector.extract_strided_slice %6 {offsets = [0, 2, 0], sizes = [10, 18, 4], strides = [1, 1, 1]} : vector<12x20x4xf32> to vector<10x18x4xf32>
    %10 = vector.extract_strided_slice %6 {offsets = [1, 0, 0], sizes = [10, 18, 4], strides = [1, 1, 1]} : vector<12x20x4xf32> to vector<10x18x4xf32>
    %11 = vector.extract_strided_slice %6 {offsets = [1, 1, 0], sizes = [10, 18, 4], strides = [1, 1, 1]} : vector<12x20x4xf32> to vector<10x18x4xf32>
    %12 = vector.extract_strided_slice %6 {offsets = [1, 2, 0], sizes = [10, 18, 4], strides = [1, 1, 1]} : vector<12x20x4xf32> to vector<10x18x4xf32>
    %13 = vector.extract_strided_slice %6 {offsets = [2, 0, 0], sizes = [10, 18, 4], strides = [1, 1, 1]} : vector<12x20x4xf32> to vector<10x18x4xf32>
    %14 = vector.extract_strided_slice %6 {offsets = [2, 1, 0], sizes = [10, 18, 4], strides = [1, 1, 1]} : vector<12x20x4xf32> to vector<10x18x4xf32>
    %15 = vector.extract_strided_slice %6 {offsets = [2, 2, 0], sizes = [10, 18, 4], strides = [1, 1, 1]} : vector<12x20x4xf32> to vector<10x18x4xf32>
    %16 = tpu.concatenate %7, %8, %9, %10, %11, %12, %13, %14, %15 in 2 : vector<10x18x4xf32>, vector<10x18x4xf32>, vector<10x18x4xf32>, vector<10x18x4xf32>, vector<10x18x4xf32>, vector<10x18x4xf32>, vector<10x18x4xf32>, vector<10x18x4xf32>, vector<10x18x4xf32> -> vector<10x18x36xf32>
    %17 = vector.shape_cast %16 : vector<10x18x36xf32> to vector<180x36xf32>
    %c0_2 = arith.constant 0 : index
    %c0_3 = arith.constant 0 : index
    %18 = vector.load %arg3[%c0_2, %c0_3] : memref<36x128xf32, #tpu.memory_space<vmem>>, vector<36x128xf32>
    %cst = arith.constant dense<0.000000e+00> : vector<180x128xf32>
    %19 = tpu.matmul %17, %18, %cst {dimension_numbers = #tpu.dot_dimension_numbers<[1], [0], [0], [1], [0, 0, 1, 1], [], []>} : vector<180x36xf32>, vector<36x128xf32>, vector<180x128xf32> -> vector<180x128xf32>
    %c0_4 = arith.constant 0 : index
    %c0_5 = arith.constant 0 : index
    %20 = vector.load %arg4[%c0_4, %c0_5] : memref<1x128xf32, #tpu.memory_space<vmem>>, vector<1x128xf32>
    %21 = vector.shape_cast %20 : vector<1x128xf32> to vector<128xf32>
    %22 = vector.shape_cast %21 : vector<128xf32> to vector<1x128xf32>
    %23 = vector.broadcast %22 : vector<1x128xf32> to vector<180x128xf32>
    %24 = arith.addf %19, %23 : vector<180x128xf32>
    %cst_6 = arith.constant 0.000000e+00 : f32
    %25 = vector.broadcast %cst_6 : f32 to vector<180x128xf32>
    %26 = arith.maximumf %24, %25 : vector<180x128xf32>
    %27 = vector.shape_cast %26 : vector<180x128xf32> to vector<10x18x128xf32>
    %28 = tpu.iota {dimensions = array<i32: 0>} : vector<10x18x1xi32>
    %29 = tpu.iota {dimensions = array<i32: 1>} : vector<10x18x1xi32>
    %c0_i32_7 = arith.constant 0 : i32
    %30 = arith.cmpi eq, %4, %c0_i32_7 : i32
    %c1_i32 = arith.constant 1 : i32
    %c0_i32_8 = arith.constant 0 : i32
    %31 = arith.select %30, %c1_i32, %c0_i32_8 : i32
    %c8_i32_9 = arith.constant 8 : i32
    %32 = arith.addi %4, %c8_i32_9 : i32
    %c16_i32 = arith.constant 16 : i32
    %33 = arith.cmpi eq, %32, %c16_i32 : i32
    %c8_i32_10 = arith.constant 8 : i32
    %c9_i32 = arith.constant 9 : i32
    %34 = arith.select %33, %c8_i32_10, %c9_i32 : i32
    %35 = vector.broadcast %31 : i32 to vector<10x18x1xi32>
    %36 = arith.cmpi sge, %28, %35 : vector<10x18x1xi32>
    %37 = vector.broadcast %34 : i32 to vector<10x18x1xi32>
    %38 = arith.cmpi sle, %28, %37 : vector<10x18x1xi32>
    %39 = arith.andi %36, %38 : vector<10x18x1xi1>
    %c1_i32_11 = arith.constant 1 : i32
    %40 = vector.broadcast %c1_i32_11 : i32 to vector<10x18x1xi32>
    %41 = arith.cmpi sge, %29, %40 : vector<10x18x1xi32>
    %42 = arith.andi %39, %41 : vector<10x18x1xi1>
    %c16_i32_12 = arith.constant 16 : i32
    %43 = vector.broadcast %c16_i32_12 : i32 to vector<10x18x1xi32>
    %44 = arith.cmpi sle, %29, %43 : vector<10x18x1xi32>
    %45 = arith.andi %42, %44 : vector<10x18x1xi1>
    %cst_13 = arith.constant 0.000000e+00 : f32
    %46 = vector.shape_cast %45 : vector<10x18x1xi1> to vector<10x18x1xi1>
    %47 = vector.broadcast %46 : vector<10x18x1xi1> to vector<10x18x128xi1>
    %48 = vector.broadcast %cst_13 : f32 to vector<10x18x128xf32>
    %49 = arith.select %47, %27, %48 : vector<10x18x128xi1>, vector<10x18x128xf32>
    %50 = vector.extract_strided_slice %49 {offsets = [0, 0, 0], sizes = [8, 16, 128], strides = [1, 1, 1]} : vector<10x18x128xf32> to vector<8x16x128xf32>
    %51 = vector.extract_strided_slice %49 {offsets = [0, 1, 0], sizes = [8, 16, 128], strides = [1, 1, 1]} : vector<10x18x128xf32> to vector<8x16x128xf32>
    %52 = vector.extract_strided_slice %49 {offsets = [0, 2, 0], sizes = [8, 16, 128], strides = [1, 1, 1]} : vector<10x18x128xf32> to vector<8x16x128xf32>
    %53 = vector.extract_strided_slice %49 {offsets = [1, 0, 0], sizes = [8, 16, 128], strides = [1, 1, 1]} : vector<10x18x128xf32> to vector<8x16x128xf32>
    %54 = vector.extract_strided_slice %49 {offsets = [1, 1, 0], sizes = [8, 16, 128], strides = [1, 1, 1]} : vector<10x18x128xf32> to vector<8x16x128xf32>
    %55 = vector.extract_strided_slice %49 {offsets = [1, 2, 0], sizes = [8, 16, 128], strides = [1, 1, 1]} : vector<10x18x128xf32> to vector<8x16x128xf32>
    %56 = vector.extract_strided_slice %49 {offsets = [2, 0, 0], sizes = [8, 16, 128], strides = [1, 1, 1]} : vector<10x18x128xf32> to vector<8x16x128xf32>
    %57 = vector.extract_strided_slice %49 {offsets = [2, 1, 0], sizes = [8, 16, 128], strides = [1, 1, 1]} : vector<10x18x128xf32> to vector<8x16x128xf32>
    %58 = vector.extract_strided_slice %49 {offsets = [2, 2, 0], sizes = [8, 16, 128], strides = [1, 1, 1]} : vector<10x18x128xf32> to vector<8x16x128xf32>
    %59 = tpu.concatenate %50, %51, %52, %53, %54, %55, %56, %57, %58 in 2 : vector<8x16x128xf32>, vector<8x16x128xf32>, vector<8x16x128xf32>, vector<8x16x128xf32>, vector<8x16x128xf32>, vector<8x16x128xf32>, vector<8x16x128xf32>, vector<8x16x128xf32>, vector<8x16x128xf32> -> vector<8x16x1152xf32>
    %60 = vector.shape_cast %59 : vector<8x16x1152xf32> to vector<128x1152xf32>
    %c0_14 = arith.constant 0 : index
    %c0_15 = arith.constant 0 : index
    %61 = vector.load %arg5[%c0_14, %c0_15] : memref<1152x128xf32, #tpu.memory_space<vmem>>, vector<1152x128xf32>
    %cst_16 = arith.constant dense<0.000000e+00> : vector<128x128xf32>
    %62 = tpu.matmul %60, %61, %cst_16 {dimension_numbers = #tpu.dot_dimension_numbers<[1], [0], [0], [1], [0, 0, 1, 1], [], []>} : vector<128x1152xf32>, vector<1152x128xf32>, vector<128x128xf32> -> vector<128x128xf32>
    %c0_17 = arith.constant 0 : index
    %c0_18 = arith.constant 0 : index
    %63 = vector.load %arg6[%c0_17, %c0_18] : memref<1x128xf32, #tpu.memory_space<vmem>>, vector<1x128xf32>
    %64 = vector.shape_cast %63 : vector<1x128xf32> to vector<128xf32>
    %65 = vector.shape_cast %64 : vector<128xf32> to vector<1x128xf32>
    %66 = vector.broadcast %65 : vector<1x128xf32> to vector<128x128xf32>
    %67 = arith.addf %62, %66 : vector<128x128xf32>
    %cst_19 = arith.constant 0.000000e+00 : f32
    %68 = vector.broadcast %cst_19 : f32 to vector<128x128xf32>
    %69 = arith.maximumf %67, %68 : vector<128x128xf32>
    %70 = vector.shape_cast %69 : vector<128x128xf32> to vector<8x16x128xf32>
    %c0_20 = arith.constant 0 : index
    %c0_21 = arith.constant 0 : index
    %c0_22 = arith.constant 0 : index
    %c0_23 = arith.constant 0 : index
    %71 = vector.load %arg7[%c0_20, %c0_21, %c0_22, %c0_23] : memref<1x8x16x128xf32, #tpu.memory_space<vmem>>, vector<1x8x16x128xf32>
    %72 = vector.shape_cast %71 : vector<1x8x16x128xf32> to vector<8x16x128xf32>
    %73 = vector.shape_cast %70 : vector<8x16x128xf32> to vector<1x8x16x128xf32>
    tpu.vector_store %arg7[%c0_20, %c0_21, %c0_22, %c0_23], %73 {strides = array<i32>} : memref<1x8x16x128xf32, #tpu.memory_space<vmem>>, vector<1x8x16x128xf32>,
    return
  }
  func.func @transform_0(%arg0: i32, %arg1: i32) -> (i32, i32, i32, i32) {
    %c0_i32 = arith.constant 0 : i32
    %c0_i32_0 = arith.constant 0 : i32
    %c0_i32_1 = arith.constant 0 : i32
    %c0_i32_2 = arith.constant 0 : i32
    return %arg0, %c0_i32, %c0_i32_0, %c0_i32_1 : i32, i32, i32, i32
  }
  func.func @transform_1(%arg0: i32, %arg1: i32) -> (i32, i32) {
    %c0_i32 = arith.constant 0 : i32
    %c0_i32_0 = arith.constant 0 : i32
    %c0_i32_1 = arith.constant 0 : i32
    return %c0_i32, %c0_i32_0 : i32, i32
  }
  func.func @transform_2(%arg0: i32, %arg1: i32) -> (i32, i32) {
    %c0_i32 = arith.constant 0 : i32
    %c0_i32_0 = arith.constant 0 : i32
    %c0_i32_1 = arith.constant 0 : i32
    return %c0_i32, %c0_i32_0 : i32, i32
  }
  func.func @transform_3(%arg0: i32, %arg1: i32) -> (i32, i32) {
    %c0_i32 = arith.constant 0 : i32
    %c0_i32_0 = arith.constant 0 : i32
    %c0_i32_1 = arith.constant 0 : i32
    return %c0_i32, %c0_i32_0 : i32, i32
  }
  func.func @transform_4(%arg0: i32, %arg1: i32) -> (i32, i32) {
    %c0_i32 = arith.constant 0 : i32
    %c0_i32_0 = arith.constant 0 : i32
    %c0_i32_1 = arith.constant 0 : i32
    return %c0_i32, %c0_i32_0 : i32, i32
  }
  func.func @transform_5(%arg0: i32, %arg1: i32) -> (i32, i32, i32, i32) {
    %c0_i32 = arith.constant 0 : i32
    %c0_i32_0 = arith.constant 0 : i32
    %c0_i32_1 = arith.constant 0 : i32
    return %arg0, %arg1, %c0_i32, %c0_i32_0 : i32, i32, i32, i32
  }
}

</mosaic_0001>

<bundles_post_ra>
// kernel: inconv_forward.1
= control target key start
LH: loop header
LB: loop body
LE: loop exit
PB: predicated region body
PF: predicated region fallthrough
CT: control target
= control target key end

     0   :  { %s5607_s18 = smov 0   ;;  %s5609_s19 = smov 0   ;;  %s8791_s0 = inlined_call_operand.vmem [shape: f32[2,16,16,4], index: 0, kind: input, shape index: {}]   ;;  %s8792_s1 = inlined_call_operand.vmem [shape: f32[36,128], index: 1, kind: input, shape index: {}]   ;;  %s8793_s2 = inlined_call_operand.vmem [shape: f32[1,128], index: 2, kind: input, shape index: {}]   ;;  %s8794_s3 = inlined_call_operand.vmem [shape: f32[1152,128], index: 3, kind: input, shape index: {}]   ;;  %s8795_s4 = inlined_call_operand.vmem [shape: f32[1,128], index: 4, kind: input, shape index: {}]   ;;  %s8796_s5 = inlined_call_operand.vmem [shape: f32[2,16,16,128], index: 5, kind: output, shape index: {}]  }
   0x1   :  { %s5611_s20 = smov 0   ;;  %s5613_s21 = smov 0  }
   0x2   :  { %s5615_s22 = smov 0  }
   0x3 LB: > { %s24_s23 = sadd.s32 1, %s5555_s20  ;;  %s27_s24 = sadd.s32 1, %s5559_s21  ;;  %s5563_s22 = sphi %s5615_s22, %s15_s22   ;;  %s5559_s21 = sphi %s5613_s21, %s9017_s21   ;;  %s5555_s20 = sphi %s5611_s20, %s9016_s20   ;;  %s5551_s19 = sphi %s5609_s19, %s9015_s19   ;;  %s5547_s18 = sphi %s5607_s18, %s9014_s18  }
   0x4   : > { %p25_p0 = scmp.ge.s32.totalorder %s24_s23, 2  ;;  %p4850_p1 = scmp.ge.s32.totalorder %s5563_s22, 1 }
   0x5   : > { %p201_p2 = scmp.lt.s32.totalorder %s5563_s22, 5 }
   0x6   : > { %s9019_s23 = smov (%p25_p0, %s24_s23), 0  ;;  %s9021_s24 = smov (!%p25_p0, %s27_s24), %s5559_s21 }
   0x7   : > { %p202_p3 = pnand %p4850_p1, %p201_p2  ;;  %p29_p4 = scmp.ge.s32.totalorder %s9021_s24, 2 }
   0x9   : > { %s9023_s24 = smov (%p29_p4, %s9021_s24), 0  ;;  %205 = sbr.rel (%p202_p3) target bundleno = 1135 (0x46f), region = 40 }
   0xe   : > { %p234_p5 = scmp.lt.s32.totalorder %s5551_s19, 1  ;;  %s5640_s25 = sshll.u32 %s5547_s18, 3 }
   0xf   : > { %p242_p6 = scmp.lt.s32.totalorder %s5640_s25, 15  ;;  %p4857_p7 = scmp.ne.s32.totalorder %s5547_s18, 0 }
  0x10   : > { %s9025_s19 = smov (!%p234_p5, %s5551_s19), 1 }
  0x11   : > { %s243_s26 = scalar_select %p242_p6, %s5640_s25, 15 }
  0x12   : > { %s4936_s27 = sshll.u32 %s9025_s19, 8  ;;  %s4855_s28 = sshll.u32 %s9025_s19, 5 }
  0x13   : > { %s5647_s6 = scalar_lea.vmem %s8791_s0, %s4936_s27  ;;  %s4854_s7 = sshll.u32 %s243_s26, 1 }
  0x14   : > { %s246_s8 = sadd.s32 %s4855_s28, %s4854_s7  ;;  %253 = sbr.rel (%p4857_p7) target bundleno = 72 (0x48), region = 44 }
  0x15   : > { %s4856_s9 = sshll.u32 %s246_s8, 3 }
  0x16   : > { %s5652_s12 = scalar_lea.vmem %s8796_s5, %s4856_s9 }
  0x19   : > { %vm254_vm0 = vcmask 31744   ;;  %vm257_vm1 = vcmask 27648   ;;  %v5656_v0 = vld [vmem:[%s5647_s6] sm:$0xff]  ;;  %v5659_v1 = vld [vmem:[%s5647_s6 + $0x8] sm:$0xff]  ;;  %v5662_v2 = vld [vmem:[%s5647_s6 + $0x10] sm:$0xff]  ;;  %v5565_v3 = vmov 0.0  }
  0x1a   : > { %262 = vst.msk [vmem:[#allocation2 + $0x30] sm:$0xff] %vm254_vm0, %v5565_v3  ;;  %255 = vst.msk [vmem:[#allocation2] sm:$0xff] %vm254_vm0, %v5565_v3  ;;  %v319_v4 = vld [vmem:[%s5647_s6 + $0x18] sm:$0xff]  ;;  %v320_v5 = vld [vmem:[%s5647_s6 + $0x20] sm:$0xff] }
  0x1b   : > { %256 = vst.msk [vmem:[#allocation2 + $0x8] sm:$0xff] %vm254_vm0, %v5565_v3  ;;  %259 = vst.msk [vmem:[#allocation2 + $0x18] sm:$0xff] %vm254_vm0, %v5565_v3  ;;  %v321_v6 = vld [vmem:[%s5647_s6 + $0x28] sm:$0xff]  ;;  %v322_v7 = vld [vmem:[%s5647_s6 + $0x30] sm:$0xff] }
  0x1c   : > { %260 = vst.msk [vmem:[#allocation2 + $0x20] sm:$0xff] %vm254_vm0, %v5565_v3  ;;  %263 = vst.msk [vmem:[#allocation2 + $0x38] sm:$0xff] %vm254_vm0, %v5565_v3  ;;  %v323_v8 = vld [vmem:[%s5647_s6 + $0x38] sm:$0xff]  ;;  %v324_v9 = vld [vmem:[%s5647_s6 + $0x40] sm:$0xff] }
  0x1d   : > { %265 = vst.msk [vmem:[#allocation2 + $0x48] sm:$0xff] %vm254_vm0, %v5565_v3  ;;  %266 = vst.msk [vmem:[#allocation2 + $0x50] sm:$0xff] %vm254_vm0, %v5565_v3  ;;  %v325_v10 = vld [vmem:[%s5647_s6 + $0x48] sm:$0xff]  ;;  %v326_v11 = vld [vmem:[%s5647_s6 + $0x50] sm:$0xff] }
  0x1e   : > { %268 = vst.msk [vmem:[#allocation2 + $0x60] sm:$0xff] %vm254_vm0, %v5565_v3  ;;  %269 = vst.msk [vmem:[#allocation2 + $0x68] sm:$0xff] %vm254_vm0, %v5565_v3  ;;  %v327_v12 = vld [vmem:[%s5647_s6 + $0x58] sm:$0xff]  ;;  %v328_v13 = vld [vmem:[%s5647_s6 + $0x60] sm:$0xff] }
  0x1f   : > { %271 = vst.msk [vmem:[#allocation2 + $0x78] sm:$0xff] %vm254_vm0, %v5565_v3  ;;  %272 = vst.msk [vmem:[#allocation2 + $0x80] sm:$0xff] %vm254_vm0, %v5565_v3  ;;  %v329_v14 = vld [vmem:[%s5647_s6 + $0x68] sm:$0xff]  ;;  %v330_v15 = vld [vmem:[%s5647_s6 + $0x70] sm:$0xff] }
  0x20   : > { %274 = vst.msk [vmem:[#allocation2 + $0x90] sm:$0xff] %vm254_vm0, %v5565_v3  ;;  %275 = vst.msk [vmem:[#allocation2 + $0x98] sm:$0xff] %vm254_vm0, %v5565_v3  ;;  %v331_v16 = vld [vmem:[%s5647_s6 + $0x78] sm:$0xff]  ;;  %v332_v17 = vld [vmem:[%s5647_s6 + $0x80] sm:$0xff] }
  0x21   : > { %277 = vst.msk [vmem:[#allocation2 + $0xa8] sm:$0xff] %vm254_vm0, %v5565_v3  ;;  %278 = vst.msk [vmem:[#allocation2 + $0xb0] sm:$0xff] %vm254_vm0, %v5565_v3  ;;  %v333_v18 = vld [vmem:[%s5647_s6 + $0x88] sm:$0xff]  ;;  %v334_v19 = vld [vmem:[%s5647_s6 + $0x90] sm:$0xff] }
  0x22   : > { %280 = vst.msk [vmem:[#allocation2 + $0xc0] sm:$0xff] %vm254_vm0, %v5565_v3  ;;  %281 = vst.msk [vmem:[#allocation2 + $0xc8] sm:$0xff] %vm254_vm0, %v5565_v3  ;;  %v335_v20 = vld [vmem:[%s5647_s6 + $0x98] sm:$0xff]  ;;  %v336_v21 = vld [vmem:[%s5647_s6 + $0xa0] sm:$0xff] }
  0x23   : > { %283 = vst.msk [vmem:[#allocation2 + $0xd8] sm:$0xff] %vm254_vm0, %v5565_v3  ;;  %284 = vst.msk [vmem:[#allocation2 + $0xe0] sm:$0xff] %vm254_vm0, %v5565_v3  ;;  %v337_v22 = vld [vmem:[%s5647_s6 + $0xa8] sm:$0xff]  ;;  %v338_v23 = vld [vmem:[%s5647_s6 + $0xb0] sm:$0xff] }
  0x24   : > { %286 = vst.msk [vmem:[#allocation2 + $0xf0] sm:$0xff] %vm254_vm0, %v5565_v3  ;;  %287 = vst.msk [vmem:[#allocation2 + $0xf8] sm:$0xff] %vm254_vm0, %v5565_v3  ;;  %v339_v24 = vld [vmem:[%s5647_s6 + $0xb8] sm:$0xff]  ;;  %v340_v25 = vld [vmem:[%s5647_s6 + $0xc0] sm:$0xff] }
  0x25   : > { %289 = vst.msk [vmem:[#allocation2 + $0x108] sm:$0xff] %vm254_vm0, %v5565_v3  ;;  %290 = vst.msk [vmem:[#allocation2 + $0x110] sm:$0xff] %vm254_vm0, %v5565_v3  ;;  %v341_v26 = vld [vmem:[%s5647_s6 + $0xc8] sm:$0xff]  ;;  %v342_v27 = vld [vmem:[%s5647_s6 + $0xd0] sm:$0xff] }
  0x26   : > { %292 = vst.msk [vmem:[#allocation2 + $0x120] sm:$0xff] %vm254_vm0, %v5565_v3  ;;  %293 = vst.msk [vmem:[#allocation2 + $0x128] sm:$0xff] %vm254_vm0, %v5565_v3  ;;  %v343_v28 = vld [vmem:[%s5647_s6 + $0xd8] sm:$0xff]  ;;  %v344_v29 = vld [vmem:[%s5647_s6 + $0xe0] sm:$0xff] }
  0x27   : > { %295 = vst.msk [vmem:[#allocation2 + $0x138] sm:$0xff] %vm254_vm0, %v5565_v3  ;;  %296 = vst.msk [vmem:[#allocation2 + $0x140] sm:$0xff] %vm254_vm0, %v5565_v3  ;;  %v345_v30 = vld [vmem:[%s5647_s6 + $0xe8] sm:$0xff]  ;;  %v346_v31 = vld [vmem:[%s5647_s6 + $0xf0] sm:$0xff] }
  0x28   : > { %298 = vst.msk [vmem:[#allocation2 + $0x150] sm:$0xff] %vm254_vm0, %v5565_v3  ;;  %299 = vst.msk [vmem:[#allocation2 + $0x158] sm:$0xff] %vm254_vm0, %v5565_v3  ;;  %v347_v32 = vld [vmem:[%s5647_s6 + $0xf8] sm:$0xff] }
  0x29   : > { %301 = vst.msk [vmem:[#allocation2 + $0x168] sm:$0xff] %vm254_vm0, %v5565_v3  ;;  %302 = vst.msk [vmem:[#allocation2 + $0x170] sm:$0xff] %vm254_vm0, %v5565_v3 }
  0x2a   : > { %304 = vst.msk [vmem:[#allocation2 + $0x180] sm:$0xff] %vm254_vm0, %v5565_v3  ;;  %305 = vst.msk [vmem:[#allocation2 + $0x188] sm:$0xff] %vm254_vm0, %v5565_v3 }
  0x2b   : > { %307 = vst.msk [vmem:[#allocation2 + $0x198] sm:$0xff] %vm254_vm0, %v5565_v3  ;;  %308 = vst.msk [vmem:[#allocation2 + $0x1a0] sm:$0xff] %vm254_vm0, %v5565_v3 }
  0x2c   : > { %310 = vst.msk [vmem:[#allocation2 + $0x1b0] sm:$0xff] %vm254_vm0, %v5565_v3  ;;  %311 = vst.msk [vmem:[#allocation2 + $0x1b8] sm:$0xff] %vm254_vm0, %v5565_v3 }
  0x2d   : > { %313 = vst.msk [vmem:[#allocation2 + $0x1c8] sm:$0xff] %vm254_vm0, %v5565_v3  ;;  %314 = vst.msk [vmem:[#allocation2 + $0x1d0] sm:$0xff] %vm254_vm0, %v5565_v3 }
  0x2e   : > { %264 = vst.msk [vmem:[#allocation2 + $0x40] sm:$0xf] %vm257_vm1, %v5565_v3  ;;  %258 = vst.msk [vmem:[#allocation2 + $0x10] sm:$0xf] %vm257_vm1, %v5565_v3 }
  0x2f   : > { %261 = vst.msk [vmem:[#allocation2 + $0x28] sm:$0xf] %vm257_vm1, %v5565_v3  ;;  %267 = vst.msk [vmem:[#allocation2 + $0x58] sm:$0xf] %vm257_vm1, %v5565_v3 }
  0x30   : > { %270 = vst.msk [vmem:[#allocation2 + $0x70] sm:$0xf] %vm257_vm1, %v5565_v3  ;;  %273 = vst.msk [vmem:[#allocation2 + $0x88] sm:$0xf] %vm257_vm1, %v5565_v3 }
  0x31   : > { %276 = vst.msk [vmem:[#allocation2 + $0xa0] sm:$0xf] %vm257_vm1, %v5565_v3  ;;  %279 = vst.msk [vmem:[#allocation2 + $0xb8] sm:$0xf] %vm257_vm1, %v5565_v3 }
  0x32   : > { %282 = vst.msk [vmem:[#allocation2 + $0xd0] sm:$0xf] %vm257_vm1, %v5565_v3  ;;  %285 = vst.msk [vmem:[#allocation2 + $0xe8] sm:$0xf] %vm257_vm1, %v5565_v3 }
  0x33   : > { %288 = vst.msk [vmem:[#allocation2 + $0x100] sm:$0xf] %vm257_vm1, %v5565_v3  ;;  %291 = vst.msk [vmem:[#allocation2 + $0x118] sm:$0xf] %vm257_vm1, %v5565_v3 }
  0x34   : > { %294 = vst.msk [vmem:[#allocation2 + $0x130] sm:$0xf] %vm257_vm1, %v5565_v3  ;;  %297 = vst.msk [vmem:[#allocation2 + $0x148] sm:$0xf] %vm257_vm1, %v5565_v3 }
  0x35   : > { %300 = vst.msk [vmem:[#allocation2 + $0x160] sm:$0xf] %vm257_vm1, %v5565_v3  ;;  %303 = vst.msk [vmem:[#allocation2 + $0x178] sm:$0xf] %vm257_vm1, %v5565_v3 }
  0x36   : > { %306 = vst.msk [vmem:[#allocation2 + $0x190] sm:$0xf] %vm257_vm1, %v5565_v3  ;;  %309 = vst.msk [vmem:[#allocation2 + $0x1a8] sm:$0xf] %vm257_vm1, %v5565_v3 }
  0x37   : > { %312 = vst.msk [vmem:[#allocation2 + $0x1c0] sm:$0xf] %vm257_vm1, %v5565_v3  ;;  %315 = vst.msk [vmem:[#allocation2 + $0x1d8] sm:$0xf] %vm257_vm1, %v5565_v3 }
  0x38   : > { %349 = vst.msk [vmem:[#allocation2 + $0x32] sm:$0xff] %vm254_vm0, %v5656_v0  ;;  %350 = vst.msk [vmem:[#allocation2 + $0x3a] sm:$0xff] %vm254_vm0, %v5659_v1 }
  0x39   : > { %351 = vst.msk [vmem:[#allocation2 + $0x4a] sm:$0xff] %vm254_vm0, %v5662_v2  ;;  %352 = vst.msk [vmem:[#allocation2 + $0x52] sm:$0xff] %vm254_vm0, %v319_v4 }
  0x3a   : > { %353 = vst.msk [vmem:[#allocation2 + $0x62] sm:$0xff] %vm254_vm0, %v320_v5  ;;  %354 = vst.msk [vmem:[#allocation2 + $0x6a] sm:$0xff] %vm254_vm0, %v321_v6 }
  0x3b   : > { %355 = vst.msk [vmem:[#allocation2 + $0x7a] sm:$0xff] %vm254_vm0, %v322_v7  ;;  %356 = vst.msk [vmem:[#allocation2 + $0x82] sm:$0xff] %vm254_vm0, %v323_v8 }
  0x3c   : > { %357 = vst.msk [vmem:[#allocation2 + $0x92] sm:$0xff] %vm254_vm0, %v324_v9  ;;  %358 = vst.msk [vmem:[#allocation2 + $0x9a] sm:$0xff] %vm254_vm0, %v325_v10 }
  0x3d   : > { %359 = vst.msk [vmem:[#allocation2 + $0xaa] sm:$0xff] %vm254_vm0, %v326_v11  ;;  %360 = vst.msk [vmem:[#allocation2 + $0xb2] sm:$0xff] %vm254_vm0, %v327_v12 }
  0x3e   : > { %361 = vst.msk [vmem:[#allocation2 + $0xc2] sm:$0xff] %vm254_vm0, %v328_v13  ;;  %362 = vst.msk [vmem:[#allocation2 + $0xca] sm:$0xff] %vm254_vm0, %v329_v14 }
  0x3f   : > { %363 = vst.msk [vmem:[#allocation2 + $0xda] sm:$0xff] %vm254_vm0, %v330_v15  ;;  %364 = vst.msk [vmem:[#allocation2 + $0xe2] sm:$0xff] %vm254_vm0, %v331_v16 }
  0x40   : > { %365 = vst.msk [vmem:[#allocation2 + $0xf2] sm:$0xff] %vm254_vm0, %v332_v17  ;;  %366 = vst.msk [vmem:[#allocation2 + $0xfa] sm:$0xff] %vm254_vm0, %v333_v18 }
  0x41   : > { %367 = vst.msk [vmem:[#allocation2 + $0x10a] sm:$0xff] %vm254_vm0, %v334_v19  ;;  %368 = vst.msk [vmem:[#allocation2 + $0x112] sm:$0xff] %vm254_vm0, %v335_v20 }
  0x42   : > { %369 = vst.msk [vmem:[#allocation2 + $0x122] sm:$0xff] %vm254_vm0, %v336_v21  ;;  %370 = vst.msk [vmem:[#allocation2 + $0x12a] sm:$0xff] %vm254_vm0, %v337_v22 }
  0x43   : > { %371 = vst.msk [vmem:[#allocation2 + $0x13a] sm:$0xff] %vm254_vm0, %v338_v23  ;;  %372 = vst.msk [vmem:[#allocation2 + $0x142] sm:$0xff] %vm254_vm0, %v339_v24 }
  0x44   : > { %373 = vst.msk [vmem:[#allocation2 + $0x152] sm:$0xff] %vm254_vm0, %v340_v25  ;;  %374 = vst.msk [vmem:[#allocation2 + $0x15a] sm:$0xff] %vm254_vm0, %v341_v26 }
  0x45   : > { %375 = vst.msk [vmem:[#allocation2 + $0x16a] sm:$0xff] %vm254_vm0, %v342_v27  ;;  %376 = vst.msk [vmem:[#allocation2 + $0x172] sm:$0xff] %vm254_vm0, %v343_v28 }
  0x46   : > { %377 = vst.msk [vmem:[#allocation2 + $0x182] sm:$0xff] %vm254_vm0, %v344_v29  ;;  %378 = vst.msk [vmem:[#allocation2 + $0x18a] sm:$0xff] %vm254_vm0, %v345_v30 }
  0x47   : > { %379 = vst.msk [vmem:[#allocation2 + $0x19a] sm:$0xff] %vm254_vm0, %v346_v31  ;;  %380 = vst.msk [vmem:[#allocation2 + $0x1a2] sm:$0xff] %vm254_vm0, %v347_v32 }
  0x48 PF: > { %s4859_s13 = smul.u32 192, %s5547_s18  ;;  %vm8799_vm2 = vcmask 1046528   ;;  %vm8798_vm3 = vcmask 1045504   ;;  %s5566_s15 = smov 12   ;;  %v1990_v58 = vld [vmem:[%s8792_s1 + $0x20] sm:$0xf] }
  0x49   : > { %s5567_s16 = smov 4   ;;  %s5568_s17 = smov 16   ;;  %v5572_v63 = vmov 0.0   ;;  %vm2427_vm4 = vcmask 1043456   ;;  %v1989_v0 = vld [vmem:[%s8792_s1 + $0x18] sm:$0xff]  ;;  %v1988_v2 = vld [vmem:[%s8792_s1 + $0x10] sm:$0xff] }
  0x4a   : > { %s5789_s14 = scalar_lea.vmem [#allocation2], %s4859_s13  ;;  %s5569_s18 = smov 8   ;;  %5317 = vmatprep.subr.mxu0 %v5572_v63  ;;  %v1987_v5 = vld [vmem:[%s8792_s1 + $0x8] sm:$0xff]  ;;  %v1986_v8 = vld [vmem:[%s8792_s1] sm:$0xff]  ;;  %vm8804_vm5 = vmmov 0   ;;  %vm1298_vm6 = vcmask 31744  }
  0x4b   : > { %s5570_s19 = smov 20   ;;  %s5571_s26 = smov 24   ;;  %5318 = vmatpush3.msk.msra.mxu0 %vm2427_vm4, %v1990_v58  ;;  %5327 = vmatprep.mubr.msk.f32.mxu0 %vm8804_vm5, %v5572_v63  ;;  %vm8807_vm7 = vcmask 64512   ;;  %vm8806_vm8 = vcmask 97280   ;;  %vm1391_vm9 = vcmask 130048   ;;  %vm1422_vm10 = vcmask 162816  }
  0x4c   : > { %s5573_s6 = smov 28   ;;  %5319 = vmatprep.subr.mxu0 %v5572_v63  ;;  %s5574_s11 = smov 32   ;;  %vm1453_vm11 = vcmask 195584   ;;  %vm8797_vm12 = vcmask 228352   ;;  %vm8802_vm13 = vcmask 261120   ;;  %vm8803_vm14 = vcmask 293888  }
  0x4d   : > { %5320 = vmatpush3.msra.mxu0 %v1989_v0  ;;  %s3045_s7 = sadd.s32 8, %s5640_s25  ;;  %p3043_p8 = scmp.eq.s32.totalorder %s5640_s25, 0 }
  0x4e   : > { %v5792_v33 = vld [vmem:[%s5789_s14 + $0x18] sm:$0xff]  ;;  %v5795_v34 = vld [vmem:[%s5789_s14] sm:$0xff]  ;;  %v5798_v35 = vld [vmem:[%s5789_s14 + $0x8] sm:$0xff]  ;;  %5321 = vmatprep.subr.mxu0 %v5572_v63  ;;  %p6791_p9 = scmp.eq.s32.totalorder %s3045_s7, 16 }
  0x4f   : > { %735 = vrot.lane.b32.xlu1 %v5792_v33, %s5566_s15  ;;  %v451_v36 = vrot.slane %v5795_v34, 1  ;;  %v452_v37 = vrot.slane %v5798_v35, 1  ;;  %v5805_v38 = vld [vmem:[%s5789_s14 + $0x20] sm:$0xff]  ;;  %v456_v39 = vrot.slane %v5792_v33, 1  ;;  %v592_v40 = vrot.slane %v5795_v34, 2  ;;  %v5829_v51 = vld [vmem:[%s5789_s14 + $0x30] sm:$0xff]  ;;  %5322 = vmatpush3.msra.mxu0 %v1988_v2 }
  0x50   : > { %v457_v41 = vrot.slane %v5805_v38, 1  ;;  %v593_v42 = vrot.slane %v5798_v35, 2  ;;  %v597_v43 = vrot.slane %v5792_v33, 2  ;;  %v598_v44 = vrot.slane %v5805_v38, 2  ;;  %v5814_v45 = vld [vmem:[%s5789_s14 + $0x10] sm:$0xf]  ;;  %5323 = vmatprep.subr.mxu0 %v5572_v63 }
  0x51   : > { %v453_v46 = vsel %vm8799_vm2, %v451_v36, %v452_v37  ;;  %v454_v49 = vrot.slane %v5814_v45, 1  ;;  %v5832_v52 = vld [vmem:[%s5789_s14 + $0x38] sm:$0xff]  ;;  %v595_v54 = vrot.slane %v5814_v45, 2  ;;  %v461_v55 = vrot.slane %v5829_v51, 1  ;;  %v5853_v62 = vld [vmem:[%s5789_s14 + $0x28] sm:$0xf]  ;;  %5324 = vmatpush3.msra.mxu0 %v1987_v5 }
  0x52   : > { %501 = vrot.lane.b32.xlu0 %v453_v46, %s5567_s16  ;;  %v5819_v47 = vsel %vm8799_vm2, %v456_v39, %v457_v41  ;;  %v594_v48 = vsel %vm8798_vm3, %v592_v40, %v593_v42  ;;  %v599_v50 = vsel %vm8798_vm3, %v597_v43, %v598_v44  ;;  %v462_v56 = vrot.slane %v5832_v52, 1  ;;  %v5871_v4 = vld [vmem:[%s5789_s14 + $0x40] sm:$0xf]  ;;  %5325 = vmatprep.subr.mxu0 %v5572_v63  ;;  %v5923_v14 = vld [vmem:[%s5789_s14 + $0x48] sm:$0xff]  ;;  %v5929_v15 = vld [vmem:[%s5789_s14 + $0x50] sm:$0xff] }
  0x53   : > { %830 = vrot.lane.b32.xlu1 %v5819_v47, %s5568_s17  ;;  %v455_v53 = vsel %vm8799_vm2, %v452_v37, %v454_v49  ;;  %v596_v57 = vsel %vm8798_vm3, %v593_v42, %v595_v54  ;;  %v602_v60 = vrot.slane %v5829_v51, 2  ;;  %v603_v61 = vrot.slane %v5832_v52, 2  ;;  %5326 = vmatpush3.msra.mxu0 %v1986_v8  ;;  %v5959_v22 = vld [vmem:[%s5789_s14 + $0x58] sm:$0xf]  ;;  %v5992_v27 = vld [vmem:[%s5789_s14 + $0x60] sm:$0xff]  ;;  %v5999_v28 = vld [vmem:[%s5789_s14 + $0x68] sm:$0xff] }
  0x54   : > { %v5848_v59 = vsel %vm8799_vm2, %v461_v55, %v462_v56  ;;  %v5863_v1 = vrot.slane %v5853_v62, 1  ;;  %v600_v7 = vrot.slane %v5853_v62, 2  ;;  %v5888_v9 = vrot.slane %v5871_v4, 1  ;;  %s3044_s9 = scalar_select %p3043_p8, 1, 0 }
  0x55   : > { %v604_v3 = vsel %vm8798_vm3, %v602_v60, %v603_v61  ;;  %v5902_v12 = vrot.slane %v5871_v4, 2  ;;  %v466_v16 = vrot.slane %v5923_v14, 1  ;;  %v467_v17 = vrot.slane %v5929_v15, 1  ;;  %s3047_s10 = scalar_select %p6791_p9, 8, 9 }
  0x56   : > { %642 = vrot.lane.b32.xlu0 %v594_v48, %s5569_s18  ;;  %v460_v6 = vsel %vm8799_vm2, %v457_v41, %v5863_v1  ;;  %v601_v10 = vsel %vm8798_vm3, %v598_v44, %v600_v7  ;;  %v465_v11 = vsel %vm8799_vm2, %v462_v56, %v5888_v9  ;;  %v607_v18 = vrot.slane %v5923_v14, 2  ;;  %v6034_v44 = vld [vmem:[%s5789_s14 + $0x70] sm:$0xf] }
  0x57   : > { %925 = vrot.lane.b32.xlu1 %v599_v50, %s5570_s19  ;;  %v606_v13 = vsel %vm8798_vm3, %v603_v61, %v5902_v12  ;;  %v608_v19 = vrot.slane %v5929_v15, 2  ;;  %v468_v20 = vsel %vm8799_vm2, %v466_v16, %v467_v17  ;;  %v5966_v23 = vrot.slane %v5959_v22, 1 }
  0x58   : > { %v5969_v24 = vrot.slane %v5959_v22, 2  ;;  %v471_v29 = vrot.slane %v5992_v27, 1  ;;  %v472_v30 = vrot.slane %v5999_v28, 1  ;;  %v612_v31 = vrot.slane %v5992_v27, 2 }
  0x59   : > { %v5943_v21 = vsel %vm8798_vm3, %v607_v18, %v608_v19  ;;  %v5976_v25 = vsel %vm8799_vm2, %v467_v17, %v5966_v23  ;;  %v613_v32 = vrot.slane %v5999_v28, 2  ;;  %v6045_v55 = vrot.slane %v6034_v44, 2 }
  0x5a   : > { %503 = vrot.lane.b32.xlu0 %v455_v53, %s5567_s16  ;;  %v5980_v26 = vsel %vm8798_vm3, %v608_v19, %v5969_v24  ;;  %v6014_v36 = vsel %vm8799_vm2, %v471_v29, %v472_v30  ;;  %v1580_v53 = vlaneseq }
  0x5b   : > { %1018 = vrot.lane.b32.xlu1 %v5829_v51, %s5571_s26  ;;  %v6017_v37 = vsel %vm8798_vm3, %v612_v31, %v613_v32  ;;  %v6060_v0 = vsel %vm8798_vm3, %v613_v32, %v6045_v55 }
  0x5c   : > { %v6056_v60 = vshrl.u32 %v1580_v53, 7  ;;  %v399_v53 = vld [vmem:[%s5789_s14 + $0x78] sm:$0xff] }
  0x5e   : > { %644 = vrot.lane.b32.xlu0 %v596_v57, %s5569_s18  ;;  %vm8801_vm4 = vcmp.ge.s32.totalorder %v6056_v60, 1 }
  0x5f   : > { %1113 = vrot.lane.b32.xlu1 %v5848_v59, %s5573_s6 }
  0x62   : > { %737 = vrot.lane.b32.xlu0 %v5805_v38, %s5566_s15 }
  0x63   : > { %1208 = vrot.lane.b32.xlu1 %v604_v3, %s5574_s11 }
  0x66   : > { %832 = vrot.lane.b32.xlu0 %v460_v6, %s5568_s17 }
  0x67   : > { %1020 = vrot.lane.b32.xlu1 %v5832_v52, %s5571_s26 }
  0x6a   : > { %927 = vrot.lane.b32.xlu0 %v601_v10, %s5570_s19 }
  0x6b   : > { %1115 = vrot.lane.b32.xlu1 %v465_v11, %s5573_s6 }
  0x6e   : > { %507 = vrot.lane.b32.xlu0 %v5819_v47, %s5567_s16 }
  0x6f   : > { %1210 = vrot.lane.b32.xlu1 %v606_v13, %s5574_s11 }
  0x72   : > { %648 = vrot.lane.b32.xlu0 %v599_v50, %s5569_s18  ;;  %v5576_v50 = vmov 1983009808  }
  0x73   : > { %741 = vrot.lane.b32.xlu1 %v5829_v51, %s5566_s15 }
  0x76   : > { %505 = vrot.lane.b32.xlu0 %v454_v49, %s5567_s16  ;;  %v6042_v49 = vrot.slane %v6034_v44, 1 }
  0x77   : > { %836 = vrot.lane.b32.xlu1 %v5848_v59, %s5568_s17 }
  0x78   : > { %v6054_v58 = vsel %vm8799_vm2, %v472_v30, %v6042_v49 }
  0x7a   : > { %646 = vrot.lane.b32.xlu0 %v595_v54, %s5569_s18 }
  0x7b   : > { %739 = vrot.lane.b32.xlu1 %v5853_v62, %s5566_s15 }
  0x7e   : > { %509 = vrot.lane.b32.xlu0 %v460_v6, %s5567_s16 }
  0x7f   : > { %650 = vrot.lane.b32.xlu1 %v601_v10, %s5569_s18 }
  0x82   : > { %931 = vrot.lane.b32.xlu0 %v604_v3, %s5570_s19 }
  0x83   : > { %1024 = vrot.lane.b32.xlu1 %v5923_v14, %s5571_s26 }
  0x86   : > { %834 = vrot.lane.b32.xlu0 %v5863_v1, %s5568_s17 }
  0x87   : > { %929 = vrot.lane.b32.xlu1 %v600_v7, %s5570_s19 }
  0x8a   : > { %743 = vrot.lane.b32.xlu0 %v5832_v52, %s5566_s15 }
  0x8b   : > { %838 = vrot.lane.b32.xlu1 %v465_v11, %s5568_s17 }
  0x8e   : > { %1119 = vrot.lane.b32.xlu0 %v468_v20, %s5573_s6 }
  0x8f   : > { %1214 = vrot.lane.b32.xlu1 %v5943_v21, %s5574_s11 }
  0x92   : > { %1022 = vrot.lane.b32.xlu0 %v5871_v4, %s5571_s26 }
  0x93   : > { %933 = vrot.lane.b32.xlu1 %v606_v13, %s5570_s19 }
  0x96   : > { %513 = vrot.lane.b32.xlu0 %v5848_v59, %s5567_s16 }
  0x97   : > { %654 = vrot.lane.b32.xlu1 %v604_v3, %s5569_s18 }
  0x9a   : > { %1117 = vrot.lane.b32.xlu0 %v5888_v9, %s5573_s6 }
  0x9b   : > { %1212 = vrot.lane.b32.xlu1 %v5902_v12, %s5574_s11 }
  0x9e   : > { %1026 = vrot.lane.b32.xlu0 %v5929_v15, %s5571_s26 }
  0x9f   : > { %747 = vrot.lane.b32.xlu1 %v5923_v14, %s5566_s15 }
  0xa2   : > { %511 = vrot.lane.b32.xlu0 %v5863_v1, %s5567_s16 }
  0xa3   : > { %652 = vrot.lane.b32.xlu1 %v600_v7, %s5569_s18 }
  0xa6   : > { %1121 = vrot.lane.b32.xlu0 %v5976_v25, %s5573_s6 }
  0xa7   : > { %1216 = vrot.lane.b32.xlu1 %v5980_v26, %s5574_s11 }
  0xaa   : > { %842 = vrot.lane.b32.xlu0 %v468_v20, %s5568_s17 }
  0xab   : > { %745 = vrot.lane.b32.xlu1 %v5871_v4, %s5566_s15 }
  0xae   : > { %515 = vrot.lane.b32.xlu0 %v465_v11, %s5567_s16 }
  0xaf   : > { %656 = vrot.lane.b32.xlu1 %v606_v13, %s5569_s18 }
  0xb2   : > { %937 = vrot.lane.b32.xlu0 %v5943_v21, %s5570_s19 }
  0xb3   : > { %1030 = vrot.lane.b32.xlu1 %v5992_v27, %s5571_s26 }
  0xb6   : > { %840 = vrot.lane.b32.xlu0 %v5888_v9, %s5568_s17 }
  0xb7   : > { %935 = vrot.lane.b32.xlu1 %v5902_v12, %s5570_s19 }
  0xba   : > { %749 = vrot.lane.b32.xlu0 %v5929_v15, %s5566_s15 }
  0xbb   : > { %844 = vrot.lane.b32.xlu1 %v5976_v25, %s5568_s17 }
  0xbe   : > { %1125 = vrot.lane.b32.xlu0 %v6014_v36, %s5573_s6 }
  0xbf   : > { %1220 = vrot.lane.b32.xlu1 %v6017_v37, %s5574_s11 }
  0xc1   : > { %v736_v39 = vpop.permute.xlu1 %735 }
  0xc2   : > { %1028 = vrot.lane.b32.xlu0 %v5959_v22, %s5571_s26 }
  0xc3   : > { %1123 = vrot.lane.b32.xlu1 %v5966_v23, %s5573_s6 }
  0xc4   : > { %v502_v40 = vpop.permute.xlu0 %501 }
  0xc5   : > { %v831_v41 = vpop.permute.xlu1 %830  ;;  %v1299_v42 = vsel %vm1298_vm6, %v5795_v34, %v502_v40  ;;  %v1578_v34 = vunpack.c.l.s4 %v5576_v50 }
  0xc6   : > { %939 = vrot.lane.b32.xlu0 %v5980_v26, %s5570_s19 }
  0xc7   : > { %1218 = vrot.lane.b32.xlu1 %v5969_v24, %s5574_s11  ;;  %v1579_v59 = vunpack.c.0.s8 %v1578_v34 }
  0xc8   : > { %v643_v43 = vpop.permute.xlu0 %642 }
  0xc9   : > { %v1330_v46 = vsel %vm8807_vm7, %v1299_v42, %v643_v43  ;;  %v926_v47 = vpop.permute.xlu1 %925  ;;  %v6068_v3 = vsub.s32 %v1579_v59, %v6056_v60 }
  0xca   : > { %1032 = vrot.lane.b32.xlu0 %v5999_v28, %s5571_s26  ;;  %v1361_v48 = vsel %vm8806_vm8, %v1330_v46, %v736_v39 }
  0xcb   : > { %519 = vrot.lane.b32.xlu1 %v468_v20, %s5567_s16  ;;  %v1392_v57 = vsel %vm1391_vm9, %v1361_v48, %v831_v41 }
  0xcc   : > { %v504_v54 = vpop.permute.xlu0 %503  ;;  %v1423_v1 = vsel %vm1422_vm10, %v1392_v57, %v926_v47 }
  0xcd   : > { %v1019_v56 = vpop.permute.xlu1 %1018  ;;  %v1300_v13 = vsel %vm1298_vm6, %v5798_v35, %v504_v54 }
  0xce   : > { %517 = vrot.lane.b32.xlu0 %v5888_v9, %s5567_s16  ;;  %v1454_v5 = vsel %vm1453_vm11, %v1423_v1, %v1019_v56 }
  0xcf   : > { %658 = vrot.lane.b32.xlu1 %v5902_v12, %s5569_s18 }
  0xd0   : > { %v645_v61 = vpop.permute.xlu0 %644 }
  0xd1   : > { %v1114_v2 = vpop.permute.xlu1 %1113  ;;  %v1331_v19 = vsel %vm8807_vm7, %v1300_v13, %v645_v61 }
  0xd2   : > { %1127 = vrot.lane.b32.xlu0 %v6054_v58, %s5573_s6  ;;  %v1485_v7 = vsel %vm8797_vm12, %v1454_v5, %v1114_v2 }
  0xd3   : > { %1222 = vrot.lane.b32.xlu1 %v6060_v0, %s5574_s11 }
  0xd4   : > { %v738_v6 = vpop.permute.xlu0 %737 }
  0xd5   : > { %v1209_v8 = vpop.permute.xlu1 %1208  ;;  %v1362_v20 = vsel %vm8806_vm8, %v1331_v19, %v738_v6 }
  0xd6   : > { %v1516_v9 = vsel %vm8802_vm13, %v1485_v7, %v1209_v8  ;;  %660 = vrot.lane.b32.xlu0 %v5943_v21, %s5569_s18  ;;  %v476_v7 = vrot.slane %v399_v53, 1 }
  0xd7   : > { %v1576_v10 = vcombine.high %v1516_v9, %v1516_v9  ;;  %v1583_v11 = vrot.slane %v1516_v9, %v6068_v3  ;;  %753 = vrot.lane.b32.xlu1 %v5992_v27, %s5566_s15 }
  0xd8   : > { %v833_v12 = vpop.permute.xlu0 %832 }
  0xd9   : > { %v1590_v16 = vrot.slane %v1576_v10, %v6068_v3  ;;  %v1591_v17 = vcombine.high %v1583_v11, %v1583_v11  ;;  %v1021_v18 = vpop.permute.xlu1 %1020  ;;  %v1393_v27 = vsel %vm1391_vm9, %v1362_v20, %v833_v12  ;;  %v617_v10 = vrot.slane %v399_v53, 2 }
  0xda   : > { %751 = vrot.lane.b32.xlu0 %v5959_v22, %s5566_s15 }
  0xdb   : > { %v1592_v21 = vcombine.high %v1590_v16, %v1590_v16  ;;  %v1998_v29 = vcombine.low %v1583_v11, %v1591_v17  ;;  %848 = vrot.lane.b32.xlu1 %v6014_v36, %s5568_s17 }
  0xdc   : > { %v928_v30 = vpop.permute.xlu0 %927 }
  0xdd   : > { %v1999_v35 = vcombine.low %v1590_v16, %v1592_v21  ;;  %v1424_v31 = vsel %vm1422_vm10, %v1393_v27, %v928_v30  ;;  %v1116_v32 = vpop.permute.xlu1 %1115  ;;  %v2006_v22 = vrot.slane %v1998_v29, %v6068_v3 }
  0xde   : > { %v1455_v39 = vsel %vm1453_vm11, %v1424_v31, %v1021_v18  ;;  %846 = vrot.lane.b32.xlu0 %v5966_v23, %s5568_s17 }
  0xdf   : > { %v2013_v40 = vrot.slane %v1999_v35, %v6068_v3  ;;  %941 = vrot.lane.b32.xlu1 %v5969_v24, %s5570_s19  ;;  %v1486_v42 = vsel %vm8797_vm12, %v1455_v39, %v1116_v32 }
  0xe0   : > { %v508_v41 = vpop.permute.xlu0 %507 }
  0xe1   : > { %v1211_v43 = vpop.permute.xlu1 %1210  ;;  %v2014_v46 = vcombine.low %v2006_v22, %v2013_v40  ;;  %v1302_v21 = vsel %vm1298_vm6, %v5792_v33, %v508_v41  ;;  %v6161_v22 = vld [vmem:[%s5789_s14 + $0x88] sm:$0xf] }
  0xe2   : > { %v1517_v47 = vsel %vm8802_vm13, %v1486_v42, %v1211_v43  ;;  %521 = vrot.lane.b32.xlu0 %v5976_v25, %s5567_s16  ;;  %v6170_v42 = vrot.slane %v6161_v22, 1 }
  0xe3   : > { %v1593_v48 = vcombine.high %v1517_v47, %v1517_v47  ;;  %v1600_v50 = vrot.slane %v1517_v47, %v6068_v3  ;;  %662 = vrot.lane.b32.xlu1 %v5980_v26, %s5569_s18  ;;  %5328 = vmatmul.mubr.msk.f32.vlgmr.msra.gmra.mxu0 %vm8803_vm14, %v2014_v46  ;;  %v6112_v26 = vld [vmem:[%s5789_s14 + $0x80] sm:$0xff] }
  0xe4   : > { %v649_v34 = vpop.permute.xlu0 %648  ;;  %5330 = vmatprep.mubr.msk.f32.mxu0 %vm8804_vm5, %v5572_v63  ;;  %v477_v8 = vrot.slane %v6112_v26, 1  ;;  %v618_v11 = vrot.slane %v6112_v26, 2 }
  0xe5   : > { %v1607_v54 = vrot.slane %v1593_v48, %v6068_v3  ;;  %v1608_v56 = vcombine.high %v1600_v50, %v1600_v50  ;;  %v742_v57 = vpop.permute.xlu1 %741  ;;  %v1333_v29 = vsel %vm8807_vm7, %v1302_v21, %v649_v34  ;;  %v6175_v48 = vrot.slane %v6161_v22, 2 }
  0xe6   : > { %943 = vrot.lane.b32.xlu0 %v6017_v37, %s5570_s19  ;;  %v6128_v16 = vsel %vm8799_vm2, %v476_v7, %v477_v8  ;;  %v6131_v18 = vsel %vm8798_vm3, %v617_v10, %v618_v11  ;;  %v1364_v35 = vsel %vm8806_vm8, %v1333_v29, %v742_v57  ;;  %v6226_v29 = vld [vmem:[%s5789_s14 + $0x90] sm:$0xff] }
  0xe7   : > { %v1609_v25 = vcombine.high %v1607_v54, %v1607_v54  ;;  %v2015_v59 = vcombine.low %v1600_v50, %v1608_v56  ;;  %1036 = vrot.lane.b32.xlu1 %v399_v53, %s5571_s26  ;;  %v6192_v57 = vsel %vm8798_vm3, %v618_v11, %v6175_v48 }
  0xe8   : > { %v506_v61 = vpop.permute.xlu0 %505 }
  0xe9   : > { %v2016_v1 = vcombine.low %v1607_v54, %v1609_v25  ;;  %v837_v2 = vpop.permute.xlu1 %836  ;;  %v2023_v5 = vrot.slane %v2015_v59, %v6068_v3  ;;  %v1301_v41 = vsel %vm1298_vm6, %v5814_v45, %v506_v61 }
  0xea   : > { %1034 = vrot.lane.b32.xlu0 %v6034_v44, %s5571_s26  ;;  %v1395_v31 = vsel %vm1391_vm9, %v1364_v35, %v837_v2 }
  0xeb   : > { %v2030_v6 = vrot.slane %v2016_v1, %v6068_v3  ;;  %1129 = vrot.lane.b32.xlu1 %v6042_v49, %s5573_s6 }
  0xec   : > { %v647_v9 = vpop.permute.xlu0 %646 }
  0xed   : > { %v740_v12 = vpop.permute.xlu1 %739  ;;  %v2031_v13 = vcombine.low %v2023_v5, %v2030_v6  ;;  %v1332_v43 = vsel %vm8807_vm7, %v1301_v41, %v647_v9 }
  0xee   : > { %755 = vrot.lane.b32.xlu0 %v5999_v28, %s5566_s15 }
  0xef   : > { %850 = vrot.lane.b32.xlu1 %v6054_v58, %s5568_s17  ;;  %5331 = vmatmul.mubr.msk.f32.gmra.mxu0 %vm8803_vm14, %v2031_v13 }
  0xf0   : > { %v510_v17 = vpop.permute.xlu0 %509  ;;  %5333 = vmatprep.mubr.msk.f32.mxu0 %vm8804_vm5, %v5572_v63 }
  0xf1   : > { %v6135_v19 = vpop.permute.xlu1 %650 }
  0xf2   : > { %1131 = vrot.lane.b32.xlu0 %v6128_v16, %s5573_s6 }
  0xf3   : > { %1226 = vrot.lane.b32.xlu1 %v6131_v18, %s5574_s11 }
  0xf4   : > { %v932_v28 = vpop.permute.xlu0 %931 }
  0xf5   : > { %v1025_v20 = vpop.permute.xlu1 %1024  ;;  %v1426_v33 = vsel %vm1422_vm10, %v1395_v31, %v932_v28  ;;  %v6239_v31 = vld [vmem:[%s5789_s14 + $0x98] sm:$0xff] }
  0xf6   : > { %1224 = vrot.lane.b32.xlu0 %v6045_v55, %s5574_s11  ;;  %v482_v41 = vrot.slane %v6239_v31, 1 }
  0xf7   : > { %525 = vrot.lane.b32.xlu1 %v6014_v36, %s5567_s16  ;;  %v1457_v36 = vsel %vm1453_vm11, %v1426_v33, %v1025_v20 }
  0xf8   : > { %v835_v27 = vpop.permute.xlu0 %834 }
  0xf9   : > { %v930_v30 = vpop.permute.xlu1 %929 }
  0xfa   : > { %523 = vrot.lane.b32.xlu0 %v5966_v23, %s5567_s16 }
  0xfb   : > { %664 = vrot.lane.b32.xlu1 %v5969_v24, %s5569_s18 }
  0xfc   : > { %v744_v32 = vpop.permute.xlu0 %743 }
  0xfd   : > { %v839_v39 = vpop.permute.xlu1 %838 }
  0xfe   : > { %945 = vrot.lane.b32.xlu0 %v6060_v0, %s5570_s19 }
  0xff   : > { %1038 = vrot.lane.b32.xlu1 %v6112_v26, %s5571_s26 }
 0x100   : > { %v1120_v23 = vpop.permute.xlu0 %1119 }
 0x101   : > { %v1488_v40 = vsel %vm8797_vm12, %v1457_v36, %v1120_v23  ;;  %v1215_v24 = vpop.permute.xlu1 %1214  ;;  %v481_v36 = vrot.slane %v6226_v29, 1 }
 0x102   : > { %666 = vrot.lane.b32.xlu0 %v6017_v37, %s5569_s18  ;;  %v1519_v46 = vsel %vm8802_vm13, %v1488_v40, %v1215_v24  ;;  %v1363_v37 = vsel %vm8806_vm8, %v1332_v43, %v740_v12 }
 0x103   : > { %759 = vrot.lane.b32.xlu1 %v399_v53, %s5566_s15  ;;  %v1617_v45 = vcombine.high %v1519_v46, %v1519_v46  ;;  %v1624_v34 = vrot.slane %v1519_v46, %v6068_v3  ;;  %v6185_v53 = vsel %vm8799_vm2, %v477_v8, %v6170_v42  ;;  %v1394_v54 = vsel %vm1391_vm9, %v1363_v37, %v835_v27 }
 0x104   : > { %v1023_v47 = vpop.permute.xlu0 %1022  ;;  %v1425_v25 = vsel %vm1422_vm10, %v1394_v54, %v930_v30  ;;  %v1303_v8 = vsel %vm1298_vm6, %v5805_v38, %v510_v17  ;;  %v622_v46 = vrot.slane %v6226_v29, 2 }
 0x105   : > { %v934_v50 = vpop.permute.xlu1 %933  ;;  %v1631_v59 = vrot.slane %v1617_v45, %v6068_v3  ;;  %v1632_v61 = vcombine.high %v1624_v34, %v1624_v34  ;;  %v1456_v1 = vsel %vm1453_vm11, %v1425_v25, %v1023_v47  ;;  %v1334_v28 = vsel %vm8807_vm7, %v1303_v8, %v6135_v19 }
 0x106   : > { %757 = vrot.lane.b32.xlu0 %v6034_v44, %s5566_s15  ;;  %v1365_v20 = vsel %vm8806_vm8, %v1334_v28, %v744_v32  ;;  %v623_v47 = vrot.slane %v6239_v31, 2  ;;  %v6265_v25 = vsel %vm8799_vm2, %v481_v36, %v482_v41 }
 0x107   : > { %852 = vrot.lane.b32.xlu1 %v6042_v49, %s5568_s17  ;;  %v2033_v9 = vcombine.low %v1632_v61, %v1631_v59  ;;  %v1396_v30 = vsel %vm1391_vm9, %v1365_v20, %v839_v39  ;;  %v1633_v23 = vcombine.high %v1631_v59, %v1631_v59  ;;  %v3860_v20 = vld [vmem:[%s8794_s3 + $0x70] sm:$0xff] }
 0x108   : > { %v6188_v56 = vpop.permute.xlu0 %513  ;;  %v6270_v61 = vsel %vm8798_vm3, %v622_v46, %v623_v47 }
 0x109   : > { %v6194_v44 = vpop.permute.xlu1 %654  ;;  %v2047_v38 = vrot.slane %v2033_v9, %v6068_v3  ;;  %v3877_v9 = vld [vmem:[%s8794_s3 + $0xf8] sm:$0xff]  ;;  %v1305_v28 = vsel %vm1298_vm6, %v5829_v51, %v6188_v56  ;;  %v3875_v51 = vld [vmem:[%s8794_s3 + $0xe8] sm:$0xff] }
 0x10a   : > { %1133 = vrot.lane.b32.xlu0 %v6185_v53, %s5573_s6  ;;  %4965 = vmatprep.subr.mxu1 %v3877_v9 }
 0x10b   : > { %1228 = vrot.lane.b32.xlu1 %v6192_v57, %s5574_s11 }
 0x10c   : > { %v1118_v2 = vpop.permute.xlu0 %1117 }
 0x10d   : > { %v1487_v5 = vsel %vm8797_vm12, %v1456_v1, %v1118_v2  ;;  %v1213_v6 = vpop.permute.xlu1 %1212 }
 0x10e   : > { %v1518_v7 = vsel %vm8802_vm13, %v1487_v5, %v1213_v6  ;;  %854 = vrot.lane.b32.xlu0 %v6128_v16, %s5568_s17 }
 0x10f   : > { %v1616_v10 = vrot.slane %v1518_v7, %v6068_v3  ;;  %947 = vrot.lane.b32.xlu1 %v6045_v55, %s5570_s19 }
 0x110   : > { %v1027_v11 = vpop.permute.xlu0 %1026 }
 0x111   : > { %v2032_v12 = vcombine.low %v1616_v10, %v1624_v34  ;;  %v6212_v13 = vpop.permute.xlu1 %747 }
 0x112   : > { %527 = vrot.lane.b32.xlu0 %v6054_v58, %s5567_s16  ;;  %v1427_v58 = vsel %vm1422_vm10, %v1396_v30, %v934_v50  ;;  %v3859_v30 = vld [vmem:[%s8794_s3 + $0x68] sm:$0xff] }
 0x113   : > { %v2040_v17 = vrot.slane %v2032_v12, %v6068_v3  ;;  %668 = vrot.lane.b32.xlu1 %v6060_v0, %s5569_s18  ;;  %v1458_v0 = vsel %vm1453_vm11, %v1427_v58, %v1027_v11  ;;  %v3861_v11 = vld [vmem:[%s8794_s3 + $0x78] sm:$0xff]  ;;  %v3876_v12 = vld [vmem:[%s8794_s3 + $0xf0] sm:$0xff]  ;;  %v1336_v58 = vsel %vm8807_vm7, %v1305_v28, %v6194_v44 }
 0x114   : > { %v6223_v21 = vpop.permute.xlu0 %511  ;;  %4966 = vmatpush3.msra.mxu1 %v3861_v11  ;;  %v3853_v11 = vld [vmem:[%s8794_s3 + $0x38] sm:$0xff] }
 0x115   : > { %v6228_v27 = vpop.permute.xlu1 %652  ;;  %v2048_v19 = vcombine.low %v2040_v17, %v2047_v38  ;;  %4967 = vmatprep.subr.mxu1 %v3876_v12  ;;  %v1304_v36 = vsel %vm1298_vm6, %v5853_v62, %v6223_v21  ;;  %v3856_v62 = vld [vmem:[%s8794_s3 + $0x50] sm:$0xff] }
 0x116   : > { %949 = vrot.lane.b32.xlu0 %v6131_v18, %s5570_s19  ;;  %4968 = vmatpush3.msra.mxu1 %v3860_v20  ;;  %v1335_v21 = vsel %vm8807_vm7, %v1304_v36, %v6228_v27  ;;  %v3868_v12 = vld [vmem:[%s8794_s3 + $0xb0] sm:$0xff]  ;;  %v3865_v36 = vld [vmem:[%s8794_s3 + $0x98] sm:$0xff] }
 0x117   : > { %1042 = vrot.lane.b32.xlu1 %v6226_v29, %s5571_s26  ;;  %5334 = vmatmul.mubr.msk.f32.gmra.mxu0 %vm8803_vm14, %v2048_v19  ;;  %v3852_v20 = vld [vmem:[%s8794_s3 + $0x30] sm:$0xff] }
 0x118   : > { %v1122_v35 = vpop.permute.xlu0 %1121  ;;  %5336 = vmatprep.mubr.msk.f32.mxu0 %vm8804_vm5, %v5572_v63  ;;  %4969 = vmatprep.subr.mxu1 %v3875_v51 }
 0x119   : > { %v1489_v32 = vsel %vm8797_vm12, %v1458_v0, %v1122_v35  ;;  %v1217_v33 = vpop.permute.xlu1 %1216  ;;  %v3874_v0 = vld [vmem:[%s8794_s3 + $0xe0] sm:$0xff]  ;;  %v1367_v35 = vsel %vm8806_vm8, %v1336_v58, %v6212_v13  ;;  %4970 = vmatpush3.msra.mxu1 %v3859_v30  ;;  %v3873_v13 = vld [vmem:[%s8794_s3 + $0xd8] sm:$0xff]  ;;  %v3851_v30 = vld [vmem:[%s8794_s3 + $0x28] sm:$0xff] }
 0x11a   : > { %v1520_v39 = vsel %vm8802_vm13, %v1489_v32, %v1217_v33  ;;  %1040 = vrot.lane.b32.xlu0 %v6161_v22, %s5571_s26  ;;  %v3858_v32 = vld [vmem:[%s8794_s3 + $0x60] sm:$0xff]  ;;  %4971 = vmatprep.subr.mxu1 %v3874_v0 }
 0x11b   : > { %v1634_v40 = vcombine.high %v1520_v39, %v1520_v39  ;;  %v1641_v24 = vrot.slane %v1520_v39, %v6068_v3  ;;  %1135 = vrot.lane.b32.xlu1 %v6170_v42, %s5573_s6  ;;  %4972 = vmatpush3.msra.mxu1 %v3858_v32 }
 0x11c   : > { %v843_v43 = vpop.permute.xlu0 %842  ;;  %4973 = vmatprep.subr.mxu1 %v3873_v13 }
 0x11d   : > { %v6255_v50 = vrot.slane %v1634_v40, %v6068_v3  ;;  %v1649_v37 = vcombine.high %v1641_v24, %v1641_v24  ;;  %v2049_v45 = vcombine.low %v1633_v23, %v1641_v24  ;;  %v6257_v34 = vpop.permute.xlu1 %745  ;;  %v1398_v44 = vsel %vm1391_vm9, %v1367_v35, %v843_v43  ;;  %v3857_v24 = vld [vmem:[%s8794_s3 + $0x58] sm:$0xff]  ;;  %v3866_v35 = vld [vmem:[%s8794_s3 + $0xa0] sm:$0xff] }
 0x11e   : > { %761 = vrot.lane.b32.xlu0 %v6112_v26, %s5566_s15  ;;  %v6277_v26 = vld [vmem:[%s5789_s14 + $0xa0] sm:$0xf]  ;;  %4974 = vmatpush3.msra.mxu1 %v3857_v24 }
 0x11f   : > { %v2050_v54 = vcombine.low %v1649_v37, %v6255_v50  ;;  %856 = vrot.lane.b32.xlu1 %v6185_v53, %s5568_s17  ;;  %v2057_v1 = vrot.slane %v2049_v45, %v6068_v3  ;;  %v6284_v8 = vrot.slane %v6277_v26, 1  ;;  %v6313_v19 = vrot.slane %v6277_v26, 2 }
 0x120   : > { %v6267_v59 = vpop.permute.xlu0 %515  ;;  %v1650_v0 = vcombine.high %v6255_v50, %v6255_v50 }
 0x121   : > { %v2064_v2 = vrot.slane %v2050_v54, %v6068_v3  ;;  %v6274_v5 = vpop.permute.xlu1 %656  ;;  %v6310_v17 = vsel %vm8799_vm2, %v482_v41, %v6284_v8  ;;  %v6340_v39 = vsel %vm8798_vm3, %v623_v47, %v6313_v19  ;;  %v3872_v41 = vld [vmem:[%s8794_s3 + $0xd0] sm:$0xff]  ;;  %v1366_v47 = vsel %vm8806_vm8, %v1335_v21, %v6257_v34  ;;  %v3855_v54 = vld [vmem:[%s8794_s3 + $0x48] sm:$0xff]  ;;  %v3870_v34 = vld [vmem:[%s8794_s3 + $0xc0] sm:$0xff] }
 0x122   : > { %1137 = vrot.lane.b32.xlu0 %v6265_v25, %s5573_s6  ;;  %4975 = vmatprep.subr.mxu1 %v3872_v41  ;;  %v1306_v32 = vsel %vm1298_vm6, %v5832_v52, %v6267_v59  ;;  %v3864_v41 = vld [vmem:[%s8794_s3 + $0x90] sm:$0xff] }
 0x123   : > { %1232 = vrot.lane.b32.xlu1 %v6270_v61, %s5574_s11  ;;  %v2065_v6 = vcombine.low %v2057_v1, %v2064_v2  ;;  %4976 = vmatpush3.msra.mxu1 %v3856_v62  ;;  %v1337_v24 = vsel %vm8807_vm7, %v1306_v32, %v6274_v5 }
 0x124   : > { %v938_v7 = vpop.permute.xlu0 %937 }
 0x125   : > { %v1031_v10 = vpop.permute.xlu1 %1030  ;;  %5337 = vmatmul.mubr.msk.f32.gmra.mxu0 %vm8803_vm14, %v2065_v6  ;;  %v1429_v23 = vsel %vm1422_vm10, %v1398_v44, %v938_v7  ;;  %v3854_v6 = vld [vmem:[%s8794_s3 + $0x40] sm:$0xff] }
 0x126   : > { %1230 = vrot.lane.b32.xlu0 %v6175_v48, %s5574_s11  ;;  %5339 = vmatprep.mubr.msk.f32.mxu0 %vm8804_vm5, %v5572_v63  ;;  %v1460_v43 = vsel %vm1453_vm11, %v1429_v23, %v1031_v10 }
 0x127   : > { %1044 = vrot.lane.b32.xlu1 %v6239_v31, %s5571_s26 }
 0x128   : > { %v841_v38 = vpop.permute.xlu0 %840 }
 0x129   : > { %v936_v56 = vpop.permute.xlu1 %935  ;;  %v1397_v27 = vsel %vm1391_vm9, %v1366_v47, %v841_v38 }
 0x12a   : > { %951 = vrot.lane.b32.xlu0 %v6192_v57, %s5570_s19  ;;  %v1428_v9 = vsel %vm1422_vm10, %v1397_v27, %v936_v56 }
 0x12b   : > { %1139 = vrot.lane.b32.xlu1 %v6310_v17, %s5573_s6 }
 0x12c   : > { %v6336_v33 = vpop.permute.xlu0 %749 }
 0x12d   : > { %v6349_v40 = vpop.permute.xlu1 %844  ;;  %v1368_v62 = vsel %vm8806_vm8, %v1337_v24, %v6336_v33  ;;  %v3863_v33 = vld [vmem:[%s8794_s3 + $0x88] sm:$0xff] }
 0x12e   : > { %531 = vrot.lane.b32.xlu0 %v6128_v16, %s5567_s16  ;;  %v3871_v16 = vld [vmem:[%s8794_s3 + $0xc8] sm:$0xff] }
 0x12f   : > { %1234 = vrot.lane.b32.xlu1 %v6340_v39, %s5574_s11  ;;  %4977 = vmatprep.subr.mxu1 %v3871_v16 }
 0x130   : > { %v1126_v46 = vpop.permute.xlu0 %1125  ;;  %4978 = vmatpush3.msra.mxu1 %v3855_v54  ;;  %v3862_v54 = vld [vmem:[%s8794_s3 + $0x80] sm:$0xff] }
 0x131   : > { %v1491_v37 = vsel %vm8797_vm12, %v1460_v43, %v1126_v46  ;;  %v1221_v45 = vpop.permute.xlu1 %1220  ;;  %4979 = vmatprep.subr.mxu1 %v3870_v34  ;;  %v6463_v46 = vld [vmem:[%s5789_s14 + $0xa8] sm:$0xff] }
 0x132   : > { %v6378_v1 = vsel %vm8802_vm13, %v1491_v37, %v1221_v45  ;;  %672 = vrot.lane.b32.xlu0 %v6131_v18, %s5569_s18  ;;  %v3869_v18 = vld [vmem:[%s8794_s3 + $0xb8] sm:$0xff]  ;;  %4980 = vmatpush3.msra.mxu1 %v3854_v6  ;;  %v3847_v37 = vld [vmem:[%s8794_s3 + $0x8] sm:$0xff]  ;;  %v1399_v45 = vsel %vm1391_vm9, %v1368_v62, %v6349_v40 }
 0x133   : > { %v1665_v2 = vrot.slane %v6378_v1, %v6068_v3  ;;  %765 = vrot.lane.b32.xlu1 %v6226_v29, %s5566_s15  ;;  %4981 = vmatprep.subr.mxu1 %v3869_v18  ;;  %v1658_v52 = vcombine.high %v6378_v1, %v6378_v1  ;;  %v3846_v1 = vld [vmem:[%s8794_s3] sm:$0xff] }
 0x134   : > { %v1029_v7 = vpop.permute.xlu0 %1028  ;;  %4982 = vmatpush3.msra.mxu1 %v3853_v11  ;;  %v486_v11 = vrot.slane %v6463_v46, 1 }
 0x135   : > { %v1124_v10 = vpop.permute.xlu1 %1123  ;;  %v1459_v29 = vsel %vm1453_vm11, %v1428_v9, %v1029_v7  ;;  %v1673_v28 = vcombine.high %v1665_v2, %v1665_v2  ;;  %4983 = vmatprep.subr.mxu1 %v3868_v12  ;;  %v1672_v16 = vrot.slane %v1658_v52, %v6068_v3 }
 0x136   : > { %529 = vrot.lane.b32.xlu0 %v6042_v49, %s5567_s16  ;;  %v3867_v49 = vld [vmem:[%s8794_s3 + $0xa8] sm:$0xff]  ;;  %v1490_v51 = vsel %vm8797_vm12, %v1459_v29, %v1124_v10  ;;  %4984 = vmatpush3.msra.mxu1 %v3852_v20 }
 0x137   : > { %860 = vrot.lane.b32.xlu1 %v6265_v25, %s5568_s17  ;;  %4985 = vmatprep.subr.mxu1 %v3867_v49  ;;  %v2067_v44 = vcombine.low %v1665_v2, %v1673_v28  ;;  %v6490_v2 = vld [vmem:[%s5789_s14 + $0xb0] sm:$0xff]  ;;  %v1674_v6 = vcombine.high %v1672_v16, %v1672_v16  ;;  %v627_v28 = vrot.slane %v6463_v46, 2 }
 0x138   : > { %v940_v38 = vpop.permute.xlu0 %939  ;;  %4986 = vmatpush3.msra.mxu1 %v3851_v30  ;;  %v487_v29 = vrot.slane %v6490_v2, 1  ;;  %v628_v20 = vrot.slane %v6490_v2, 2 }
 0x139   : > { %v1219_v56 = vpop.permute.xlu1 %1218  ;;  %4987 = vmatprep.subr.mxu1 %v3866_v35  ;;  %v2081_v21 = vrot.slane %v2067_v44, %v6068_v3  ;;  %v1430_v27 = vsel %vm1422_vm10, %v1399_v45, %v940_v38  ;;  %v2083_v38 = vcombine.low %v1672_v16, %v1674_v6 }
 0x13a   : > { %v1521_v58 = vsel %vm8802_vm13, %v1490_v51, %v1219_v56  ;;  %670 = vrot.lane.b32.xlu0 %v6045_v55, %s5569_s18  ;;  %v3850_v55 = vld [vmem:[%s8794_s3 + $0x20] sm:$0xff]  ;;  %v6510_v30 = vsel %vm8799_vm2, %v486_v11, %v487_v29 }
 0x13b   : > { %v1657_v13 = vrot.slane %v1521_v58, %v6068_v3  ;;  %763 = vrot.lane.b32.xlu1 %v6161_v22, %s5566_s15  ;;  %4988 = vmatpush3.msra.mxu1 %v3850_v55  ;;  %v3849_v22 = vld [vmem:[%s8794_s3 + $0x18] sm:$0xff]  ;;  %v2091_v35 = vrot.slane %v2083_v38, %v6068_v3 }
 0x13c   : > { %v1033_v50 = vpop.permute.xlu0 %1032  ;;  %4989 = vmatprep.subr.mxu1 %v3865_v36 }
 0x13d   : > { %v2066_v59 = vcombine.low %v1650_v0, %v1657_v13  ;;  %v6439_v23 = vpop.permute.xlu1 %519  ;;  %4990 = vmatpush3.msra.mxu1 %v3849_v22  ;;  %v1461_v40 = vsel %vm1453_vm11, %v1430_v27, %v1033_v50  ;;  %v6513_v0 = vsel %vm8798_vm3, %v627_v28, %v628_v20 }
 0x13e   : > { %533 = vrot.lane.b32.xlu0 %v6185_v53, %s5567_s16  ;;  %v3848_v53 = vld [vmem:[%s8794_s3 + $0x10] sm:$0xff]  ;;  %4991 = vmatprep.subr.mxu1 %v3864_v41  ;;  %v1308_v22 = vsel %vm1298_vm6, %v5923_v14, %v6439_v23 }
 0x13f   : > { %v2074_v43 = vrot.slane %v2066_v59, %v6068_v3  ;;  %674 = vrot.lane.b32.xlu1 %v6192_v57, %s5569_s18  ;;  %4992 = vmatpush3.msra.mxu1 %v3848_v53 }
 0x140   : > { %v6460_v5 = vpop.permute.xlu0 %517  ;;  %4993 = vmatprep.subr.mxu1 %v3863_v33 }
 0x141   : > { %v6469_v47 = vpop.permute.xlu1 %658  ;;  %v2082_v57 = vcombine.low %v2074_v43, %v2081_v21  ;;  %4994 = vmatpush3.msra.mxu1 %v3847_v37  ;;  %v1307_v24 = vsel %vm1298_vm6, %v5871_v4, %v6460_v5 }
 0x142   : > { %955 = vrot.lane.b32.xlu0 %v6270_v61, %s5570_s19  ;;  %4995 = vmatprep.subr.mxu1 %v3862_v54  ;;  %v1338_v14 = vsel %vm8807_vm7, %v1307_v24, %v6469_v47 }
 0x143   : > { %1048 = vrot.lane.b32.xlu1 %v6463_v46, %s5571_s26  ;;  %5340 = vmatmul.mubr.msk.f32.gmra.mxu0 %vm8803_vm14, %v2082_v57 }
 0x144   : > { %v1128_v34 = vpop.permute.xlu0 %1127  ;;  %5342 = vmatprep.mubr.msk.f32.mxu0 %vm8804_vm5, %v5572_v63  ;;  %4996 = vmatpush3.msra.mxu1 %v3846_v1 }
 0x145   : > { %v1492_v7 = vsel %vm8797_vm12, %v1461_v40, %v1128_v34  ;;  %v1223_v18 = vpop.permute.xlu1 %1222 }
 0x146   : > { %v1523_v9 = vsel %vm8802_vm13, %v1492_v7, %v1223_v18  ;;  %858 = vrot.lane.b32.xlu0 %v6170_v42, %s5568_s17 }
 0x147   : > { %v1682_v10 = vrot.slane %v1523_v9, %v6068_v3  ;;  %953 = vrot.lane.b32.xlu1 %v6175_v48, %s5570_s19  ;;  %v1675_v21 = vcombine.high %v1523_v9, %v1523_v9 }
 0x148   : > { %v661_v12 = vpop.permute.xlu0 %660 }
 0x149   : > { %v1690_v49 = vcombine.high %v1682_v10, %v1682_v10  ;;  %v754_v51 = vpop.permute.xlu1 %753  ;;  %v1689_v37 = vrot.slane %v1675_v21, %v6068_v3 }
 0x14a   : > { %767 = vrot.lane.b32.xlu0 %v6239_v31, %s5566_s15 }
 0x14b   : > { %v2084_v56 = vcombine.low %v1682_v10, %v1690_v49  ;;  %862 = vrot.lane.b32.xlu1 %v6310_v17, %s5568_s17  ;;  %v1691_v6 = vcombine.high %v1689_v37, %v1689_v37 }
 0x14c   : > { %v752_v58 = vpop.permute.xlu0 %751 }
 0x14d   : > { %v2098_v32 = vrot.slane %v2084_v56, %v6068_v3  ;;  %v849_v44 = vpop.permute.xlu1 %848  ;;  %v1369_v43 = vsel %vm8806_vm8, %v1338_v14, %v752_v58  ;;  %v2100_v11 = vcombine.low %v1689_v37, %v1691_v6 }
 0x14e   : > { %1143 = vrot.lane.b32.xlu0 %v6510_v30, %s5573_s6 }
 0x14f   : > { %1238 = vrot.lane.b32.xlu1 %v6513_v0, %s5574_s11  ;;  %v2099_v31 = vcombine.low %v2091_v35, %v2098_v32  ;;  %v2108_v49 = vrot.slane %v2100_v11, %v6068_v3  ;;  %v6608_v35 = vld [vmem:[%s5789_s14 + $0xc0] sm:$0xff] }
 0x150   : > { %v847_v13 = vpop.permute.xlu0 %846 }
 0x151   : > { %v942_v55 = vpop.permute.xlu1 %941  ;;  %5343 = vmatmul.mubr.msk.f32.gmra.mxu0 %vm8803_vm14, %v2099_v31  ;;  %v1400_v16 = vsel %vm1391_vm9, %v1369_v43, %v847_v13 }
 0x152   : > { %1046 = vrot.lane.b32.xlu0 %v6277_v26, %s5571_s26  ;;  %5345 = vmatprep.mubr.msk.f32.mxu0 %vm8804_vm5, %v5572_v63  ;;  %v1431_v45 = vsel %vm1422_vm10, %v1400_v16, %v942_v55  ;;  %v491_v55 = vrot.slane %v6608_v35, 1 }
 0x153   : > { %957 = vrot.lane.b32.xlu1 %v6340_v39, %s5570_s19 }
 0x154   : > { %v522_v50 = vpop.permute.xlu0 %521 }
 0x155   : > { %v6528_v36 = vpop.permute.xlu1 %662 }
 0x156   : > { %537 = vrot.lane.b32.xlu0 %v6265_v25, %s5567_s16  ;;  %v1339_v25 = vsel %vm8807_vm7, %v1308_v22, %v661_v12 }
 0x157   : > { %678 = vrot.lane.b32.xlu1 %v6270_v61, %s5569_s18  ;;  %v6546_v61 = vld [vmem:[%s5789_s14 + $0xb8] sm:$0xf]  ;;  %v1370_v23 = vsel %vm8806_vm8, %v1339_v25, %v754_v51 }
 0x158   : > { %v944_v52 = vpop.permute.xlu0 %943  ;;  %v6556_v4 = vrot.slane %v6546_v61, 1  ;;  %v1401_v53 = vsel %vm1391_vm9, %v1370_v23, %v849_v44  ;;  %v6561_v33 = vrot.slane %v6546_v61, 2  ;;  %v6622_v44 = vld [vmem:[%s5789_s14 + $0xc8] sm:$0xff] }
 0x159   : > { %v1037_v59 = vpop.permute.xlu1 %1036  ;;  %v1432_v47 = vsel %vm1422_vm10, %v1401_v53, %v944_v52  ;;  %v633_v22 = vrot.slane %v6622_v44, 2 }
 0x15a   : > { %1141 = vrot.lane.b32.xlu0 %v6284_v8, %s5573_s6  ;;  %v1463_v54 = vsel %vm1453_vm11, %v1432_v47, %v1037_v59  ;;  %v6578_v1 = vsel %vm8798_vm3, %v628_v20, %v6561_v33  ;;  %v632_v59 = vrot.slane %v6608_v35, 2 }
 0x15b   : > { %1236 = vrot.lane.b32.xlu1 %v6313_v19, %s5574_s11 }
 0x15c   : > { %v1035_v41 = vpop.permute.xlu0 %1034  ;;  %v6645_v43 = vsel %vm8798_vm3, %v632_v59, %v633_v22 }
 0x15d   : > { %v1130_v62 = vpop.permute.xlu1 %1129  ;;  %v1462_v40 = vsel %vm1453_vm11, %v1431_v45, %v1035_v41 }
 0x15e   : > { %1050 = vrot.lane.b32.xlu0 %v6490_v2, %s5571_s26  ;;  %v1493_v7 = vsel %vm8797_vm12, %v1462_v40, %v1130_v62 }
 0x15f   : > { %771 = vrot.lane.b32.xlu1 %v6463_v46, %s5566_s15  ;;  %v6572_v46 = vsel %vm8799_vm2, %v487_v29, %v6556_v4 }
 0x160   : > { %v756_v5 = vpop.permute.xlu0 %755 }
 0x161   : > { %v851_v57 = vpop.permute.xlu1 %850 }
 0x162   : > { %535 = vrot.lane.b32.xlu0 %v6170_v42, %s5567_s16 }
 0x163   : > { %676 = vrot.lane.b32.xlu1 %v6175_v48, %s5569_s18 }
 0x164   : > { %v1132_v27 = vpop.permute.xlu0 %1131 }
 0x165   : > { %v1494_v42 = vsel %vm8797_vm12, %v1463_v54, %v1132_v27  ;;  %v1227_v34 = vpop.permute.xlu1 %1226 }
 0x166   : > { %1145 = vrot.lane.b32.xlu0 %v6572_v46, %s5573_s6  ;;  %v1525_v48 = vsel %vm8802_vm13, %v1494_v42, %v1227_v34 }
 0x167   : > { %1240 = vrot.lane.b32.xlu1 %v6578_v1, %s5574_s11  ;;  %v1706_v29 = vrot.slane %v1525_v48, %v6068_v3  ;;  %v1699_v13 = vcombine.high %v1525_v48, %v1525_v48 }
 0x168   : > { %v1225_v18 = vpop.permute.xlu0 %1224 }
 0x169   : > { %v1524_v9 = vsel %vm8802_vm13, %v1493_v7, %v1225_v18  ;;  %v6589_v10 = vpop.permute.xlu1 %525  ;;  %v1713_v41 = vrot.slane %v1699_v13, %v6068_v3  ;;  %v1714_v62 = vcombine.high %v1706_v29, %v1706_v29  ;;  %v6669_v7 = vld [vmem:[%s5789_s14 + $0xd0] sm:$0xf] }
 0x16a   : > { %v1698_v12 = vrot.slane %v1524_v9, %v6068_v3  ;;  %866 = vrot.lane.b32.xlu0 %v6510_v30, %s5568_s17  ;;  %v5504_v9 = vld [vmem:[%s5789_s14 + $0x60] sm:$0xff] }
 0x16b   : > { %769 = vrot.lane.b32.xlu1 %v6277_v26, %s5566_s15  ;;  %v1309_v26 = vsel %vm1298_vm6, %v5929_v15, %v522_v50  ;;  %v492_v50 = vrot.slane %v6622_v44, 1  ;;  %v2117_v16 = vcombine.low %v1714_v62, %v1713_v41  ;;  %v1715_v47 = vcombine.high %v1713_v41, %v1713_v41 }
 0x16c   : > { %v2101_v28 = vcombine.low %v1698_v12, %v1706_v29  ;;  %v6597_v20 = vpop.permute.xlu0 %523  ;;  %v1311_v11 = vsel %vm1298_vm6, %v5504_v9, %v6589_v10  ;;  %v6681_v29 = vrot.slane %v6669_v7, 1  ;;  %v5505_v12 = vld [vmem:[%s5789_s14 + $0x58] sm:$0xf] }
 0x16d   : > { %v6599_v38 = vpop.permute.xlu1 %664  ;;  %v6641_v21 = vsel %vm8799_vm2, %v491_v55, %v492_v50  ;;  %v2125_v27 = vrot.slane %v2117_v16, %v6068_v3 }
 0x16e   : > { %v2115_v51 = vrot.slane %v2101_v28, %v6068_v3  ;;  %539 = vrot.lane.b32.xlu0 %v6310_v17, %s5567_s16  ;;  %v1340_v17 = vsel %vm8807_vm7, %v1309_v26, %v6528_v36  ;;  %v1310_v28 = vsel %vm1298_vm6, %v5505_v12, %v6597_v20  ;;  %v6699_v20 = vsel %vm8799_vm2, %v492_v50, %v6681_v29  ;;  %v5506_v50 = vld [vmem:[%s5789_s14 + $0x68] sm:$0xff] }
 0x16f   : > { %680 = vrot.lane.b32.xlu1 %v6340_v39, %s5569_s18  ;;  %v1371_v15 = vsel %vm8806_vm8, %v1340_v17, %v756_v5 }
 0x170   : > { %v946_v56 = vpop.permute.xlu0 %945  ;;  %v2116_v58 = vcombine.low %v2108_v49, %v2115_v51  ;;  %v1402_v52 = vsel %vm1391_vm9, %v1371_v15, %v851_v57 }
 0x171   : > { %v1039_v32 = vpop.permute.xlu1 %1038  ;;  %v1433_v24 = vsel %vm1422_vm10, %v1402_v52, %v946_v56  ;;  %v6688_v56 = vrot.slane %v6669_v7, 2 }
 0x172   : > { %961 = vrot.lane.b32.xlu0 %v6513_v0, %s5570_s19  ;;  %5346 = vmatmul.mubr.msk.f32.gmra.mxu0 %vm8803_vm14, %v2116_v58  ;;  %v1464_v14 = vsel %vm1453_vm11, %v1433_v24, %v1039_v32 }
 0x173   : > { %1054 = vrot.lane.b32.xlu1 %v6608_v35, %s5571_s26  ;;  %5348 = vmatprep.mubr.msk.f32.mxu0 %vm8804_vm5, %v5572_v63 }
 0x174   : > { %v667_v39 = vpop.permute.xlu0 %666 }
 0x175   : > { %v760_v31 = vpop.permute.xlu1 %759  ;;  %v1342_v49 = vsel %vm8807_vm7, %v1311_v11, %v667_v39 }
 0x176   : > { %864 = vrot.lane.b32.xlu0 %v6284_v8, %s5568_s17  ;;  %v1373_v10 = vsel %vm8806_vm8, %v1342_v49, %v760_v31 }
 0x177   : > { %959 = vrot.lane.b32.xlu1 %v6313_v19, %s5570_s19 }
 0x178   : > { %v758_v36 = vpop.permute.xlu0 %757 }
 0x179   : > { %v853_v25 = vpop.permute.xlu1 %852 }
 0x17a   : > { %773 = vrot.lane.b32.xlu0 %v6490_v2, %s5566_s15 }
 0x17b   : > { %868 = vrot.lane.b32.xlu1 %v6572_v46, %s5568_s17 }
 0x17c   : > { %v1134_v23 = vpop.permute.xlu0 %1133 }
 0x17d   : > { %v1495_v53 = vsel %vm8797_vm12, %v1464_v14, %v1134_v23  ;;  %v1229_v5 = vpop.permute.xlu1 %1228 }
 0x17e   : > { %v1526_v2 = vsel %vm8802_vm13, %v1495_v53, %v1229_v5  ;;  %1149 = vrot.lane.b32.xlu0 %v6641_v21, %s5573_s6 }
 0x17f   : > { %v6652_v57 = vrot.slane %v1526_v2, %v6068_v3  ;;  %1244 = vrot.lane.b32.xlu1 %v6645_v43, %s5574_s11  ;;  %v1716_v15 = vcombine.high %v1526_v2, %v1526_v2 }
 0x180   : > { %v855_v37 = vpop.permute.xlu0 %854 }
 0x181   : > { %v2118_v45 = vcombine.low %v1715_v47, %v6652_v57  ;;  %v948_v54 = vpop.permute.xlu1 %947  ;;  %v1404_v32 = vsel %vm1391_vm9, %v1373_v10, %v855_v37  ;;  %v1730_v24 = vrot.slane %v1716_v15, %v6068_v3 }
 0x182   : > { %1052 = vrot.lane.b32.xlu0 %v6546_v61, %s5571_s26 }
 0x183   : > { %v2132_v40 = vrot.slane %v2118_v45, %v6068_v3  ;;  %1147 = vrot.lane.b32.xlu1 %v6556_v4, %s5573_s6  ;;  %v1732_v45 = vcombine.high %v1730_v24, %v1730_v24 }
 0x184   : > { %v528_v42 = vpop.permute.xlu0 %527 }
 0x185   : > { %v669_v34 = vpop.permute.xlu1 %668  ;;  %v2133_v6 = vcombine.low %v2125_v27, %v2132_v40  ;;  %v1312_v52 = vsel %vm1298_vm6, %v5506_v50, %v528_v42 }
 0x186   : > { %963 = vrot.lane.b32.xlu0 %v6578_v1, %s5570_s19  ;;  %v1343_v23 = vsel %vm8807_vm7, %v1312_v52, %v669_v34 }
 0x187   : > { %1242 = vrot.lane.b32.xlu1 %v6561_v33, %s5574_s11  ;;  %5349 = vmatmul.mubr.msk.f32.gmra.mxu0 %vm8803_vm14, %v2133_v6 }
 0x188   : > { %v950_v48 = vpop.permute.xlu0 %949  ;;  %5351 = vmatprep.mubr.msk.f32.mxu0 %vm8804_vm5, %v5572_v63 }
 0x189   : > { %v1043_v18 = vpop.permute.xlu1 %1042 }
 0x18a   : > { %1056 = vrot.lane.b32.xlu0 %v6622_v44, %s5571_s26 }
 0x18b   : > { %543 = vrot.lane.b32.xlu1 %v6510_v30, %s5567_s16  ;;  %v1341_v30 = vsel %vm8807_vm7, %v1310_v28, %v6599_v38  ;;  %v1435_v38 = vsel %vm1422_vm10, %v1404_v32, %v950_v48 }
 0x18c   : > { %v1041_v51 = vpop.permute.xlu0 %1040  ;;  %v1372_v26 = vsel %vm8806_vm8, %v1341_v30, %v758_v36  ;;  %v1466_v13 = vsel %vm1453_vm11, %v1435_v38, %v1043_v18  ;;  %v6754_v30 = vld [vmem:[%s8793_s2] ss:$0 sm:$0xff] }
 0x18d   : > { %v1136_v58 = vpop.permute.xlu1 %1135 }
 0x18e   : > { %541 = vrot.lane.b32.xlu0 %v6284_v8, %s5567_s16  ;;  %v6705_v8 = vsel %vm8798_vm3, %v633_v22, %v6688_v56 }
 0x18f   : > { %682 = vrot.lane.b32.xlu1 %v6313_v19, %s5569_s18  ;;  %v1403_v19 = vsel %vm1391_vm9, %v1372_v26, %v853_v25  ;;  %v1731_v25 = vcombine.high %v6652_v57, %v6652_v57 }
 0x190   : > { %v762_v17 = vpop.permute.xlu0 %761  ;;  %v1434_v31 = vsel %vm1422_vm10, %v1403_v19, %v948_v54 }
 0x191   : > { %v857_v39 = vpop.permute.xlu1 %856  ;;  %v1465_v36 = vsel %vm1453_vm11, %v1434_v31, %v1041_v51  ;;  %v1374_v2 = vsel %vm8806_vm8, %v1343_v23, %v762_v17  ;;  %v2134_v37 = vcombine.low %v1731_v25, %v1730_v24  ;;  %v6786_v24 = vld [vmem:[%s5789_s14 + $0xe0] sm:$0xff] }
 0x192   : > { %1151 = vrot.lane.b32.xlu0 %v6699_v20, %s5573_s6  ;;  %v1496_v53 = vsel %vm8797_vm12, %v1465_v36, %v1136_v58  ;;  %v1405_v27 = vsel %vm1391_vm9, %v1374_v2, %v857_v39  ;;  %v497_v2 = vrot.slane %v6786_v24, 1 }
 0x193   : > { %1246 = vrot.lane.b32.xlu1 %v6705_v8, %s5574_s11  ;;  %v2142_v18 = vrot.slane %v2134_v37, %v6068_v3 }
 0x194   : > { %v1138_v55 = vpop.permute.xlu0 %1137 }
 0x195   : > { %v1497_v59 = vsel %vm8797_vm12, %v1466_v13, %v1138_v55  ;;  %v1233_v22 = vpop.permute.xlu1 %1232 }
 0x196   : > { %v1528_v41 = vsel %vm8802_vm13, %v1497_v59, %v1233_v22  ;;  %684 = vrot.lane.b32.xlu0 %v6513_v0, %s5569_s18 }
 0x197   : > { %v1740_v62 = vcombine.high %v1528_v41, %v1528_v41  ;;  %v1747_v14 = vrot.slane %v1528_v41, %v6068_v3  ;;  %777 = vrot.lane.b32.xlu1 %v6608_v35, %s5566_s15 }
 0x198   : > { %v1231_v5 = vpop.permute.xlu0 %1230 }
 0x199   : > { %v1754_v16 = vrot.slane %v1740_v62, %v6068_v3  ;;  %v1527_v47 = vsel %vm8802_vm13, %v1496_v53, %v1231_v5  ;;  %v1045_v57 = vpop.permute.xlu1 %1044  ;;  %v1755_v0 = vcombine.high %v1747_v14, %v1747_v14 }
 0x19a   : > { %v1739_v54 = vrot.slane %v1527_v47, %v6068_v3  ;;  %775 = vrot.lane.b32.xlu0 %v6546_v61, %s5566_s15 }
 0x19b   : > { %v1756_v35 = vcombine.high %v1754_v16, %v1754_v16  ;;  %872 = vrot.lane.b32.xlu1 %v6641_v21, %s5568_s17  ;;  %v2151_v9 = vcombine.low %v1747_v14, %v1755_v0 }
 0x19c   : > { %v2135_v40 = vcombine.low %v1732_v45, %v1739_v54  ;;  %v952_v42 = vpop.permute.xlu0 %951 }
 0x19d   : > { %v2152_v34 = vcombine.low %v1754_v16, %v1756_v35  ;;  %v1436_v6 = vsel %vm1422_vm10, %v1405_v27, %v952_v42  ;;  %v1140_v48 = vpop.permute.xlu1 %1139  ;;  %v2159_v10 = vrot.slane %v2151_v9, %v6068_v3  ;;  %v6837_v9 = vstv %s3047_s10 }
 0x19e   : > { %v2149_v11 = vrot.slane %v2135_v40, %v6068_v3  ;;  %v1467_v12 = vsel %vm1453_vm11, %v1436_v6, %v1045_v57  ;;  %870 = vrot.lane.b32.xlu0 %v6556_v4, %s5568_s17  ;;  %v638_v57 = vrot.slane %v6786_v24, 2  ;;  %vm3060_vm0 = vcmp.ge.s32.totalorder %v6837_v9, 0 }
 0x19f   : > { %965 = vrot.lane.b32.xlu1 %v6561_v33, %s5570_s19  ;;  %v2166_v61 = vrot.slane %v2152_v34, %v6068_v3  ;;  %v1498_v51 = vsel %vm8797_vm12, %v1467_v12, %v1140_v48 }
 0x1a0   : > { %v6748_v28 = vpop.permute.xlu0 %531  ;;  %v2150_v49 = vcombine.low %v2142_v18, %v2149_v11  ;;  %v6835_v18 = vstv %s3044_s9 }
 0x1a1   : > { %v1235_v58 = vpop.permute.xlu1 %1234  ;;  %v2167_v19 = vcombine.low %v2159_v10, %v2166_v61  ;;  %vm3049_vm15 = vcmp.le.s32.totalorder %v6835_v18, 0 }
 0x1a2   : > { %v1529_v26 = vsel %vm8802_vm13, %v1498_v51, %v1235_v58  ;;  %545 = vrot.lane.b32.xlu0 %v6572_v46, %s5567_s16  ;;  %5352 = vmatmul.mubr.msk.f32.gmra.mxu0 %vm8803_vm14, %v2150_v49  ;;  %v6770_v46 = vld [vmem:[%s5789_s14 + $0xd8] sm:$0xff]  ;;  %v6845_v58 = vld [vmem:[%s5789_s14 + $0xe8] sm:$0xf]  ;;  %vm6862_vm1 = vmand %vm3049_vm15, %vm3060_vm0 }
 0x1a3   : > { %v1757_v32 = vcombine.high %v1529_v26, %v1529_v26  ;;  %v1764_v17 = vrot.slane %v1529_v26, %v6068_v3  ;;  %686 = vrot.lane.b32.xlu1 %v6578_v1, %s5569_s18  ;;  %v2497_v38 = vpop.f32.mrf.mxu0  ;;  %5354 = vmatprep.mubr.msk.f32.mxu0 %vm8804_vm5, %v5572_v63  ;;  %v496_v14 = vrot.slane %v6770_v46, 1  ;;  %v637_v47 = vrot.slane %v6770_v46, 2  ;;  %vm6875_vm15 = vmand %vm6862_vm1, %vm8801_vm4 }
 0x1a4   : > { %v2498_v39 = vadd.f32 %v6754_v30, %v2497_v38  ;;  %v6767_v15 = vpop.permute.xlu0 %672  ;;  %v5507_v38 = vld [vmem:[%s5789_s14 + $0x78] sm:$0xff] }
 0x1a5   : > { %v1771_v31 = vrot.slane %v1757_v32, %v6068_v3  ;;  %v1772_v13 = vcombine.high %v1764_v17, %v1764_v17  ;;  %v6773_v55 = vpop.permute.xlu1 %765  ;;  %v5329_v50 = vpop.f32.mrf.mxu0  ;;  %v6821_v27 = vsel %vm8799_vm2, %v496_v14, %v497_v2  ;;  %v6829_v34 = vsel %vm8798_vm3, %v637_v47, %v638_v57 }
 0x1a6   : > { %v2611_v1 = vmax.f32 %v2498_v39, 0.0  ;;  %967 = vrot.lane.b32.xlu0 %v6645_v43, %s5570_s19  ;;  %5355 = vmatmul.mubr.msk.f32.gmra.mxu0 %vm8803_vm14, %v2167_v19  ;;  %v1314_v39 = vsel %vm1298_vm6, %v5507_v38, %v6748_v28  ;;  %v6892_v47 = vrot.slane %v6845_v58, 2 }
 0x1a7   : > { %v1773_v52 = vcombine.high %v1771_v31, %v1771_v31  ;;  %v2168_v36 = vcombine.low %v1764_v17, %v1772_v13  ;;  %1060 = vrot.lane.b32.xlu1 %v6770_v46, %s5571_s26  ;;  %5357 = vmatprep.mubr.msk.f32.mxu0 %vm8804_vm5, %v5572_v63  ;;  %v1345_v50 = vsel %vm8807_vm7, %v1314_v39, %v6767_v15 }
 0x1a8   : > { %v2657_v59 = vcombine.high %v2611_v1, %v2611_v1  ;;  %v6783_v22 = vpop.permute.xlu0 %529  ;;  %v2664_v5 = vrot.slane %v2611_v1, %v6068_v3  ;;  %v1376_v15 = vsel %vm8806_vm8, %v1345_v50, %v6773_v55 }
 0x1a9   : > { %v2169_v25 = vcombine.low %v1771_v31, %v1773_v52  ;;  %v6789_v41 = vpop.permute.xlu1 %860  ;;  %v2176_v23 = vrot.slane %v2168_v36, %v6068_v3  ;;  %v6860_v31 = vrot.slane %v6845_v58, 1 }
 0x1aa   : > { %v2671_v62 = vrot.slane %v2657_v59, %v6068_v3  ;;  %1058 = vrot.lane.b32.xlu0 %v6669_v7, %s5571_s26  ;;  %v2672_v54 = vcombine.high %v2664_v5, %v2664_v5 }
 0x1ab   : > { %v2183_v53 = vrot.slane %v2169_v25, %v6068_v3  ;;  %1153 = vrot.lane.b32.xlu1 %v6681_v29, %s5573_s6  ;;  %v6885_v14 = vsel %vm8799_vm2, %v497_v2, %v6860_v31 }
 0x1ac   : > { %v6805_v16 = vpop.permute.xlu0 %670  ;;  %v2673_v37 = vcombine.high %v2671_v62, %v2671_v62  ;;  %v3206_v12 = vcombine.low %v2664_v5, %v2672_v54 }
 0x1ad   : > { %v6811_v0 = vpop.permute.xlu1 %763  ;;  %v2184_v45 = vcombine.low %v2176_v23, %v2183_v53 }
 0x1ae   : > { %779 = vrot.lane.b32.xlu0 %v6622_v44, %s5566_s15  ;;  %v3207_v44 = vcombine.low %v2671_v62, %v2673_v37  ;;  %v3214_v19 = vrot.slane %v3206_v12, %v6068_v3 }
 0x1af   : > { %874 = vrot.lane.b32.xlu1 %v6699_v20, %s5568_s17  ;;  %v2502_v35 = vpop.f32.mrf.mxu0  ;;  %5358 = vmatmul.mubr.msk.f32.gmra.mxu0 %vm8803_vm14, %v2184_v45 }
 0x1b0   : > { %v2503_v40 = vadd.f32 %v6754_v30, %v2502_v35  ;;  %v6824_v42 = vpop.permute.xlu0 %533  ;;  %5360 = vmatprep.mubr.msk.f32.mxu0 %vm8804_vm5, %v5572_v63  ;;  %v3221_v10 = vrot.slane %v3207_v44, %v6068_v3  ;;  %v6910_v35 = vsel %vm8798_vm3, %v638_v57, %v6892_v47 }
 0x1b1   : > { %v6833_v6 = vpop.permute.xlu1 %674  ;;  %v5332_v48 = vpop.f32.mrf.mxu0 }
 0x1b2   : > { %v2612_v11 = vmax.f32 %v2503_v40, 0.0  ;;  %1155 = vrot.lane.b32.xlu0 %v6821_v27, %s5573_s6  ;;  %v3222_v59 = vcombine.low %v3214_v19, %v3221_v10 }
 0x1b3   : > { %1250 = vrot.lane.b32.xlu1 %v6829_v34, %s5574_s11 }
 0x1b4   : > { %v2674_v61 = vcombine.high %v2612_v11, %v2612_v11  ;;  %v2681_v49 = vrot.slane %v2612_v11, %v6068_v3  ;;  %v956_v51 = vpop.permute.xlu0 %955  ;;  %v3646_v2 = vsel %vm6875_vm15, %v3222_v59, 0.0 }
 0x1b5   : > { %v1049_v26 = vpop.permute.xlu1 %1048  ;;  %v3756_v12 = vrot.slane %v3646_v2, 2 }
 0x1b6   : > { %v2688_v32 = vrot.slane %v2674_v61, %v6068_v3  ;;  %v2689_v17 = vcombine.high %v2681_v49, %v2681_v49  ;;  %1248 = vrot.lane.b32.xlu0 %v6688_v56, %s5574_s11 }
 0x1b7   : > { %969 = vrot.lane.b32.xlu1 %v6705_v8, %s5570_s19 }
 0x1b8   : > { %v2690_v1 = vcombine.high %v2688_v32, %v2688_v32  ;;  %v3223_v52 = vcombine.low %v2681_v49, %v2689_v17  ;;  %v859_v28 = vpop.permute.xlu0 %858  ;;  %v5508_v49 = vld [vmem:[%s5789_s14 + $0x70] sm:$0xf] }
 0x1b9   : > { %v954_v36 = vpop.permute.xlu1 %953  ;;  %v1313_v57 = vsel %vm1298_vm6, %v5508_v49, %v6783_v22  ;;  %v6985_v49 = vld [vmem:[%s5789_s14 + $0xf0] sm:$0xff] }
 0x1ba   : > { %v3224_v25 = vcombine.low %v2688_v32, %v2690_v1  ;;  %547 = vrot.lane.b32.xlu0 %v6556_v4, %s5567_s16  ;;  %v1407_v4 = vsel %vm1391_vm9, %v1376_v15, %v6789_v41  ;;  %v3231_v23 = vrot.slane %v3223_v52, %v6068_v3 }
 0x1bb   : > { %1062 = vrot.lane.b32.xlu1 %v6786_v24, %s5571_s26  ;;  %v1438_v55 = vsel %vm1422_vm10, %v1407_v4, %v956_v51  ;;  %v5509_v4 = vld [vmem:[%s5789_s14 + $0x80] sm:$0xff] }
 0x1bc   : > { %v3238_v53 = vrot.slane %v3224_v25, %v6068_v3  ;;  %v768_v5 = vpop.permute.xlu0 %767  ;;  %v1469_v45 = vsel %vm1453_vm11, %v1438_v55, %v1049_v26  ;;  %v1344_v26 = vsel %vm8807_vm7, %v1313_v57, %v6805_v16 }
 0x1bd   : > { %v6895_v37 = vpop.permute.xlu1 %862  ;;  %v1375_v17 = vsel %vm8806_vm8, %v1344_v26, %v6811_v0 }
 0x1be   : > { %688 = vrot.lane.b32.xlu0 %v6561_v33, %s5569_s18  ;;  %v6901_v41 = vcombine.low %v3231_v23, %v3238_v53  ;;  %v3700_v33 = vrot.slane %v3646_v2, 1  ;;  %v1406_v16 = vsel %vm1391_vm9, %v1375_v17, %v859_v28 }
 0x1bf   : > { %1157 = vrot.lane.b32.xlu1 %v6885_v14, %s5573_s6  ;;  %v1437_v1 = vsel %vm1422_vm10, %v1406_v16, %v954_v36  ;;  %v1315_v36 = vsel %vm1298_vm6, %v5509_v4, %v6824_v42 }
 0x1c0   : > { %v1144_v54 = vpop.permute.xlu0 %1143  ;;  %v6915_v40 = vsel %vm6862_vm1, %v6901_v41, 0.0 }
 0x1c1   : > { %v1500_v44 = vsel %vm8797_vm12, %v1469_v45, %v1144_v54  ;;  %v1239_v48 = vpop.permute.xlu1 %1238  ;;  %v3701_v11 = vrot.slane %v6915_v40, 1  ;;  %v3757_v61 = vrot.slane %v6915_v40, 2  ;;  %v1346_v54 = vsel %vm8807_vm7, %v1315_v36, %v6833_v6  ;;  %v6988_v6 = vld [vmem:[%s5789_s14 + $0xf8] sm:$0xff]  ;;  %v5510_v40 = vld [vmem:[%s5789_s14 + $0x90] sm:$0xff] }
 0x1c2   : > { %781 = vrot.lane.b32.xlu0 %v6669_v7, %s5566_s15  ;;  %v1531_v7 = vsel %vm8802_vm13, %v1500_v44, %v1239_v48  ;;  %v1377_v42 = vsel %vm8806_vm8, %v1346_v54, %v768_v5  ;;  %v6995_v5 = vadd.s32 16, %v6056_v60  ;;  %v921_v4 = vrot.slane %v6988_v6, 2 }
 0x1c3   : > { %1252 = vrot.lane.b32.xlu1 %v6910_v35, %s5574_s11  ;;  %v3702_v51 = vsel %vm8799_vm2, %v3700_v33, %v3701_v11  ;;  %v6933_v10 = vsel %vm8798_vm3, %v3756_v12, %v3757_v61  ;;  %v1781_v38 = vcombine.high %v1531_v7, %v1531_v7  ;;  %v1788_v39 = vrot.slane %v1531_v7, %v6068_v3 }
 0x1c4   : > { %4061 = vmatprep.mubr.f32.mxu1 %v3702_v51  ;;  %v1047_v32 = vpop.permute.xlu0 %1046  ;;  %vm8800_vm0 = vcmp.le.s32.totalorder %v6995_v5, 16 }
 0x1c5   : > { %v958_v22 = vpop.permute.xlu1 %957  ;;  %4886 = vmatmul.mubr.msk.f32.vlgmr.msra.gmra.mxu1 %vm6875_vm15, %v3222_v59  ;;  %v1795_v0 = vrot.slane %v1781_v38, %v6068_v3  ;;  %v1796_v52 = vcombine.high %v1788_v39, %v1788_v39  ;;  %v1468_v59 = vsel %vm1453_vm11, %v1437_v1, %v1047_v32  ;;  %vm3118_vm15 = vmand %vm6862_vm1, %vm8800_vm0 }
 0x1c6   : > { %876 = vrot.lane.b32.xlu0 %v6681_v29, %s5568_s17 }
 0x1c7   : > { %1064 = vrot.lane.b32.xlu1 %v6845_v58, %s5571_s26  ;;  %v2186_v23 = vcombine.low %v1796_v52, %v1795_v0  ;;  %v1797_v1 = vcombine.high %v1795_v0, %v1795_v0 }
 0x1c8   : > { %v6948_v19 = vpop.permute.xlu0 %537 }
 0x1c9   : > { %v6950_v50 = vpop.permute.xlu1 %678  ;;  %v2200_v33 = vrot.slane %v2186_v23, %v6068_v3 }
 0x1ca   : > { %971 = vrot.lane.b32.xlu0 %v6688_v56, %s5570_s19 }
 0x1cb   : > { %1254 = vrot.lane.b32.xlu1 %v6892_v47, %s5574_s11 }
 0x1cc   : > { %v1142_v25 = vpop.permute.xlu0 %1141 }
 0x1cd   : > { %v1499_v28 = vsel %vm8797_vm12, %v1468_v59, %v1142_v25  ;;  %v1237_v62 = vpop.permute.xlu1 %1236 }
 0x1ce   : > { %v1530_v15 = vsel %vm8802_vm13, %v1499_v28, %v1237_v62  ;;  %1159 = vrot.lane.b32.xlu0 %v6860_v31, %s5573_s6  ;;  %v920_v62 = vrot.slane %v6985_v49, 2 }
 0x1cf   : > { %v1780_v53 = vrot.slane %v1530_v15, %v6068_v3  ;;  %690 = vrot.lane.b32.xlu1 %v6645_v43, %s5569_s18 }
 0x1d0   : > { %v1051_v55 = vpop.permute.xlu0 %1050 }
 0x1d1   : > { %v2185_v2 = vcombine.low %v1780_v53, %v1788_v39  ;;  %v6969_v45 = vpop.permute.xlu1 %771 }
 0x1d2   : > { %549 = vrot.lane.b32.xlu0 %v6641_v21, %s5567_s16  ;;  %v1408_v21 = vsel %vm1391_vm9, %v1377_v42, %v6895_v37  ;;  %v825_v37 = vrot.slane %v6985_v49, 1  ;;  %v7043_v42 = vsel %vm8798_vm3, %v920_v62, %v921_v4  ;;  %v5511_v62 = vld [vmem:[%s5789_s14 + $0x88] sm:$0xf] }
 0x1d3   : > { %v2193_v44 = vrot.slane %v2185_v2, %v6068_v3  ;;  %878 = vrot.lane.b32.xlu1 %v6821_v27, %s5568_s17  ;;  %v1439_v57 = vsel %vm1422_vm10, %v1408_v21, %v958_v22 }
 0x1d4   : > { %v6980_v43 = vpop.permute.xlu0 %535  ;;  %v1470_v26 = vsel %vm1453_vm11, %v1439_v57, %v1051_v55  ;;  %v7050_v57 = vld [vmem:[%s5789_s14 + $0x100] sm:$0xf] }
 0x1d5   : > { %v6982_v48 = vpop.permute.xlu1 %676  ;;  %v2201_v12 = vcombine.low %v2193_v44, %v2200_v33 }
 0x1d6   : > { %783 = vrot.lane.b32.xlu0 %v6770_v46, %s5566_s15  ;;  %v826_v46 = vrot.slane %v6988_v6, 1 }
 0x1d7   : > { %v2507_v51 = vpop.f32.mrf.mxu0  ;;  %5361 = vmatmul.mubr.msk.f32.gmra.mxu0 %vm8803_vm14, %v2201_v12  ;;  %973 = vrot.lane.b32.xlu1 %v6829_v34, %s5570_s19 }
 0x1d8   : > { %v2508_v7 = vadd.f32 %v6754_v30, %v2507_v51  ;;  %v1146_v32 = vpop.permute.xlu0 %1145  ;;  %5363 = vmatprep.mubr.msk.f32.mxu0 %vm8804_vm5, %v5572_v63  ;;  %v7023_v15 = vsel %vm8799_vm2, %v825_v37, %v826_v46  ;;  %v7065_v37 = vrot.slane %v7050_v57, 2 }
 0x1d9   : > { %v1501_v22 = vsel %vm8797_vm12, %v1470_v26, %v1146_v32  ;;  %v1241_v17 = vpop.permute.xlu1 %1240  ;;  %v5335_v38 = vpop.f32.mrf.mxu0 }
 0x1da   : > { %v7008_v39 = vmax.f32 %v2508_v7, 0.0  ;;  %v1532_v16 = vsel %vm8802_vm13, %v1501_v22, %v1241_v17  ;;  %551 = vrot.lane.b32.xlu0 %v6699_v20, %s5567_s16  ;;  %v7081_v17 = vrot.slane %v7050_v57, 1 }
 0x1db   : > { %v1798_v52 = vcombine.high %v1532_v16, %v1532_v16  ;;  %v1805_v59 = vrot.slane %v1532_v16, %v6068_v3  ;;  %1066 = vrot.lane.b32.xlu1 %v6985_v49, %s5571_s26 }
 0x1dc   : > { %v7019_v25 = vrot.slane %v7008_v39, %v6068_v3  ;;  %v867_v28 = vpop.permute.xlu0 %866 }
 0x1dd   : > { %v7031_v20 = vrot.slane %v1798_v52, %v6068_v3  ;;  %v1813_v0 = vcombine.high %v1805_v59, %v1805_v59  ;;  %v2202_v36 = vcombine.low %v1797_v1, %v1805_v59  ;;  %v770_v23 = vpop.permute.xlu1 %769  ;;  %v7095_v1 = vsel %vm8799_vm2, %v826_v46, %v7081_v17 }
 0x1de   : > { %v3246_v53 = vrot.slane %v7019_v25, %v6068_v3  ;;  %692 = vrot.lane.b32.xlu0 %v6705_v8, %s5569_s18 }
 0x1df   : > { %v2203_v55 = vcombine.low %v1813_v0, %v7031_v20  ;;  %1161 = vrot.lane.b32.xlu1 %v7023_v15, %s5573_s6  ;;  %v2210_v33 = vrot.slane %v2202_v36, %v6068_v3 }
 0x1e0   : > { %v3648_v2 = vsel %vm3118_vm15, %v3246_v53, 0.0  ;;  %v7040_v54 = vpop.permute.xlu0 %539  ;;  %vm3061_vm15 = vcmp.ge.s32.totalorder %v6837_v9, 1 }
 0x1e1   : > { %v2217_v44 = vrot.slane %v2203_v55, %v6068_v3  ;;  %v7047_v12 = vpop.permute.xlu1 %680  ;;  %v3703_v21 = vrot.slane %v3648_v2, 1  ;;  %v3759_v8 = vrot.slane %v3648_v2, 2 }
 0x1e2   : > { %785 = vrot.lane.b32.xlu0 %v6786_v24, %s5566_s15 }
 0x1e3   : > { %v3704_v51 = vsel %vm8799_vm2, %v3701_v11, %v3703_v21  ;;  %v2218_v26 = vcombine.low %v2210_v33, %v2217_v44  ;;  %1256 = vrot.lane.b32.xlu1 %v7043_v42, %s5574_s11  ;;  %v7062_v7 = vsel %vm8798_vm3, %v3757_v61, %v3759_v8  ;;  %v1317_v11 = vsel %vm1298_vm6, %v5510_v40, %v6948_v19 }
 0x1e4   : > { %4066 = vmatprep.mubr.f32.mxu1 %v3704_v51  ;;  %v962_v32 = vpop.permute.xlu0 %961  ;;  %v1348_v16 = vsel %vm8807_vm7, %v1317_v11, %v6950_v50  ;;  %v1316_v50 = vsel %vm1298_vm6, %v5511_v62, %v6980_v43 }
 0x1e5   : > { %v1055_v22 = vpop.permute.xlu1 %1054  ;;  %v2512_v24 = vpop.f32.mrf.mxu0  ;;  %5364 = vmatmul.mubr.msk.f32.gmra.mxu0 %vm8803_vm14, %v2218_v26  ;;  %4887 = vmatmul.mubr.msk.f32.gmra.mxu1 %vm6862_vm1, %v6901_v41  ;;  %v7085_v41 = vsel %vm8798_vm3, %v921_v4, %v7065_v37  ;;  %v1379_v19 = vsel %vm8806_vm8, %v1348_v16, %v6969_v45  ;;  %v1347_v45 = vsel %vm8807_vm7, %v1316_v50, %v6982_v48  ;;  %vm3050_vm1 = vcmp.le.s32.totalorder %v6835_v18, 1 }
 0x1e6   : > { %880 = vrot.lane.b32.xlu0 %v6885_v14, %s5568_s17  ;;  %5366 = vmatprep.mubr.msk.f32.mxu0 %vm8804_vm5, %v5572_v63  ;;  %v1410_v52 = vsel %vm1391_vm9, %v1379_v19, %v867_v28  ;;  %v1378_v36 = vsel %vm8806_vm8, %v1347_v45, %v770_v23  ;;  %v2513_v44 = vadd.f32 %v6754_v30, %v2512_v24 }
 0x1e7   : > { %v5338_v61 = vpop.f32.mrf.mxu0  ;;  %1068 = vrot.lane.b32.xlu1 %v6988_v6, %s5571_s26  ;;  %v1441_v4 = vsel %vm1422_vm10, %v1410_v52, %v962_v32  ;;  %v417_v32 = vld [vmem:[%s5789_s14 + $0x108] sm:$0xff] }
 0x1e8   : > { %v865_v13 = vpop.permute.xlu0 %864  ;;  %v1472_v46 = vsel %vm1453_vm11, %v1441_v4, %v1055_v22  ;;  %v7134_v22 = vld [vmem:[%s5789_s14 + $0x110] sm:$0xff]  ;;  %v2614_v24 = vmax.f32 %v2513_v44, 0.0  ;;  %v1108_v16 = vrot.slane %v417_v32, 1  ;;  %v1203_v50 = vrot.slane %v417_v32, 2 }
 0x1e9   : > { %v960_v38 = vpop.permute.xlu1 %959  ;;  %v1409_v55 = vsel %vm1391_vm9, %v1378_v36, %v865_v13  ;;  %v1109_v19 = vrot.slane %v7134_v22, 1  ;;  %v2706_v4 = vcombine.high %v7019_v25, %v7019_v25 }
 0x1ea   : > { %975 = vrot.lane.b32.xlu0 %v6910_v35, %s5570_s19  ;;  %v1440_v23 = vsel %vm1422_vm10, %v1409_v55, %v960_v38  ;;  %v2708_v36 = vcombine.high %v2614_v24, %v2614_v24 }
 0x1eb   : > { %1258 = vrot.lane.b32.xlu1 %v7085_v41, %s5574_s11 }
 0x1ec   : > { %v774_v59 = vpop.permute.xlu0 %773  ;;  %v2722_v44 = vrot.slane %v2708_v36, %v6068_v3 }
 0x1ed   : > { %v7104_v0 = vpop.permute.xlu1 %868 }
 0x1ee   : > { %1163 = vrot.lane.b32.xlu0 %v7095_v1, %s5573_s6 }
 0x1ef   : > { %696 = vrot.lane.b32.xlu1 %v6829_v34, %s5569_s18 }
 0x1f0   : > { %v1150_v28 = vpop.permute.xlu0 %1149 }
 0x1f1   : > { %v1503_v43 = vsel %vm8797_vm12, %v1472_v46, %v1150_v28  ;;  %v1245_v53 = vpop.permute.xlu1 %1244 }
 0x1f2   : > { %v1534_v2 = vsel %vm8802_vm13, %v1503_v43, %v1245_v53  ;;  %555 = vrot.lane.b32.xlu0 %v6821_v27, %s5567_s16  ;;  %v2691_v27 = vcombine.high %v7008_v39, %v7008_v39  ;;  %v1814_v39 = vcombine.high %v7031_v20, %v7031_v20  ;;  %v2715_v20 = vrot.slane %v2614_v24, %v6068_v3 }
 0x1f3   : > { %v1829_v34 = vrot.slane %v1534_v2, %v6068_v3  ;;  %789 = vrot.lane.b32.xlu1 %v6985_v49, %s5566_s15 }
 0x1f4   : > { %v1053_v48 = vpop.permute.xlu0 %1052  ;;  %v2705_v13 = vrot.slane %v2691_v27, %v6068_v3 }
 0x1f5   : > { %v1148_v33 = vpop.permute.xlu1 %1147  ;;  %v1471_v21 = vsel %vm1453_vm11, %v1440_v23, %v1053_v48  ;;  %v1837_v8 = vcombine.high %v1829_v34, %v1829_v34 }
 0x1f6   : > { %553 = vrot.lane.b32.xlu0 %v6681_v29, %s5567_s16  ;;  %v1502_v51 = vsel %vm8797_vm12, %v1471_v21, %v1148_v33  ;;  %v5512_v29 = vld [vmem:[%s5789_s14 + $0x98] sm:$0xff]  ;;  %v2723_v21 = vcombine.high %v2715_v20, %v2715_v20 }
 0x1f7   : > { %884 = vrot.lane.b32.xlu1 %v7023_v15, %s5568_s17  ;;  %v1318_v15 = vsel %vm1298_vm6, %v5512_v29, %v7040_v54  ;;  %v2220_v11 = vcombine.low %v1829_v34, %v1837_v8  ;;  %v3247_v34 = vcombine.low %v2706_v4, %v2705_v13 }
 0x1f8   : > { %v964_v49 = vpop.permute.xlu0 %963  ;;  %v1349_v54 = vsel %vm8807_vm7, %v1318_v15, %v7047_v12  ;;  %v2707_v12 = vcombine.high %v2705_v13, %v2705_v13 }
 0x1f9   : > { %v1243_v26 = vpop.permute.xlu1 %1242  ;;  %v1380_v45 = vsel %vm8806_vm8, %v1349_v54, %v774_v59  ;;  %v2234_v46 = vrot.slane %v2220_v11, %v6068_v3  ;;  %v3255_v11 = vrot.slane %v3247_v34, %v6068_v3 }
 0x1fa   : > { %v1533_v40 = vsel %vm8802_vm13, %v1502_v51, %v1243_v26  ;;  %694 = vrot.lane.b32.xlu0 %v6688_v56, %s5569_s18  ;;  %v1822_v56 = vcombine.high %v1534_v2, %v1534_v2  ;;  %v3248_v59 = vcombine.low %v2707_v12, %v2715_v20  ;;  %v1411_v2 = vsel %vm1391_vm9, %v1380_v45, %v7104_v0 }
 0x1fb   : > { %v1821_v61 = vrot.slane %v1533_v40, %v6068_v3  ;;  %979 = vrot.lane.b32.xlu1 %v7043_v42, %s5570_s19  ;;  %v1204_v42 = vrot.slane %v7134_v22, 2  ;;  %v1442_v48 = vsel %vm1422_vm10, %v1411_v2, %v964_v49  ;;  %v3941_v2 = vld [vmem:[%s8794_s3 + $0x2f8] sm:$0xff] }
 0x1fc   : > { %v1057_v38 = vpop.permute.xlu0 %1056  ;;  %v1836_v53 = vrot.slane %v1822_v56, %v6068_v3  ;;  %v3262_v24 = vrot.slane %v3248_v59, %v6068_v3  ;;  %5125 = vmatprep.subr.mxu0 %v3941_v2  ;;  %v3921_v2 = vld [vmem:[%s8794_s3 + $0x258] sm:$0xff] }
 0x1fd   : > { %v2219_v52 = vcombine.low %v1814_v39, %v1821_v61  ;;  %v7149_v62 = vpop.permute.xlu1 %543  ;;  %v1205_v33 = vsel %vm8798_vm3, %v1203_v50, %v1204_v42  ;;  %v1473_v0 = vsel %vm1453_vm11, %v1442_v48, %v1057_v38  ;;  %v3264_v39 = vcombine.low %v2723_v21, %v2722_v44 }
 0x1fe   : > { %787 = vrot.lane.b32.xlu0 %v6845_v58, %s5566_s15  ;;  %v1110_v58 = vsel %vm8799_vm2, %v1108_v16, %v1109_v19  ;;  %v1838_v49 = vcombine.high %v1836_v53, %v1836_v53  ;;  %v2724_v61 = vcombine.high %v2722_v44, %v2722_v44  ;;  %v7211_v20 = vcombine.low %v3255_v11, %v3262_v24  ;;  %v3939_v24 = vld [vmem:[%s8794_s3 + $0x2e8] sm:$0xff]  ;;  %v3970_v16 = vld [vmem:[%s8794_s3 + $0x3e0] sm:$0xff] }
 0x1ff   : > { %v2227_v28 = vrot.slane %v2219_v52, %v6068_v3  ;;  %1072 = vrot.lane.b32.xlu1 %v417_v32, %s5571_s26 }
 0x200   : > { %v7163_v43 = vpop.permute.xlu0 %541  ;;  %v2236_v56 = vcombine.low %v1836_v53, %v1838_v49  ;;  %v3924_v49 = vld [vmem:[%s8794_s3 + $0x270] sm:$0xff] }
 0x201   : > { %v7169_v55 = vpop.permute.xlu1 %682  ;;  %v2235_v25 = vcombine.low %v2227_v28, %v2234_v46  ;;  %v3272_v28 = vrot.slane %v3264_v39, %v6068_v3  ;;  %v3923_v39 = vld [vmem:[%s8794_s3 + $0x268] sm:$0xff] }
 0x202   : > { %882 = vrot.lane.b32.xlu0 %v6860_v31, %s5568_s17  ;;  %v2244_v53 = vrot.slane %v2236_v56, %v6068_v3 }
 0x203   : > { %v2517_v23 = vpop.f32.mrf.mxu0  ;;  %5367 = vmatmul.mubr.msk.f32.gmra.mxu0 %vm8803_vm14, %v2235_v25  ;;  %1167 = vrot.lane.b32.xlu1 %v1110_v58, %s5573_s6 }
 0x204   : > { %v2518_v8 = vadd.f32 %v6754_v30, %v2517_v23  ;;  %v1152_v27 = vpop.permute.xlu0 %1151  ;;  %5369 = vmatprep.mubr.msk.f32.mxu0 %vm8804_vm5, %v5572_v63  ;;  %v3925_v23 = vld [vmem:[%s8794_s3 + $0x278] sm:$0xff] }
 0x205   : > { %v1504_v51 = vsel %vm8797_vm12, %v1473_v0, %v1152_v27  ;;  %v1247_v26 = vpop.permute.xlu1 %1246  ;;  %v5341_v32 = vpop.f32.mrf.mxu0  ;;  %vm7205_vm12 = vmand %vm3050_vm1, %vm3061_vm15  ;;  %5126 = vmatpush3.msra.mxu0 %v3925_v23  ;;  %v7262_v27 = vld [vmem:[%s5789_s14 + $0x118] sm:$0xf]  ;;  %v3936_v23 = vld [vmem:[%s8794_s3 + $0x2d0] sm:$0xff] }
 0x206   : > { %v7190_v40 = vmax.f32 %v2518_v8, 0.0  ;;  %v7193_v29 = vsel %vm8802_vm13, %v1504_v51, %v1247_v26  ;;  %977 = vrot.lane.b32.xlu0 %v6892_v47, %s5570_s19  ;;  %vm7221_vm1 = vmand %vm7205_vm12, %vm8801_vm4 }
 0x207   : > { %v1846_v15 = vrot.slane %v7193_v29, %v6068_v3  ;;  %1262 = vrot.lane.b32.xlu1 %v1205_v33, %s5574_s11  ;;  %vm3121_vm15 = vmand %vm7205_vm12, %vm8800_vm0  ;;  %v3649_v48 = vsel %vm7221_vm1, %v7211_v20, 0.0  ;;  %v3940_v33 = vld [vmem:[%s8794_s3 + $0x2f0] sm:$0xff] }
 0x208   : > { %v2732_v13 = vrot.slane %v7190_v40, %v6068_v3  ;;  %v7203_v38 = vpop.permute.xlu0 %684  ;;  %5127 = vmatprep.subr.mxu0 %v3940_v33 }
 0x209   : > { %v1854_v52 = vcombine.high %v1846_v15, %v1846_v15  ;;  %v7209_v54 = vpop.permute.xlu1 %777  ;;  %5128 = vmatpush3.msra.mxu0 %v3924_v49 }
 0x20a   : > { %v2740_v50 = vcombine.high %v2732_v13, %v2732_v13  ;;  %v3265_v4 = vcombine.low %v2724_v61, %v2732_v13  ;;  %1070 = vrot.lane.b32.xlu0 %v7050_v57, %s5571_s26  ;;  %5129 = vmatprep.subr.mxu0 %v3939_v24 }
 0x20b   : > { %v2237_v45 = vcombine.low %v1846_v15, %v1854_v52  ;;  %1260 = vrot.lane.b32.xlu1 %v7065_v37, %s5574_s11  ;;  %v3761_v15 = vrot.slane %v3649_v48, 2  ;;  %5130 = vmatpush3.msra.mxu0 %v3923_v39 }
 0x20c   : > { %v3279_v12 = vrot.slane %v3265_v4, %v6068_v3  ;;  %v3287_v36 = vrot.slane %v2740_v50, %v6068_v3  ;;  %v7228_v58 = vpop.permute.xlu0 %775  ;;  %v1206_v4 = vrot.slane %v7262_v27, 2 }
 0x20d   : > { %v2251_v25 = vrot.slane %v2237_v45, %v6068_v3  ;;  %v7236_v59 = vpop.permute.xlu1 %872  ;;  %v3938_v45 = vld [vmem:[%s8794_s3 + $0x2e0] sm:$0xff] }
 0x20e   : > { %v7241_v34 = vcombine.low %v3272_v28, %v3279_v12  ;;  %1165 = vrot.lane.b32.xlu0 %v7081_v17, %s5573_s6  ;;  %v3651_v21 = vsel %vm3121_vm15, %v3287_v36, 0.0  ;;  %v3922_v36 = vld [vmem:[%s8794_s3 + $0x260] sm:$0xff]  ;;  %5131 = vmatprep.subr.mxu0 %v3938_v45  ;;  %vm8829_vm15 = vcmask 228352  }
 0x20f   : > { %v2252_v44 = vcombine.low %v2244_v53, %v2251_v25  ;;  %698 = vrot.lane.b32.xlu1 %v6910_v35, %s5569_s18  ;;  %v3705_v35 = vrot.slane %v3649_v48, 1  ;;  %v3764_v61 = vrot.slane %v3651_v21, 2  ;;  %v3708_v52 = vrot.slane %v3651_v21, 1  ;;  %v3937_v53 = vld [vmem:[%s8794_s3 + $0x2d8] sm:$0xff]  ;;  %5132 = vmatpush3.msra.mxu0 %v3922_v36  ;;  %v5513_v21 = vld [vmem:[%s5789_s14 + $0xa8] sm:$0xff] }
 0x210   : > { %v7256_v0 = vpop.permute.xlu0 %870  ;;  %v3650_v8 = vsel %vm7205_vm12, %v7241_v34, 0.0  ;;  %v1111_v25 = vrot.slane %v7262_v27, 1  ;;  %5133 = vmatprep.subr.mxu0 %v3937_v53  ;;  %v3915_v53 = vld [vmem:[%s8794_s3 + $0x228] sm:$0xff] }
 0x211   : > { %v7267_v51 = vpop.permute.xlu1 %965  ;;  %v7269_v26 = vpop.f32.mrf.mxu0  ;;  %5370 = vmatmul.mubr.msk.f32.gmra.mxu0 %vm8803_vm14, %v2252_v44  ;;  %v3706_v32 = vrot.slane %v3650_v8, 1  ;;  %v3762_v11 = vrot.slane %v3650_v8, 2  ;;  %v3920_v44 = vld [vmem:[%s8794_s3 + $0x250] sm:$0xff]  ;;  %v1320_v8 = vsel %vm1298_vm6, %v5513_v21, %v7149_v62  ;;  %v3913_v21 = vld [vmem:[%s8794_s3 + $0x218] sm:$0xff] }
 0x212   : > { %557 = vrot.lane.b32.xlu0 %v6885_v14, %s5567_s16  ;;  %5372 = vmatprep.mubr.msk.f32.mxu0 %vm8804_vm5, %v5572_v63  ;;  %v1112_v49 = vsel %vm8799_vm2, %v1109_v19, %v1111_v25  ;;  %v1351_v62 = vsel %vm8807_vm7, %v1320_v8, %v7203_v38  ;;  %v1839_v19 = vcombine.high %v7193_v29, %v7193_v29  ;;  %v3917_v29 = vld [vmem:[%s8794_s3 + $0x238] sm:$0xff] }
 0x213   : > { %v5344_v13 = vpop.f32.mrf.mxu0  ;;  %v7283_v56 = vsel %vm8799_vm2, %v3705_v35, %v3706_v32  ;;  %886 = vrot.lane.b32.xlu1 %v7095_v1, %s5568_s17  ;;  %v7288_v50 = vsel %vm8798_vm3, %v3761_v15, %v3762_v11  ;;  %v7298_v28 = vsel %vm8798_vm3, %v3762_v11, %v3764_v61  ;;  %v7306_v1 = vsel %vm8799_vm2, %v3706_v32, %v3708_v52  ;;  %v5514_v35 = vld [vmem:[%s5789_s14 + $0xa0] sm:$0xf] }
 0x214   : > { %4071 = vmatprep.mubr.f32.mxu1 %v7283_v56  ;;  %v7291_v14 = vpop.permute.xlu0 %545  ;;  %5134 = vmatpush3.msra.mxu0 %v3921_v2  ;;  %v1319_v32 = vsel %vm1298_vm6, %v5514_v35, %v7163_v43  ;;  %v3918_v11 = vld [vmem:[%s8794_s3 + $0x240] sm:$0xff]  ;;  %v3933_v43 = vld [vmem:[%s8794_s3 + $0x2b8] sm:$0xff]  ;;  %v1382_v39 = vsel %vm8806_vm8, %v1351_v62, %v7209_v54  ;;  %v2725_v8 = vcombine.high %v7190_v40, %v7190_v40  ;;  %vm3062_vm2 = vcmp.ge.s32.totalorder %v6837_v9, 2 }
 0x215   : > { %v7300_v12 = vpop.permute.xlu1 %686  ;;  %4888 = vmatmul.mubr.msk.f32.gmra.mxu1 %vm7221_vm1, %v7211_v20  ;;  %5135 = vmatprep.subr.mxu0 %v3936_v23  ;;  %v1350_v38 = vsel %vm8807_vm7, %v1319_v32, %v7169_v55  ;;  %v1413_v13 = vsel %vm1391_vm9, %v1382_v39, %v7236_v59  ;;  %v3932_v55 = vld [vmem:[%s8794_s3 + $0x2b0] sm:$0xff]  ;;  %v2523_v59 = vadd.f32 %v6754_v30, %v7269_v26 }
 0x216   : > { %4076 = vmatprep.mubr.f32.mxu1 %v7306_v1  ;;  %791 = vrot.lane.b32.xlu0 %v6988_v6, %s5566_s15  ;;  %v1207_v6 = vsel %vm8798_vm3, %v1204_v42, %v1206_v4  ;;  %v3935_v42 = vld [vmem:[%s8794_s3 + $0x2c8] sm:$0xff]  ;;  %v1381_v61 = vsel %vm8806_vm8, %v1350_v38, %v7228_v58  ;;  %v3916_v58 = vld [vmem:[%s8794_s3 + $0x230] sm:$0xff]  ;;  %vm8830_vm3 = vcmask 228352  }
 0x217   : > { %1074 = vrot.lane.b32.xlu1 %v7134_v22, %s5571_s26  ;;  %5136 = vmatpush3.msra.mxu0 %v3920_v44  ;;  %v3934_v22 = vld [vmem:[%s8794_s3 + $0x2c0] sm:$0xff]  ;;  %v1412_v54 = vsel %vm1391_vm9, %v1381_v61, %v7256_v0  ;;  %v3931_v0 = vld [vmem:[%s8794_s3 + $0x2a8] sm:$0xff] }
 0x218   : > { %v968_v48 = vpop.permute.xlu0 %967  ;;  %5137 = vmatprep.subr.mxu0 %v3935_v42  ;;  %v1443_v2 = vsel %vm1422_vm10, %v1412_v54, %v7267_v51  ;;  %v3914_v44 = vld [vmem:[%s8794_s3 + $0x220] sm:$0xff]  ;;  %v2616_v51 = vmax.f32 %v2523_v59, 0.0  ;;  %v3911_v38 = vld [vmem:[%s8794_s3 + $0x208] sm:$0xff] }
 0x219   : > { %v1061_v33 = vpop.permute.xlu1 %1060  ;;  %4889 = vmatmul.mubr.msk.f32.gmra.mxu1 %vm7205_vm12, %v7241_v34  ;;  %v1444_v45 = vsel %vm1422_vm10, %v1413_v13, %v968_v48  ;;  %v3926_v61 = vld [vmem:[%s8794_s3 + $0x280] sm:$0xff] }
 0x21a   : > { %981 = vrot.lane.b32.xlu0 %v7085_v41, %s5570_s19  ;;  %v3919_v41 = vld [vmem:[%s8794_s3 + $0x248] sm:$0xff]  ;;  %v1475_v30 = vsel %vm1453_vm11, %v1444_v45, %v1061_v33  ;;  %v3929_v33 = vld [vmem:[%s8794_s3 + $0x298] sm:$0xff]  ;;  %v2749_v40 = vrot.slane %v2616_v51, %v6068_v3  ;;  %v2742_v13 = vcombine.high %v2616_v51, %v2616_v51 }
 0x21b   : > { %1264 = vrot.lane.b32.xlu1 %v1207_v6, %s5574_s11  ;;  %5138 = vmatpush3.msra.mxu0 %v3919_v41  ;;  %v3928_v41 = vld [vmem:[%s8794_s3 + $0x290] sm:$0xff] }
 0x21c   : > { %v1059_v24 = vpop.permute.xlu0 %1058  ;;  %5139 = vmatprep.subr.mxu0 %v3934_v22 }
 0x21d   : > { %v1154_v15 = vpop.permute.xlu1 %1153  ;;  %5140 = vmatpush3.msra.mxu0 %v3918_v11  ;;  %v1474_v6 = vsel %vm1453_vm11, %v1443_v2, %v1059_v24  ;;  %v3912_v24 = vld [vmem:[%s8794_s3 + $0x210] sm:$0xff] }
 0x21e   : > { %1169 = vrot.lane.b32.xlu0 %v1112_v49, %s5573_s6  ;;  %5141 = vmatprep.subr.mxu0 %v3933_v43  ;;  %v5515_v11 = vld [vmem:[%s5789_s14 + $0xb0] sm:$0xff] }
 0x21f   : > { %700 = vrot.lane.b32.xlu1 %v6892_v47, %s5569_s18  ;;  %v1853_v47 = vrot.slane %v1839_v19, %v6068_v3  ;;  %5142 = vmatpush3.msra.mxu0 %v3917_v29  ;;  %v1321_v43 = vsel %vm1298_vm6, %v5515_v11, %v7291_v14  ;;  %v5517_v11 = vld [vmem:[%s5789_s14 + $0xb8] sm:$0xf] }
 0x220   : > { %v7384_v52 = vpop.permute.xlu0 %779  ;;  %5143 = vmatprep.subr.mxu0 %v3932_v55  ;;  %v1352_v54 = vsel %vm8807_vm7, %v1321_v43, %v7300_v12 }
 0x221   : > { %v7393_v36 = vpop.permute.xlu1 %874  ;;  %5144 = vmatpush3.msra.mxu0 %v3916_v58  ;;  %v1855_v48 = vcombine.high %v1853_v47, %v1853_v47  ;;  %v1383_v58 = vsel %vm8806_vm8, %v1352_v54, %v7384_v52 }
 0x222   : > { %559 = vrot.lane.b32.xlu0 %v6860_v31, %s5567_s16  ;;  %v3930_v31 = vld [vmem:[%s8794_s3 + $0x2a0] sm:$0xff]  ;;  %5145 = vmatprep.subr.mxu0 %v3931_v0 }
 0x223   : > { %888 = vrot.lane.b32.xlu1 %v7081_v17, %s5568_s17  ;;  %5146 = vmatpush3.msra.mxu0 %v3915_v53  ;;  %v2253_v35 = vcombine.low %v1853_v47, %v1855_v48  ;;  %v2757_v47 = vcombine.high %v2749_v40, %v2749_v40 }
 0x224   : > { %v1156_v26 = vpop.permute.xlu0 %1155  ;;  %5147 = vmatprep.subr.mxu0 %v3930_v31  ;;  %v1414_v31 = vsel %vm1391_vm9, %v1383_v58, %v7393_v36 }
 0x225   : > { %v1506_v17 = vsel %vm8829_vm15, %v1475_v30, %v1156_v26  ;;  %v1251_v23 = vpop.permute.xlu1 %1250  ;;  %5148 = vmatpush3.msra.mxu0 %v3914_v44  ;;  %v2261_v14 = vrot.slane %v2253_v35, %v6068_v3  ;;  %v2756_v30 = vrot.slane %v2742_v13, %v6068_v3  ;;  %v3289_v12 = vcombine.low %v2749_v40, %v2757_v47 }
 0x226   : > { %793 = vrot.lane.b32.xlu0 %v7050_v57, %s5566_s15  ;;  %v1537_v42 = vsel %vm8802_vm13, %v1506_v17, %v1251_v23  ;;  %v1505_v57 = vsel %vm8829_vm15, %v1474_v6, %v1154_v15  ;;  %5149 = vmatprep.subr.mxu0 %v3929_v33  ;;  %v3927_v15 = vld [vmem:[%s8794_s3 + $0x288] sm:$0xff]  ;;  %vm3051_vm15 = vcmp.le.s32.totalorder %v6835_v18, 2 }
 0x227   : > { %1076 = vrot.lane.b32.xlu1 %v7262_v27, %s5571_s26  ;;  %v1870_v22 = vrot.slane %v1537_v42, %v6068_v3  ;;  %5150 = vmatpush3.msra.mxu0 %v3913_v21  ;;  %v1863_v0 = vcombine.high %v1537_v42, %v1537_v42  ;;  %v2758_v33 = vcombine.high %v2756_v30, %v2756_v30 }
 0x228   : > { %v1249_v49 = vpop.permute.xlu0 %1248  ;;  %5151 = vmatprep.subr.mxu0 %v3928_v41 }
 0x229   : > { %v1536_v32 = vsel %vm8802_vm13, %v1505_v57, %v1249_v49  ;;  %v970_v62 = vpop.permute.xlu1 %969  ;;  %5152 = vmatpush3.msra.mxu0 %v3912_v24  ;;  %v1877_v36 = vrot.slane %v1863_v0, %v6068_v3  ;;  %v1878_v17 = vcombine.high %v1870_v22, %v1870_v22  ;;  %v3303_v57 = vrot.slane %v3289_v12, %v6068_v3 }
 0x22a   : > { %v1862_v19 = vrot.slane %v1536_v32, %v6068_v3  ;;  %983 = vrot.lane.b32.xlu0 %v7065_v37, %s5570_s19  ;;  %v2739_v37 = vrot.slane %v2725_v8, %v6068_v3  ;;  %5153 = vmatprep.subr.mxu0 %v3927_v15  ;;  %v1445_v27 = vsel %vm1422_vm10, %v1414_v31, %v970_v62 }
 0x22b   : > { %1266 = vrot.lane.b32.xlu1 %v1206_v4, %s5574_s11  ;;  %v3910_v4 = vld [vmem:[%s8794_s3 + $0x200] sm:$0xff]  ;;  %5154 = vmatpush3.msra.mxu0 %v3911_v38  ;;  %v2270_v24 = vcombine.low %v1878_v17, %v1877_v36  ;;  %v1879_v40 = vcombine.high %v1877_v36, %v1877_v36  ;;  %v3305_v15 = vcombine.low %v2756_v30, %v2758_v33 }
 0x22c   : > { %v2254_v39 = vcombine.low %v1862_v19, %v1870_v22  ;;  %v548_v29 = vpop.permute.xlu0 %547  ;;  %5155 = vmatprep.subr.mxu0 %v3926_v61  ;;  %v2741_v59 = vcombine.high %v2739_v37, %v2739_v37 }
 0x22d   : > { %v1063_v55 = vpop.permute.xlu1 %1062  ;;  %5156 = vmatpush3.msra.mxu0 %v3910_v4  ;;  %v1322_v43 = vsel %vm1298_vm6, %v5517_v11, %v548_v29 }
 0x22e   : > { %v2268_v45 = vrot.slane %v2254_v39, %v6068_v3  ;;  %1171 = vrot.lane.b32.xlu0 %v1111_v25, %s5573_s6  ;;  %v7483_v25 = vld [vmem:[%s8793_s2] ss:$0 sm:$0xff]  ;;  %v3288_v6 = vcombine.low %v2739_v37, %v2741_v59  ;;  %v1476_v23 = vsel %vm1453_vm11, %v1445_v27, %v1063_v55 }
 0x230   : > { %v689_v53 = vpop.permute.xlu0 %688  ;;  %v2269_v2 = vcombine.low %v2261_v14, %v2268_v45  ;;  %v3296_v62 = vrot.slane %v3288_v6, %v6068_v3  ;;  %v2278_v45 = vrot.slane %v2270_v24, %v6068_v3 }
 0x231   : > { %v1158_v26 = vpop.permute.xlu1 %1157  ;;  %v1353_v14 = vsel %vm8807_vm7, %v1322_v43, %v689_v53  ;;  %v3313_v53 = vrot.slane %v3305_v15, %v6068_v3  ;;  %v5518_v43 = vld [vmem:[%s5789_s14 + $0xc0] sm:$0xff] }
 0x232   : > { %v2527_v48 = vpop.f32.mrf.mxu0  ;;  %5373 = vmatmul.mubr.msk.f32.gmra.mxu0 %vm8803_vm14, %v2269_v2  ;;  %v1507_v42 = vsel %vm8830_vm3, %v1476_v23, %v1158_v26  ;;  %vm7500_vm3 = vmand %vm3051_vm15, %vm3062_vm2  ;;  %v7509_v61 = vcombine.low %v3296_v62, %v3303_v57 }
 0x233   : > { %v2528_v52 = vadd.f32 %v7483_v25, %v2527_v48  ;;  %5375 = vmatprep.mubr.msk.f32.mxu0 %vm8804_vm5, %v5572_v63  ;;  %vm7519_vm2 = vmand %vm7500_vm3, %vm8801_vm4 }
 0x234   : > { %v5347_v44 = vpop.f32.mrf.mxu0  ;;  %v782_v51 = vpop.permute.xlu0 %781  ;;  %vm3124_vm15 = vmand %vm7500_vm3, %vm8800_vm0  ;;  %v3652_v31 = vsel %vm7519_vm2, %v7509_v61, 0.0  ;;  %vm8835_vm0 = vcmask 228352  }
 0x235   : > { %v2617_v21 = vmax.f32 %v2528_v52, 0.0  ;;  %v1253_v8 = vpop.permute.xlu1 %1252  ;;  %v1384_v47 = vsel %vm8806_vm8, %v1353_v14, %v782_v51  ;;  %v3710_v33 = vrot.slane %v3652_v31, 1 }
 0x236   : > { %v1538_v49 = vsel %vm8802_vm13, %v1507_v42, %v1253_v8  ;;  %v3766_v42 = vrot.slane %v3652_v31, 2 }
 0x237   : > { %v2759_v41 = vcombine.high %v2617_v21, %v2617_v21  ;;  %v2766_v35 = vrot.slane %v2617_v21, %v6068_v3  ;;  %v1887_v32 = vrot.slane %v1538_v49, %v6068_v3  ;;  %v1880_v54 = vcombine.high %v1538_v49, %v1538_v49 }
 0x238   : > { %v877_v22 = vpop.permute.xlu0 %876 }
 0x239   : > { %v7507_v38 = vrot.slane %v2759_v41, %v6068_v3  ;;  %v2774_v37 = vcombine.high %v2766_v35, %v2766_v35  ;;  %v1065_v39 = vpop.permute.xlu1 %1064  ;;  %v2271_v13 = vcombine.low %v1879_v40, %v1887_v32  ;;  %v1415_v59 = vsel %vm1391_vm9, %v1384_v47, %v877_v22 }
 0x23a   : > { %v1894_v27 = vrot.slane %v1880_v54, %v6068_v3  ;;  %v1895_v52 = vcombine.high %v1887_v32, %v1887_v32 }
 0x23b   : > { %v3306_v55 = vcombine.low %v2766_v35, %v2774_v37  ;;  %v3328_v4 = vrot.slane %v7507_v38, %v6068_v3  ;;  %v2285_v58 = vrot.slane %v2271_v13, %v6068_v3 }
 0x23c   : > { %v972_v0 = vpop.permute.xlu0 %971  ;;  %v2287_v41 = vcombine.low %v1895_v52, %v1894_v27  ;;  %v1896_v35 = vcombine.high %v1894_v27, %v1894_v27  ;;  %v5519_v27 = vld [vmem:[%s5789_s14 + $0xc8] sm:$0xff] }
 0x23d   : > { %v3320_v2 = vrot.slane %v3306_v55, %v6068_v3  ;;  %v1446_v30 = vsel %vm1422_vm10, %v1415_v59, %v972_v0  ;;  %v1255_v26 = vpop.permute.xlu1 %1254  ;;  %v2286_v12 = vcombine.low %v2278_v45, %v2285_v58  ;;  %v3654_v6 = vsel %vm3124_vm15, %v3328_v4, 0.0 }
 0x23e   : > { %v1477_v36 = vsel %vm1453_vm11, %v1446_v30, %v1065_v39  ;;  %v3769_v49 = vrot.slane %v3654_v6, 2  ;;  %v3713_v40 = vrot.slane %v3654_v6, 1  ;;  %vm8837_vm15 = vcmask 1045504  }
 0x23f   : > { %v7536_v48 = vcombine.low %v3313_v53, %v3320_v2  ;;  %5376 = vmatmul.mubr.msk.f32.gmra.mxu0 %vm8803_vm14, %v2286_v12  ;;  %vm8838_vm4 = vmmov %vm8837_vm15  ;;  %v2295_v55 = vrot.slane %v2287_v41, %v6068_v3 }
 0x240   : > { %v1160_v17 = vpop.permute.xlu0 %1159  ;;  %5378 = vmatprep.mubr.msk.f32.mxu0 %vm8804_vm5, %v5572_v63 }
 0x241   : > { %v1508_v23 = vsel %vm8835_vm0, %v1477_v36, %v1160_v17  ;;  %v691_v44 = vpop.permute.xlu1 %690  ;;  %v3653_v51 = vsel %vm7500_vm3, %v7536_v48, 0.0  ;;  %vm8836_vm0 = vcmask 1046528  }
 0x242   : > { %v1539_v21 = vsel %vm8802_vm13, %v1508_v23, %v1255_v26  ;;  %v3711_v8 = vrot.slane %v3653_v51, 1  ;;  %v3767_v57 = vrot.slane %v3653_v51, 2 }
 0x243   : > { %v1903_v32 = vrot.slane %v1539_v21, %v6068_v3 }
 0x244   : > { %v550_v62 = vpop.permute.xlu0 %549  ;;  %v7550_v24 = vsel %vm8836_vm0, %v3710_v33, %v3711_v8  ;;  %v7553_v22 = vsel %vm8837_vm15, %v3766_v42, %v3767_v57  ;;  %v7556_v15 = vsel %vm8838_vm4, %v3767_v57, %v3769_v49  ;;  %v7566_v13 = vsel %vm8836_vm0, %v3711_v8, %v3713_v40 }
 0x245   : > { %v2288_v11 = vcombine.low %v1896_v35, %v1903_v32  ;;  %v1323_v37 = vsel %vm1298_vm6, %v5518_v43, %v550_v62  ;;  %4081 = vmatprep.mubr.f32.mxu1 %v7550_v24  ;;  %v879_v39 = vpop.permute.xlu1 %878  ;;  %vm8839_vm4 = vcmask 228352   ;;  %vm3052_vm0 = vcmp.le.s32.totalorder %v6835_v18, 3 }
 0x246   : > { %v1354_v14 = vsel %vm8807_vm7, %v1323_v37, %v691_v44  ;;  %4890 = vmatmul.mubr.msk.f32.gmra.mxu1 %vm7519_vm2, %v7509_v61  ;;  %vm8840_vm15 = vmmov %vm8839_vm4 }
 0x247   : > { %v2302_v4 = vrot.slane %v2288_v11, %v6068_v3  ;;  %v2532_v47 = vpop.f32.mrf.mxu0  ;;  %4086 = vmatprep.mubr.f32.mxu1 %v7566_v13 }
 0x248   : > { %v784_v54 = vpop.permute.xlu0 %783  ;;  %v2533_v36 = vadd.f32 %v7483_v25, %v2532_v47 }
 0x249   : > { %v1385_v45 = vsel %vm8806_vm8, %v1354_v14, %v784_v54  ;;  %v5350_v58 = vpop.f32.mrf.mxu0  ;;  %v2303_v59 = vcombine.low %v2295_v55, %v2302_v4  ;;  %v974_v0 = vpop.permute.xlu1 %973 }
 0x24a   : > { %v1416_v53 = vsel %vm1391_vm9, %v1385_v45, %v879_v39  ;;  %4891 = vmatmul.mubr.msk.f32.gmra.mxu1 %vm7500_vm3, %v7536_v48  ;;  %v2618_v33 = vmax.f32 %v2533_v36, 0.0  ;;  %v2775_v36 = vcombine.high %v7507_v38, %v7507_v38 }
 0x24b   : > { %5379 = vmatmul.mubr.msk.f32.gmra.mxu0 %vm8803_vm14, %v2303_v59  ;;  %v1447_v30 = vsel %vm1422_vm10, %v1416_v53, %v974_v0  ;;  %v3909_v59 = vld [vmem:[%s8794_s3 + $0x1f8] sm:$0xff]  ;;  %v3908_v53 = vld [vmem:[%s8794_s3 + $0x1f0] sm:$0xff] }
 0x24c   : > { %v552_v2 = vpop.permute.xlu0 %551  ;;  %5381 = vmatprep.mubr.msk.f32.mxu0 %vm8804_vm5, %v5572_v63  ;;  %v2776_v62 = vcombine.high %v2618_v33, %v2618_v33  ;;  %v2783_v40 = vrot.slane %v2618_v33, %v6068_v3  ;;  %v3893_v0 = vld [vmem:[%s8794_s3 + $0x178] sm:$0xff]  ;;  %5045 = vmatprep.subr.mxu1 %v3909_v59 }
 0x24d   : > { %v1067_v26 = vpop.permute.xlu1 %1066  ;;  %v1324_v52 = vsel %vm1298_vm6, %v5519_v27, %v552_v2  ;;  %5046 = vmatpush3.msra.mxu1 %v3893_v0 }
 0x24e   : > { %v1478_v31 = vsel %vm1453_vm11, %v1447_v30, %v1067_v26  ;;  %v2790_v54 = vrot.slane %v2776_v62, %v6068_v3  ;;  %v2791_v45 = vcombine.high %v2783_v40, %v2783_v40  ;;  %v3892_v30 = vld [vmem:[%s8794_s3 + $0x170] sm:$0xff]  ;;  %5047 = vmatprep.subr.mxu1 %v3908_v53 }
 0x24f   : > { %5048 = vmatpush3.msra.mxu1 %v3892_v30 }
 0x250   : > { %v693_v12 = vpop.permute.xlu0 %692 }
 0x251   : > { %v1162_v6 = vpop.permute.xlu1 %1161  ;;  %v1355_v23 = vsel %vm8807_vm7, %v1324_v52, %v693_v12  ;;  %v3907_v12 = vld [vmem:[%s8794_s3 + $0x1e8] sm:$0xff] }
 0x252   : > { %v1509_v17 = vsel %vm8839_vm4, %v1478_v31, %v1162_v6  ;;  %v3891_v6 = vld [vmem:[%s8794_s3 + $0x168] sm:$0xff]  ;;  %5049 = vmatprep.subr.mxu1 %v3907_v12  ;;  %vm3063_vm4 = vcmp.ge.s32.totalorder %v6837_v9, 3 }
 0x253   : > { %5050 = vmatpush3.msra.mxu1 %v3891_v6 }
 0x254   : > { %v786_v44 = vpop.permute.xlu0 %785 }
 0x255   : > { %v1257_v51 = vpop.permute.xlu1 %1256  ;;  %v1386_v21 = vsel %vm8806_vm8, %v1355_v23, %v786_v44 }
 0x256   : > { %v1540_v42 = vsel %vm8802_vm13, %v1509_v17, %v1257_v51  ;;  %v3330_v17 = vcombine.low %v2791_v45, %v2790_v54 }
 0x257   : > { %v1904_v8 = vcombine.high %v1540_v42, %v1540_v42  ;;  %v1911_v57 = vrot.slane %v1540_v42, %v6068_v3 }
 0x258   : > { %v881_v49 = vpop.permute.xlu0 %880 }
 0x259   : > { %v1918_v41 = vrot.slane %v1904_v8, %v6068_v3  ;;  %v1919_v35 = vcombine.high %v1911_v57, %v1911_v57  ;;  %v1069_v32 = vpop.permute.xlu1 %1068  ;;  %v1417_v11 = vsel %vm1391_vm9, %v1386_v21, %v881_v49  ;;  %v3329_v21 = vcombine.low %v2775_v36, %v2783_v40 }
 0x25b   : > { %v1920_v43 = vcombine.high %v1918_v41, %v1918_v41  ;;  %v2304_v37 = vcombine.low %v1911_v57, %v1919_v35  ;;  %v5520_v35 = vld [vmem:[%s5789_s14 + $0xd8] sm:$0xff] }
 0x25c   : > { %v976_v39 = vpop.permute.xlu0 %975 }
 0x25d   : > { %v2305_v14 = vcombine.low %v1918_v41, %v1920_v43  ;;  %v2312_v55 = vrot.slane %v2304_v37, %v6068_v3  ;;  %v1448_v4 = vsel %vm1422_vm10, %v1417_v11, %v976_v39  ;;  %v1259_v47 = vpop.permute.xlu1 %1258  ;;  %v3344_v11 = vrot.slane %v3330_v17, %v6068_v3 }
 0x25e   : > { %v1479_v58 = vsel %vm1453_vm11, %v1448_v4, %v1069_v32  ;;  %v2792_v4 = vcombine.high %v2790_v54, %v2790_v54 }
 0x25f   : > { %v2319_v2 = vrot.slane %v2305_v14, %v6068_v3 }
 0x260   : > { %v1164_v26 = vpop.permute.xlu0 %1163 }
 0x261   : > { %v1510_v31 = vsel %vm8840_vm15, %v1479_v58, %v1164_v26  ;;  %v697_v27 = vpop.permute.xlu1 %696  ;;  %v2320_v52 = vcombine.low %v2312_v55, %v2319_v2  ;;  %v3337_v55 = vrot.slane %v3329_v21, %v6068_v3  ;;  %vm7640_vm15 = vmand %vm3052_vm0, %vm3063_vm4  ;;  %vm8843_vm0 = vcmp.ge.s32.totalorder %v6056_v60, 1 }
 0x262   : > { %v1541_v23 = vsel %vm8802_vm13, %v1510_v31, %v1259_v47  ;;  %v2537_v44 = vpop.f32.mrf.mxu0  ;;  %vm7653_vm4 = vmand %vm7640_vm15, %vm8843_vm0  ;;  %vm8846_vm13 = vcmp.le.s32.totalorder %v6995_v5, 16 }
 0x263   : > { %v1921_v51 = vcombine.high %v1541_v23, %v1541_v23  ;;  %v1928_v33 = vrot.slane %v1541_v23, %v6068_v3  ;;  %v2538_v42 = vadd.f32 %v7483_v25, %v2537_v44  ;;  %5382 = vmatmul.mubr.msk.f32.gmra.mxu0 %vm8803_vm14, %v2320_v52  ;;  %v7644_v54 = vcombine.low %v3337_v55, %v3344_v11  ;;  %vm7666_vm0 = vmand %vm7640_vm15, %vm8846_vm13  ;;  %v5521_v11 = vld [vmem:[%s5789_s14 + $0xd0] sm:$0xf] }
 0x264   : > { %v5353_v8 = vpop.f32.mrf.mxu0  ;;  %v556_v57 = vpop.permute.xlu0 %555  ;;  %5384 = vmatprep.mubr.msk.f32.mxu0 %vm8804_vm5, %v5572_v63  ;;  %vm3053_vm13 = vcmp.le.s32.totalorder %v6835_v18, 4 }
 0x265   : > { %v1935_v38 = vrot.slane %v1921_v51, %v6068_v3  ;;  %v1936_v49 = vcombine.high %v1928_v33, %v1928_v33  ;;  %v2619_v41 = vmax.f32 %v2538_v42, 0.0  ;;  %v1326_v32 = vsel %vm1298_vm6, %v5520_v35, %v556_v57  ;;  %v790_v62 = vpop.permute.xlu1 %789 }
 0x266   : > { %v2542_v43 = vpop.f32.mrf.mxu0  ;;  %v1357_v47 = vsel %vm8807_vm7, %v1326_v32, %v697_v27 }
 0x267   : > { %v1937_v40 = vcombine.high %v1935_v38, %v1935_v38  ;;  %v2321_v37 = vcombine.low %v1928_v33, %v1936_v49  ;;  %v2793_v39 = vcombine.high %v2619_v41, %v2619_v41  ;;  %v2800_v14 = vrot.slane %v2619_v41, %v6068_v3 }
 0x268   : > { %v2543_v45 = vadd.f32 %v7483_v25, %v2542_v43  ;;  %v5356_v58 = vpop.f32.mrf.mxu0  ;;  %v554_v59 = vpop.permute.xlu0 %553  ;;  %v1388_v17 = vsel %vm8806_vm8, %v1357_v47, %v790_v62 }
 0x269   : > { %v2322_v0 = vcombine.low %v1935_v38, %v1937_v40  ;;  %v2329_v53 = vrot.slane %v2321_v37, %v6068_v3  ;;  %v2807_v2 = vrot.slane %v2793_v39, %v6068_v3  ;;  %v2808_v30 = vcombine.high %v2800_v14, %v2800_v14  ;;  %v885_v26 = vpop.permute.xlu1 %884 }
 0x26a   : > { %v3346_v31 = vcombine.low %v2792_v4, %v2800_v14  ;;  %v2620_v27 = vmax.f32 %v2543_v45, 0.0  ;;  %v1419_v41 = vsel %vm1391_vm9, %v1388_v17, %v885_v26  ;;  %v1325_v43 = vsel %vm1298_vm6, %v5521_v11, %v554_v59 }
 0x26b   : > { %v2336_v52 = vrot.slane %v2322_v0, %v6068_v3  ;;  %v2809_v6 = vcombine.high %v2807_v2, %v2807_v2  ;;  %v3347_v36 = vcombine.low %v2808_v30, %v2807_v2  ;;  %v3655_v37 = vsel %vm7653_vm4, %v7644_v54, 0.0 }
 0x26c   : > { %v2810_v23 = vcombine.high %v2620_v27, %v2620_v27  ;;  %v2817_v44 = vrot.slane %v2620_v27, %v6068_v3  ;;  %v695_v51 = vpop.permute.xlu0 %694  ;;  %v3354_v42 = vrot.slane %v3346_v31, %v6068_v3  ;;  %v3715_v30 = vrot.slane %v3655_v37, 1 }
 0x26d   : > { %v3361_v21 = vrot.slane %v3347_v36, %v6068_v3  ;;  %v3369_v8 = vrot.slane %v2809_v6, %v6068_v3  ;;  %v2337_v57 = vcombine.low %v2329_v53, %v2336_v52  ;;  %v980_v38 = vpop.permute.xlu1 %979  ;;  %v1356_v53 = vsel %vm8807_vm7, %v1325_v43, %v695_v51 }
 0x26e   : > { %v2824_v49 = vrot.slane %v2810_v23, %v6068_v3  ;;  %v2825_v62 = vcombine.high %v2817_v44, %v2817_v44  ;;  %v1450_v4 = vsel %vm1422_vm10, %v1419_v41, %v980_v38  ;;  %v3771_v27 = vrot.slane %v3655_v37, 2 }
 0x26f   : > { %v7670_v32 = vcombine.low %v3354_v42, %v3361_v21  ;;  %v2547_v40 = vpop.f32.mrf.mxu0  ;;  %5385 = vmatmul.mubr.msk.f32.gmra.mxu0 %vm8803_vm14, %v2337_v57  ;;  %v3657_v59 = vsel %vm7666_vm0, %v3369_v8, 0.0  ;;  %vm3064_vm14 = vcmp.ge.s32.totalorder %v6837_v9, 4  ;;  %vm8849_vm0 = vcmask 1046528  }
 0x270   : > { %v2826_v39 = vcombine.high %v2824_v49, %v2824_v49  ;;  %v2548_v14 = vadd.f32 %v7483_v25, %v2547_v40  ;;  %v788_v55 = vpop.permute.xlu0 %787  ;;  %5387 = vmatprep.mubr.msk.f32.mxu0 %vm8804_vm5, %v5572_v63  ;;  %v3370_v26 = vcombine.low %v2817_v44, %v2825_v62  ;;  %v3718_v42 = vrot.slane %v3657_v59, 1 }
 0x271   : > { %v5359_v47 = vpop.f32.mrf.mxu0  ;;  %v1073_v45 = vpop.permute.xlu1 %1072  ;;  %v3656_v58 = vsel %vm7640_vm15, %v7670_v32, 0.0  ;;  %v1387_v21 = vsel %vm8806_vm8, %v1356_v53, %v788_v55  ;;  %vm8851_vm5 = vcmask 1045504   ;;  %v3774_v44 = vrot.slane %v3657_v59, 2  ;;  %vm8852_vm8 = vmmov %vm8849_vm0 }
 0x272   : > { %v3371_v0 = vcombine.low %v2824_v49, %v2826_v39  ;;  %v2621_v2 = vmax.f32 %v2548_v14, 0.0  ;;  %v3716_v31 = vrot.slane %v3656_v58, 1  ;;  %v3772_v52 = vrot.slane %v3656_v58, 2  ;;  %vm8855_vm7 = vmmov %vm8851_vm5 }
 0x273   : > { %v1481_v23 = vsel %vm1453_vm11, %v1450_v4, %v1073_v45  ;;  %v3378_v43 = vrot.slane %v3370_v26, %v6068_v3 }
 0x274   : > { %v2827_v6 = vcombine.high %v2621_v2, %v2621_v2  ;;  %v2834_v36 = vrot.slane %v2621_v2, %v6068_v3  ;;  %v883_v17 = vpop.permute.xlu0 %882  ;;  %v7694_v8 = vsel %vm8849_vm0, %v3715_v30, %v3716_v31  ;;  %v7697_v51 = vsel %vm8851_vm5, %v3771_v27, %v3772_v52  ;;  %vm7719_vm5 = vmand %vm3053_vm13, %vm3064_vm14 }
 0x275   : > { %8850 = vst [vmem:[#allocation3_spill] sm:$0xff] %v7694_v8  ;;  %v1168_v57 = vpop.permute.xlu1 %1167  ;;  %v3385_v38 = vrot.slane %v3371_v0, %v6068_v3  ;;  %4091 = vmatprep.mubr.f32.mxu1 %v7694_v8  ;;  %v7706_v35 = vsel %vm8852_vm8, %v3716_v31, %v3718_v42  ;;  %vm8854_vm0 = vcmask 228352   ;;  %v7710_v11 = vsel %vm8855_vm7, %v3772_v52, %v3774_v44  ;;  %v3906_v42 = vld [vmem:[%s8794_s3 + $0x1e0] sm:$0xff] }
 0x276   : > { %v2841_v49 = vrot.slane %v2827_v6, %v6068_v3  ;;  %v2842_v41 = vcombine.high %v2834_v36, %v2834_v36  ;;  %4892 = vmatmul.mubr.msk.f32.gmra.mxu1 %vm7653_vm4, %v7644_v54  ;;  %8853 = vst [vmem:[#allocation4_spill] sm:$0xff] %v7706_v35  ;;  %v1512_v62 = vsel %vm8854_vm0, %v1481_v23, %v1168_v57  ;;  %vm8858_vm7 = vcmask 261120   ;;  %v3905_v57 = vld [vmem:[%s8794_s3 + $0x1d8] sm:$0xff]  ;;  %vm8862_vm13 = vmmov %vm8854_vm0 }
 0x277   : > { %v1418_v39 = vsel %vm1391_vm9, %v1387_v21, %v883_v17  ;;  %4096 = vmatprep.mubr.f32.mxu1 %v7706_v35  ;;  %v7723_v47 = vcombine.low %v3378_v43, %v3385_v38  ;;  %vm8859_vm8 = vcmp.ge.s32.totalorder %v6056_v60, 1  ;;  %v3890_v21 = vld [vmem:[%s8794_s3 + $0x160] sm:$0xff]  ;;  %5051 = vmatprep.subr.mxu1 %v3906_v42  ;;  %vm8863_vm0 = vmmov %vm8858_vm7 }
 0x278   : > { %v2843_v40 = vcombine.high %v2841_v49, %v2841_v49  ;;  %v3387_v37 = vcombine.low %v2834_v36, %v2842_v41  ;;  %v978_v14 = vpop.permute.xlu0 %977  ;;  %vm7735_vm14 = vmand %vm7719_vm5, %vm8859_vm8  ;;  %5052 = vmatpush3.msra.mxu1 %v3890_v21  ;;  %vm8866_vm8 = vcmask 64512  }
 0x279   : > { %v1263_v4 = vpop.permute.xlu1 %1262  ;;  %v1449_v59 = vsel %vm1422_vm10, %v1418_v39, %v978_v14  ;;  %v7750_v23 = vsel %vm7735_vm14, %v7723_v47, 0.0  ;;  %v3904_v39 = vld [vmem:[%s8794_s3 + $0x1d0] sm:$0xff]  ;;  %5053 = vmatprep.subr.mxu1 %v3905_v57 }
 0x27a   : > { %v3388_v45 = vcombine.low %v2841_v49, %v2843_v40  ;;  %v1543_v58 = vsel %vm8858_vm7, %v1512_v62, %v1263_v4  ;;  %4893 = vmatmul.mubr.msk.f32.gmra.mxu1 %vm7640_vm15, %v7670_v32  ;;  %v3395_v30 = vrot.slane %v3387_v37, %v6068_v3  ;;  %v3889_v49 = vld [vmem:[%s8794_s3 + $0x158] sm:$0xff]  ;;  %v3720_v43 = vrot.slane %v7750_v23, 1 }
 0x27b   : > { %v1945_v0 = vcombine.high %v1543_v58, %v1543_v58  ;;  %v1952_v53 = vrot.slane %v1543_v58, %v6068_v3  ;;  %vm8864_vm7 = vcmask 1046528   ;;  %5054 = vmatpush3.msra.mxu1 %v3889_v49  ;;  %v3888_v58 = vld [vmem:[%s8794_s3 + $0x150] sm:$0xff] }
 0x27c   : > { %v3402_v26 = vrot.slane %v3388_v45, %v6068_v3  ;;  %v1071_v31 = vpop.permute.xlu0 %1070  ;;  %5055 = vmatprep.subr.mxu1 %v3904_v39 }
 0x27d   : > { %v7742_v27 = vrot.slane %v1945_v0, %v6068_v3  ;;  %v1960_v52 = vcombine.high %v1952_v53, %v1952_v53  ;;  %v1261_v6 = vpop.permute.xlu1 %1260  ;;  %v1480_v17 = vsel %vm1453_vm11, %v1449_v59, %v1071_v31  ;;  %v3903_v0 = vld [vmem:[%s8794_s3 + $0x1c8] sm:$0xff]  ;;  %v5522_v31 = vld [vmem:[%s5789_s14 + $0xe0] sm:$0xff]  ;;  %5056 = vmatpush3.msra.mxu1 %v3888_v58 }
 0x27e   : > { %v7744_v36 = vcombine.low %v3395_v30, %v3402_v26  ;;  %5057 = vmatprep.subr.mxu1 %v3903_v0  ;;  %v3902_v58 = vld [vmem:[%s8794_s3 + $0x1c0] sm:$0xff] }
 0x27f   : > { %v2339_v41 = vcombine.low %v1960_v52, %v7742_v27 }
 0x280   : > { %v1166_v44 = vpop.permute.xlu0 %1165  ;;  %v7764_v38 = vsel %vm7719_vm5, %v7744_v36, 0.0 }
 0x281   : > { %v1511_v62 = vsel %vm8862_vm13, %v1480_v17, %v1166_v44  ;;  %v3721_v40 = vrot.slane %v7764_v38, 1  ;;  %v699_v37 = vpop.permute.xlu1 %698  ;;  %v2353_v30 = vrot.slane %v2339_v41, %v6068_v3  ;;  %vm8868_vm13 = vcmask 97280  }
 0x282   : > { %v1542_v14 = vsel %vm8863_vm0, %v1511_v62, %v1261_v6  ;;  %vm8869_vm0 = vcmask 293888  }
 0x283   : > { %v1944_v4 = vrot.slane %v1542_v14, %v6068_v3  ;;  %v7781_v45 = vsel %vm8864_vm7, %v3720_v43, %v3721_v40  ;;  %vm8870_vm7 = vmmov 0  }
 0x284   : > { %8865 = vst [vmem:[#allocation5_spill] sm:$0xff] %v7781_v45  ;;  %4101 = vmatprep.mubr.f32.mxu1 %v7781_v45  ;;  %v558_v59 = vpop.permute.xlu0 %557 }
 0x285   : > { %v2338_v26 = vcombine.low %v1944_v4, %v1952_v53  ;;  %v1327_v52 = vsel %vm1298_vm6, %v5522_v31, %v558_v59  ;;  %v4997_v6 = vpop.f32.mrf.mxu1  ;;  %4894 = vmatmul.mubr.msk.f32.gmra.mxu1 %vm7735_vm14, %v7723_v47  ;;  %v887_v17 = vpop.permute.xlu1 %886  ;;  %v3887_v4 = vld [vmem:[%s8794_s3 + $0x148] sm:$0xff]  ;;  %v3886_v59 = vld [vmem:[%s8794_s3 + $0x140] sm:$0xff] }
 0x286   : > { %v1358_v42 = vsel %vm8866_vm8, %v1327_v52, %v699_v37  ;;  %5058 = vmatpush3.msra.mxu1 %v3887_v4  ;;  %v3900_v52 = vld [vmem:[%s8794_s3 + $0x1b0] sm:$0xff]  ;;  %vm8871_vm8 = vcmask 228352  }
 0x287   : > { %v2346_v21 = vrot.slane %v2338_v26, %v6068_v3  ;;  %v4998_v57 = vpop.f32.mrf.mxu1  ;;  %5059 = vmatprep.subr.mxu1 %v3902_v58  ;;  %v3885_v26 = vld [vmem:[%s8794_s3 + $0x138] sm:$0xff] }
 0x288   : > { %v7798_v44 = vadd.f32 %v4998_v57, %v4997_v6  ;;  %v792_v49 = vpop.permute.xlu0 %791  ;;  %5060 = vmatpush3.msra.mxu1 %v3886_v59 }
 0x289   : > { %v1389_v53 = vsel %vm8868_vm13, %v1358_v42, %v792_v49  ;;  %v2354_v41 = vcombine.low %v2346_v21, %v2353_v30  ;;  %v1075_v62 = vpop.permute.xlu1 %1074  ;;  %v3901_v30 = vld [vmem:[%s8794_s3 + $0x1b8] sm:$0xff]  ;;  %vm8872_vm13 = vcmask 261120  }
 0x28a   : > { %8867 = vst [vmem:[#allocation6_spill] sm:$0xff] %v7798_v44  ;;  %v1420_v43 = vsel %vm1391_vm9, %v1389_v53, %v887_v17  ;;  %v1961_v17 = vcombine.high %v7742_v27, %v7742_v27  ;;  %5061 = vmatprep.subr.mxu1 %v3901_v30 }
 0x28b   : > { %5388 = vmatmul.mubr.msk.f32.gmra.mxu0 %vm8869_vm0, %v2354_v41  ;;  %5062 = vmatpush3.msra.mxu1 %v3885_v26  ;;  %vm8873_vm0 = vcmask 64512   ;;  %v3884_v26 = vld [vmem:[%s8794_s3 + $0x130] sm:$0xff] }
 0x28c   : > { %v982_v39 = vpop.permute.xlu0 %981  ;;  %5390 = vmatprep.mubr.msk.f32.mxu0 %vm8870_vm7, %v5572_v63  ;;  %5063 = vmatprep.subr.mxu1 %v3900_v52  ;;  %v3883_v52 = vld [vmem:[%s8794_s3 + $0x128] sm:$0xff] }
 0x28d   : > { %v1451_v37 = vsel %vm1422_vm10, %v1420_v43, %v982_v39  ;;  %v1265_v14 = vpop.permute.xlu1 %1264  ;;  %v5523_v39 = vld [vmem:[%s5789_s14 + $0xe8] sm:$0xf]  ;;  %5064 = vmatpush3.msra.mxu1 %v3884_v26  ;;  %v3880_v26 = vld [vmem:[%s8794_s3 + $0x110] sm:$0xff] }
 0x28e   : > { %v1482_v0 = vsel %vm1453_vm11, %v1451_v37, %v1075_v62 }
 0x290   : > { %v1170_v31 = vpop.permute.xlu0 %1169 }
 0x291   : > { %v1513_v6 = vsel %vm8871_vm8, %v1482_v0, %v1170_v31  ;;  %v701_v42 = vpop.permute.xlu1 %700  ;;  %v3899_v31 = vld [vmem:[%s8794_s3 + $0x1a8] sm:$0xff]  ;;  %vm8875_vm8 = vcmp.le.s32.totalorder %v6995_v5, 16 }
 0x292   : > { %v1544_v21 = vsel %vm8872_vm13, %v1513_v6, %v1265_v14  ;;  %5065 = vmatprep.subr.mxu1 %v3899_v31  ;;  %vm8876_vm13 = vcmask 293888  }
 0x293   : > { %v1962_v57 = vcombine.high %v1544_v21, %v1544_v21  ;;  %v1969_v49 = vrot.slane %v1544_v21, %v6068_v3  ;;  %5066 = vmatpush3.msra.mxu1 %v3883_v52 }
 0x294   : > { %v560_v53 = vpop.permute.xlu0 %559 }
 0x295   : > { %v7831_v41 = vrot.slane %v1962_v57, %v6068_v3  ;;  %v1977_v62 = vcombine.high %v1969_v49, %v1969_v49  ;;  %v2355_v43 = vcombine.low %v1961_v17, %v1969_v49  ;;  %v1328_v37 = vsel %vm1298_vm6, %v5523_v39, %v560_v53  ;;  %v889_v4 = vpop.permute.xlu1 %888  ;;  %v3898_v57 = vld [vmem:[%s8794_s3 + $0x1a0] sm:$0xff] }
 0x296   : > { %v1359_v27 = vsel %vm8873_vm0, %v1328_v37, %v701_v42  ;;  %vm8874_vm6 = vcmask 97280   ;;  %5067 = vmatprep.subr.mxu1 %v3898_v57  ;;  %vm8882_vm0 = vmmov %vm8876_vm13 }
 0x297   : > { %v2356_v58 = vcombine.low %v1977_v62, %v7831_v41  ;;  %v2363_v14 = vrot.slane %v2355_v43, %v6068_v3  ;;  %v2552_v59 = vpop.f32.mrf.mxu0  ;;  %v3882_v62 = vld [vmem:[%s8794_s3 + $0x120] sm:$0xff] }
 0x298   : > { %v2553_v0 = vadd.f32 %v7483_v25, %v2552_v59  ;;  %v794_v30 = vpop.permute.xlu0 %793  ;;  %5068 = vmatpush3.msra.mxu1 %v3882_v62 }
 0x299   : > { %v2370_v6 = vrot.slane %v2356_v58, %v6068_v3  ;;  %v1390_v17 = vsel %vm8874_vm6, %v1359_v27, %v794_v30  ;;  %v5362_v42 = vpop.f32.mrf.mxu0  ;;  %v1077_v21 = vpop.permute.xlu1 %1076  ;;  %v3897_v27 = vld [vmem:[%s8794_s3 + $0x198] sm:$0xff]  ;;  %vm8883_vm6 = vcmask 1045504  }
 0x29a   : > { %v7853_v49 = vmax.f32 %v2553_v0, 0.0  ;;  %v1421_v53 = vsel %vm1391_vm9, %v1390_v17, %v889_v4  ;;  %vm3130_vm9 = vmand %vm7719_vm5, %vm8875_vm8  ;;  %v3881_v58 = vld [vmem:[%s8794_s3 + $0x118] sm:$0xff]  ;;  %v3896_v0 = vld [vmem:[%s8794_s3 + $0x190] sm:$0xff]  ;;  %5069 = vmatprep.subr.mxu1 %v3897_v27  ;;  %v1978_v17 = vcombine.high %v7831_v41, %v7831_v41 }
 0x29b   : > { %v2371_v43 = vcombine.low %v2363_v14, %v2370_v6  ;;  %5070 = vmatpush3.msra.mxu1 %v3881_v58  ;;  %v3895_v6 = vld [vmem:[%s8794_s3 + $0x188] sm:$0xff]  ;;  %vm8884_vm8 = vmmov %vm8883_vm6 }
 0x29c   : > { %v7861_v39 = vrot.slane %v7853_v49, %v6068_v3  ;;  %v984_v37 = vpop.permute.xlu0 %983  ;;  %5071 = vmatprep.subr.mxu1 %v3896_v0 }
 0x29d   : > { %v1452_v4 = vsel %vm1422_vm10, %v1421_v53, %v984_v37  ;;  %5391 = vmatmul.mubr.msk.f32.gmra.mxu0 %vm8876_vm13, %v2371_v43  ;;  %v1267_v30 = vpop.permute.xlu1 %1266  ;;  %vm8877_vm10 = vcmask 228352   ;;  %5072 = vmatpush3.msra.mxu1 %v3880_v26  ;;  %v3894_v53 = vld [vmem:[%s8794_s3 + $0x180] sm:$0xff]  ;;  %v3973_v37 = vld [vmem:[%s8794_s3 + $0x3f8] sm:$0xff]  ;;  %v2844_v26 = vcombine.high %v7853_v49, %v7853_v49  ;;  %vm3065_vm13 = vcmp.ge.s32.totalorder %v6837_v9, 5 }
 0x29e   : > { %v3410_v14 = vrot.slane %v7861_v39, %v6068_v3  ;;  %v1483_v59 = vsel %vm1453_vm11, %v1452_v4, %v1077_v21  ;;  %5393 = vmatprep.mubr.msk.f32.mxu0 %vm8870_vm7, %v5572_v63  ;;  %v3879_v21 = vld [vmem:[%s8794_s3 + $0x108] sm:$0xff]  ;;  %vm8878_vm11 = vcmask 261120   ;;  %vm8879_vm7 = vcmask 1046528   ;;  %5073 = vmatprep.subr.mxu1 %v3895_v6  ;;  %v3878_v43 = vld [vmem:[%s8794_s3 + $0x100] sm:$0xff] }
 0x29f   : > { %5074 = vmatpush3.msra.mxu1 %v3879_v21  ;;  %v2859_v49 = vcombine.high %v7861_v39, %v7861_v39  ;;  %v3989_v21 = vld [vmem:[%s8794_s3 + $0x478] sm:$0xff]  ;;  %v3987_v39 = vld [vmem:[%s8794_s3 + $0x468] sm:$0xff] }
 0x2a0   : > { %v7886_v31 = vsel %vm3130_vm9, %v3410_v14, 0.0  ;;  %v1172_v52 = vpop.permute.xlu0 %1171  ;;  %5075 = vmatprep.subr.mxu1 %v3894_v53  ;;  %5396 = vmatprep.subr.mxu0 %v3989_v21  ;;  %vm3054_vm9 = vcmp.le.s32.totalorder %v6835_v18, 5 }
 0x2a1   : > { %v1514_v63 = vsel %vm8877_vm10, %v1483_v59, %v1172_v52  ;;  %v3723_v42 = vrot.slane %v7886_v31, 1  ;;  %5076 = vmatpush3.msra.mxu1 %v3878_v43  ;;  %vm7978_vm10 = vmand %vm3054_vm9, %vm3065_vm13  ;;  %vm8893_vm9 = vcmask 1045504  }
 0x2a2   : > { %v1545_v57 = vsel %vm8878_vm11, %v1514_v63, %v1267_v30  ;;  %5205 = vmatprep.subr.mxu1 %v3973_v37  ;;  %v3776_v63 = vrot.slane %v7750_v23, 2  ;;  %v3988_v23 = vld [vmem:[%s8794_s3 + $0x470] sm:$0xff]  ;;  %vm8887_vm11 = vcmp.ge.s32.totalorder %v6056_v60, 1 }
 0x2a3   : > { %v1985_v62 = vrot.slane %v1545_v57, %v6068_v3  ;;  %v7906_v41 = vsel %vm8879_vm7, %v3721_v40, %v3723_v42  ;;  %vm7995_vm7 = vmand %vm7978_vm10, %vm8887_vm11 }
 0x2a4   : > { %8880 = vst [vmem:[#allocation7_spill] sm:$0xff] %v7906_v41  ;;  %4106 = vmatprep.mubr.f32.mxu1 %v7906_v41  ;;  %vm8896_vm11 = vmmov %vm8893_vm9 }
 0x2a5   : > { %v2372_v27 = vcombine.low %v1978_v17, %v1985_v62  ;;  %v2557_v4 = vpop.f32.mrf.mxu0  ;;  %v5000_v58 = vpop.f32.mrf.mxu1  ;;  %4895 = vmatmul.mubr.msk.f32.gmra.mxu1 %vm7719_vm5, %v7744_v36 }
 0x2a6   : > { %v2558_v30 = vadd.f32 %v7483_v25, %v2557_v4  ;;  %v3986_v4 = vld [vmem:[%s8794_s3 + $0x460] sm:$0xff] }
 0x2a7   : > { %v2379_v40 = vrot.slane %v2372_v27, %v6068_v3  ;;  %v5365_v14 = vpop.f32.mrf.mxu0  ;;  %v5001_v59 = vpop.f32.mrf.mxu1 }
 0x2a8   : > { %v7919_v0 = vadd.f32 %v5001_v59, %v5000_v58  ;;  %v2623_v52 = vmax.f32 %v2558_v30, 0.0 }
 0x2a9   : > { %5394 = vmatmul.mubr.msk.f32.gmra.mxu0 %vm8882_vm0, %v2379_v40  ;;  %vm8890_vm0 = vcmp.le.s32.totalorder %v6995_v5, 16 }
 0x2aa   : > { %8881 = vst [vmem:[#allocation8_spill] sm:$0xff] %v7919_v0  ;;  %4351 = vmatprep.mubr.f32.mxu0 %v7288_v50  ;;  %v2868_v6 = vrot.slane %v2623_v52, %v6068_v3  ;;  %v2861_v42 = vcombine.high %v2623_v52, %v2623_v52 }
 0x2ac   : > { %v2875_v37 = vrot.slane %v2861_v42, %v6068_v3  ;;  %v2876_v27 = vcombine.high %v2868_v6, %v2868_v6  ;;  %v3983_v42 = vld [vmem:[%s8794_s3 + $0x448] sm:$0xff] }
 0x2ad   : > { %4352 = vmatmul.mubr.f32.vlgmr.msra.gmra.mxu0 %v7283_v56  ;;  %v2858_v56 = vrot.slane %v2844_v26, %v6068_v3 }
 0x2ae   : > { %4356 = vmatprep.mubr.f32.mxu0 %v7298_v28  ;;  %5397 = vmatpush3.msra.mxu0 %v3989_v21  ;;  %v3428_v26 = vcombine.low %v2876_v27, %v2875_v37  ;;  %v2877_v52 = vcombine.high %v2875_v37, %v2875_v37  ;;  %v3981_v37 = vld [vmem:[%s8794_s3 + $0x438] sm:$0xff] }
 0x2af   : > { %v2860_v17 = vcombine.high %v2858_v56, %v2858_v56  ;;  %5398 = vmatprep.subr.mxu0 %v3988_v23  ;;  %v3411_v43 = vcombine.low %v2859_v49, %v2858_v56 }
 0x2b0   : > { %5399 = vmatpush3.msra.mxu0 %v3988_v23 }
 0x2b1   : > { %4357 = vmatmul.mubr.f32.gmra.mxu0 %v7306_v1  ;;  %v3777_v1 = vrot.slane %v7764_v38, 2  ;;  %v3779_v38 = vrot.slane %v7886_v31, 2  ;;  %v3412_v53 = vcombine.low %v2860_v17, %v2868_v6  ;;  %5400 = vmatprep.subr.mxu0 %v3987_v39  ;;  %v3419_v30 = vrot.slane %v3411_v43, %v6068_v3  ;;  %v3984_v6 = vld [vmem:[%s8794_s3 + $0x450] sm:$0xff] }
 0x2b2   : > { %4361 = vmatprep.mubr.f32.mxu0 %v7553_v22  ;;  %5401 = vmatpush3.msra.mxu0 %v3987_v39  ;;  %v3982_v39 = vld [vmem:[%s8794_s3 + $0x440] sm:$0xff] }
 0x2b3   : > { %v7947_v57 = vsel %vm8883_vm6, %v3776_v63, %v3777_v1  ;;  %v7964_v40 = vsel %vm8884_vm8, %v3777_v1, %v3779_v38  ;;  %v3426_v14 = vrot.slane %v3412_v53, %v6068_v3  ;;  %5402 = vmatprep.subr.mxu0 %v3986_v4  ;;  %v3436_v38 = vrot.slane %v3428_v26, %v6068_v3  ;;  %vm3133_vm6 = vmand %vm7978_vm10, %vm8890_vm0  ;;  %v3980_v26 = vld [vmem:[%s8794_s3 + $0x430] sm:$0xff] }
 0x2b4   : > { %5403 = vmatpush3.msra.mxu0 %v3986_v4  ;;  %vm8891_vm8 = vcmask 1046528   ;;  %vm3055_vm0 = vcmp.le.s32.totalorder %v6835_v18, 6 }
 0x2b5   : > { %4362 = vmatmul.mubr.f32.gmra.mxu0 %v7550_v24  ;;  %v7986_v63 = vcombine.low %v3419_v30, %v3426_v14  ;;  %vm8894_vm13 = vmmov %vm8891_vm8 }
 0x2b6   : > { %4366 = vmatprep.mubr.f32.mxu0 %v7556_v15 }
 0x2b7   : > { %v3661_v43 = vsel %vm7995_vm7, %v7986_v63, 0.0 }
 0x2b9   : > { %4367 = vmatmul.mubr.f32.gmra.mxu0 %v7566_v13 }
 0x2ba   : > { %4371 = vmatprep.mubr.f32.mxu0 %v7697_v51 }
 0x2bd   : > { %4372 = vmatmul.mubr.f32.gmra.mxu0 %v7694_v8 }
 0x2be   : > { %4376 = vmatprep.mubr.f32.mxu0 %v7710_v11 }
 0x2c1   : > { %4377 = vmatmul.mubr.f32.gmra.mxu0 %v7706_v35 }
 0x2c2   : > { %4381 = vmatprep.mubr.f32.mxu0 %v7947_v57 }
 0x2c3   : > { %v2562_v62 = vpop.f32.mrf.mxu0 }
 0x2c4   : > { %v2563_v31 = vadd.f32 %v7483_v25, %v2562_v62  ;;  %v3985_v25 = vld [vmem:[%s8794_s3 + $0x458] sm:$0xff] }
 0x2c5   : > { %v5368_v58 = vpop.f32.mrf.mxu0  ;;  %4382 = vmatmul.mubr.f32.gmra.mxu0 %v7781_v45  ;;  %5404 = vmatprep.subr.mxu0 %v3985_v25 }
 0x2c6   : > { %v7969_v59 = vmax.f32 %v2563_v31, 0.0  ;;  %4386 = vmatprep.mubr.f32.mxu0 %v7964_v40  ;;  %5405 = vmatpush3.msra.mxu0 %v3985_v25  ;;  %v3725_v58 = vrot.slane %v3661_v43, 1  ;;  %v3781_v25 = vrot.slane %v3661_v43, 2 }
 0x2c7   : > { %5406 = vmatprep.subr.mxu0 %v3984_v6 }
 0x2c8   : > { %v2885_v56 = vrot.slane %v7969_v59, %v6068_v3  ;;  %5407 = vmatpush3.msra.mxu0 %v3984_v6 }
 0x2c9   : > { %4387 = vmatmul.mubr.f32.gmra.mxu0 %v7906_v41  ;;  %5408 = vmatprep.subr.mxu0 %v3983_v42 }
 0x2ca   : > { %v2893_v49 = vcombine.high %v2885_v56, %v2885_v56  ;;  %v3429_v17 = vcombine.low %v2877_v52, %v2885_v56  ;;  %5409 = vmatpush3.msra.mxu0 %v3983_v42 }
 0x2cb   : > { %5410 = vmatprep.subr.mxu0 %v3982_v39 }
 0x2cc   : > { %v3443_v23 = vrot.slane %v3429_v17, %v6068_v3  ;;  %v3451_v53 = vrot.slane %v2893_v49, %v6068_v3  ;;  %5411 = vmatpush3.msra.mxu0 %v3982_v39 }
 0x2cd   : > { %5412 = vmatprep.subr.mxu0 %v3981_v37 }
 0x2ce   : > { %v8009_v62 = vcombine.low %v3436_v38, %v3443_v23  ;;  %v3663_v31 = vsel %vm3133_vm6, %v3451_v53, 0.0  ;;  %5413 = vmatpush3.msra.mxu0 %v3981_v37  ;;  %v3979_v53 = vld [vmem:[%s8794_s3 + $0x428] sm:$0xff]  ;;  %v3978_v37 = vld [vmem:[%s8794_s3 + $0x420] sm:$0xff]  ;;  %vm3066_vm6 = vcmp.ge.s32.totalorder %v6837_v9, 6 }
 0x2cf   : > { %v3728_v49 = vrot.slane %v3663_v31, 1  ;;  %v3784_v17 = vrot.slane %v3663_v31, 2  ;;  %5414 = vmatprep.subr.mxu0 %v3980_v26  ;;  %v3977_v31 = vld [vmem:[%s8794_s3 + $0x418] sm:$0xff] }
 0x2d0   : > { %v3662_v27 = vsel %vm7978_vm10, %v8009_v62, 0.0  ;;  %5415 = vmatpush3.msra.mxu0 %v3980_v26  ;;  %v3974_v26 = vld [vmem:[%s8794_s3 + $0x400] sm:$0xff] }
 0x2d1   : > { %v2567_v4 = vpop.f32.mrf.mxu0  ;;  %v3726_v14 = vrot.slane %v3662_v27, 1  ;;  %v3782_v30 = vrot.slane %v3662_v27, 2  ;;  %5416 = vmatprep.subr.mxu0 %v3979_v53 }
 0x2d2   : > { %5417 = vmatpush3.msra.mxu0 %v3979_v53 }
 0x2d3   : > { %v5371_v52 = vpop.f32.mrf.mxu0  ;;  %v8024_v56 = vsel %vm8891_vm8, %v3725_v58, %v3726_v14  ;;  %v8027_v6 = vsel %vm8893_vm9, %v3781_v25, %v3782_v30  ;;  %v8036_v38 = vsel %vm8894_vm13, %v3726_v14, %v3728_v49  ;;  %v8039_v23 = vsel %vm8896_vm11, %v3782_v30, %v3784_v17  ;;  %5418 = vmatprep.subr.mxu0 %v3978_v37  ;;  %v3976_v25 = vld [vmem:[%s8794_s3 + $0x410] sm:$0xff]  ;;  %v3975_v30 = vld [vmem:[%s8794_s3 + $0x408] sm:$0xff]  ;;  %vm8087_vm8 = vmand %vm3055_vm0, %vm3066_vm6 }
 0x2d4   : > { %8892 = vst [vmem:[#allocation9_spill] sm:$0xff] %v8024_v56  ;;  %4111 = vmatprep.mubr.f32.mxu1 %v8024_v56  ;;  %4391 = vmatprep.mubr.f32.mxu0 %v8027_v6  ;;  %8895 = vst [vmem:[#allocation10_spill] sm:$0xff] %v8036_v38  ;;  %v8072_v52 = vld [vmem:[%s8793_s2] ss:$0 sm:$0xff]  ;;  %vm8901_vm9 = vcmp.ge.s32.totalorder %v6056_v60, 1  ;;  %vm8904_vm11 = vcmp.le.s32.totalorder %v6995_v5, 16 }
 0x2d5   : > { %v5003_v42 = vpop.f32.mrf.mxu1  ;;  %4896 = vmatmul.mubr.msk.f32.gmra.mxu1 %vm7995_vm7, %v7986_v63  ;;  %4392 = vmatmul.mubr.f32.gmra.mxu0 %v8024_v56  ;;  %v2568_v49 = vadd.f32 %v8072_v52, %v2567_v4  ;;  %vm8097_vm13 = vmand %vm8087_vm8, %vm8901_vm9  ;;  %vm8905_vm6 = vcmask 1046528   ;;  %vm8907_vm9 = vcmask 1045504  }
 0x2d6   : > { %4116 = vmatprep.mubr.f32.mxu1 %v8036_v38  ;;  %4396 = vmatprep.mubr.f32.mxu0 %v8039_v23  ;;  %vm3136_vm0 = vmand %vm8087_vm8, %vm8904_vm11 }
 0x2d7   : > { %v5004_v39 = vpop.f32.mrf.mxu1  ;;  %5419 = vmatpush3.msra.mxu0 %v3978_v37  ;;  %v2625_v17 = vmax.f32 %v2568_v49, 0.0  ;;  %vm8908_vm11 = vmmov %vm8905_vm6 }
 0x2d8   : > { %v8046_v43 = vadd.f32 %v5004_v39, %v5003_v42  ;;  %5420 = vmatprep.subr.mxu0 %v3977_v31  ;;  %v2878_v42 = vcombine.high %v7969_v59, %v7969_v59 }
 0x2d9   : > { %v5006_v27 = vpop.f32.mrf.mxu1  ;;  %4897 = vmatmul.mubr.msk.f32.gmra.mxu1 %vm7978_vm10, %v8009_v62  ;;  %4397 = vmatmul.mubr.f32.gmra.mxu0 %v8036_v38  ;;  %v2902_v53 = vrot.slane %v2625_v17, %v6068_v3  ;;  %v2895_v37 = vcombine.high %v2625_v17, %v2625_v17 }
 0x2da   : > { %8897 = vst [vmem:[#allocation11_spill] sm:$0xff] %v8046_v43  ;;  %5421 = vmatpush3.msra.mxu0 %v3977_v31  ;;  %v2892_v39 = vrot.slane %v2878_v42, %v6068_v3 }
 0x2db   : > { %v5007_v58 = vpop.f32.mrf.mxu1  ;;  %5422 = vmatprep.subr.mxu0 %v3976_v25 }
 0x2dc   : > { %v8058_v14 = vadd.f32 %v5007_v58, %v5006_v27  ;;  %5423 = vmatpush3.msra.mxu0 %v3976_v25  ;;  %v2910_v27 = vcombine.high %v2902_v53, %v2902_v53  ;;  %v2894_v31 = vcombine.high %v2892_v39, %v2892_v39  ;;  %v2909_v58 = vrot.slane %v2895_v37, %v6068_v3 }
 0x2dd   : > { %5424 = vmatprep.subr.mxu0 %v3975_v30 }
 0x2de   : > { %8898 = vst [vmem:[#allocation12_spill] sm:$0xff] %v8058_v14  ;;  %5425 = vmatpush3.msra.mxu0 %v3975_v30  ;;  %v3453_v30 = vcombine.low %v2902_v53, %v2910_v27  ;;  %v3452_v43 = vcombine.low %v2892_v39, %v2894_v31  ;;  %v8902_v31 = vmov 0 }
 0x2df   : > { %5426 = vmatprep.subr.mxu0 %v3974_v26  ;;  %v8903_v31 = vsel %vm8097_vm13, 4294967295, %v8902_v31 }
 0x2e0   : > { %5427 = vmatpush3.msra.mxu0 %v3974_v26  ;;  %v2911_v26 = vcombine.high %v2909_v58, %v2909_v58  ;;  %v3467_v59 = vrot.slane %v3453_v30, %v6068_v3  ;;  %v3460_v0 = vrot.slane %v3452_v43, %v6068_v3 }
 0x2e2   : > { %v3469_v37 = vcombine.low %v2909_v58, %v2911_v26 }
 0x2e4   : > { %v3477_v43 = vrot.slane %v3469_v37, %v6068_v3 }
 0x2f2   : > { %v2572_v25 = vpop.f32.mrf.mxu0 }
 0x2f3   : > { %v2573_v14 = vadd.f32 %v8072_v52, %v2572_v25  ;;  %v8899_v25 = vmov 0 }
 0x2f4   : > { %v5374_v4 = vpop.f32.mrf.mxu0  ;;  %v8900_v25 = vsel %vm8087_vm8, 4294967295, %v8899_v25 }
 0x2f5   : > { %v2626_v49 = vmax.f32 %v2573_v14, 0.0  ;;  %v8091_v14 = vcombine.low %v3460_v0, %v3467_v59 }
 0x2f7   : > { %v2912_v42 = vcombine.high %v2626_v49, %v2626_v49  ;;  %v2919_v17 = vrot.slane %v2626_v49, %v6068_v3  ;;  %v3664_v4 = vsel %vm8097_vm13, %v8091_v14, 0.0 }
 0x2f8   : > { %v3730_v37 = vrot.slane %v3664_v4, 1 }
 0x2f9   : > { %v2926_v53 = vrot.slane %v2912_v42, %v6068_v3  ;;  %v2927_v27 = vcombine.high %v2919_v17, %v2919_v17 }
 0x2fb   : > { %v3470_v39 = vcombine.low %v2919_v17, %v2927_v27  ;;  %v3492_v30 = vrot.slane %v2926_v53, %v6068_v3 }
 0x2fd   : > { %v3484_v58 = vrot.slane %v3470_v39, %v6068_v3  ;;  %v3666_v42 = vsel %vm3136_vm0, %v3492_v30, 0.0  ;;  %v3786_v39 = vrot.slane %v3664_v4, 2  ;;  %vm8910_vm0 = vmmov %vm8907_vm9 }
 0x2fe   : > { %v3733_v56 = vrot.slane %v3666_v42, 1  ;;  %v3789_v41 = vrot.slane %v3666_v42, 2 }
 0x2ff   : > { %v8108_v0 = vcombine.low %v3477_v43, %v3484_v58  ;;  %v2577_v26 = vpop.f32.mrf.mxu0 }
 0x300   : > { %v2578_v49 = vadd.f32 %v8072_v52, %v2577_v26 }
 0x301   : > { %v3665_v59 = vsel %vm8087_vm8, %v8108_v0, 0.0  ;;  %v5377_v17 = vpop.f32.mrf.mxu0 }
 0x302   : > { %v3731_v27 = vrot.slane %v3665_v59, 1  ;;  %v3787_v44 = vrot.slane %v3665_v59, 2  ;;  %v2627_v38 = vmax.f32 %v2578_v49, 0.0 }
 0x304   : > { %v8118_v43 = vsel %vm8905_vm6, %v3730_v37, %v3731_v27  ;;  %v8121_v58 = vsel %vm8907_vm9, %v3786_v39, %v3787_v44  ;;  %v2929_v26 = vcombine.high %v2627_v38, %v2627_v38  ;;  %v2936_v45 = vrot.slane %v2627_v38, %v6068_v3 }
 0x305   : > { %8906 = vst [vmem:[#allocation13_spill] sm:$0xff] %v8118_v43  ;;  %4121 = vmatprep.mubr.f32.mxu1 %v8118_v43  ;;  %4401 = vmatprep.mubr.f32.mxu0 %v8121_v58  ;;  %v8131_v4 = vsel %vm8908_vm11, %v3731_v27, %v3733_v56  ;;  %v8134_v49 = vsel %vm8910_vm0, %v3787_v44, %v3789_v41  ;;  %vm3056_vm6 = vcmp.le.s32.totalorder %v6835_v18, 7  ;;  %vm3067_vm9 = vcmp.ge.s32.totalorder %v6837_v9, 7 }
 0x306   : > { %v5009_v30 = vpop.f32.mrf.mxu1  ;;  %4898 = vmatmul.mubr.msk.f32.gmra.mxu1 %vm8097_vm13, %v8091_v14  ;;  %4402 = vmatmul.mubr.f32.gmra.mxu0 %v8118_v43  ;;  %8909 = vst [vmem:[#allocation14_spill] sm:$0xff] %v8131_v4  ;;  %v2943_v38 = vrot.slane %v2929_v26, %v6068_v3  ;;  %v2944_v59 = vcombine.high %v2936_v45, %v2936_v45  ;;  %vm8154_vm11 = vmand %vm3056_vm6, %vm3067_vm9  ;;  %vm8915_vm0 = vcmp.ge.s32.totalorder %v6056_v60, 1  ;;  %vm8918_vm6 = vcmp.le.s32.totalorder %v6995_v5, 16 }
 0x307   : > { %4126 = vmatprep.mubr.f32.mxu1 %v8131_v4  ;;  %4406 = vmatprep.mubr.f32.mxu0 %v8134_v49  ;;  %v2928_v44 = vcombine.high %v2926_v53, %v2926_v53  ;;  %vm3139_vm9 = vmand %vm8154_vm11, %vm8918_vm6  ;;  %vm8920_vm13 = vcmask 1045504  }
 0x308   : > { %v5010_v42 = vpop.f32.mrf.mxu1  ;;  %v3494_v41 = vcombine.low %v2944_v59, %v2943_v38 }
 0x309   : > { %v8139_v17 = vadd.f32 %v5010_v42, %v5009_v30  ;;  %v3493_v35 = vcombine.low %v2928_v44, %v2936_v45  ;;  %v2945_v42 = vcombine.high %v2943_v38, %v2943_v38 }
 0x30a   : > { %v5012_v37 = vpop.f32.mrf.mxu1  ;;  %4899 = vmatmul.mubr.msk.f32.gmra.mxu1 %vm8087_vm8, %v8108_v0  ;;  %4407 = vmatmul.mubr.f32.gmra.mxu0 %v8131_v4  ;;  %v3508_v30 = vrot.slane %v3494_v41, %v6068_v3  ;;  %vm8164_vm8 = vmand %vm8154_vm11, %vm8915_vm0  ;;  %vm8919_vm0 = vcmask 1046528  }
 0x30b   : > { %8911 = vst [vmem:[#allocation15_spill] sm:$0xff] %v8139_v17  ;;  %v2582_v56 = vpop.f32.mrf.mxu0  ;;  %v3501_v53 = vrot.slane %v3493_v35, %v6068_v3  ;;  %vm8921_vm6 = vmmov %vm8919_vm0 }
 0x30c   : > { %v2583_v27 = vadd.f32 %v8072_v52, %v2582_v56  ;;  %v5013_v39 = vpop.f32.mrf.mxu1  ;;  %v8949_v2 = vld [vmem:[#allocation13_spill] sm:$0xff] }
 0x30d   : > { %v8146_v43 = vadd.f32 %v5013_v39, %v5012_v37  ;;  %v5380_v26 = vpop.f32.mrf.mxu0  ;;  %v8158_v45 = vcombine.low %v3501_v53, %v3508_v30  ;;  %v8951_v55 = vld [vmem:[#allocation14_spill] sm:$0xff] }
 0x30e   : > { %v2628_v8 = vmax.f32 %v2583_v27, 0.0 }
 0x30f   : > { %8912 = vst [vmem:[#allocation16_spill] sm:$0xff] %v8146_v43  ;;  %v3667_v41 = vsel %vm8164_vm8, %v8158_v45, 0.0 }
 0x310   : > { %v2946_v17 = vcombine.high %v2628_v8, %v2628_v8  ;;  %v2953_v4 = vrot.slane %v2628_v8, %v6068_v3 }
 0x312   : > { %v2960_v59 = vrot.slane %v2946_v17, %v6068_v3  ;;  %v2961_v56 = vcombine.high %v2953_v4, %v2953_v4  ;;  %v3510_v37 = vcombine.low %v2945_v42, %v2953_v4  ;;  %v3735_v42 = vrot.slane %v3667_v41, 1 }
 0x314   : > { %v2962_v44 = vcombine.high %v2960_v59, %v2960_v59  ;;  %v3511_v27 = vcombine.low %v2961_v56, %v2960_v59  ;;  %v3518_v35 = vrot.slane %v3510_v37, %v6068_v3  ;;  %v3791_v59 = vrot.slane %v3667_v41, 2 }
 0x316   : > { %v3525_v4 = vrot.slane %v3511_v27, %v6068_v3  ;;  %v3533_v38 = vrot.slane %v2962_v44, %v6068_v3 }
 0x318   : > { %v8175_v17 = vcombine.low %v3518_v35, %v3525_v4  ;;  %v3669_v30 = vsel %vm3139_vm9, %v3533_v38, 0.0  ;;  %vm8922_vm9 = vmmov %vm8920_vm13 }
 0x319   : > { %v3738_v27 = vrot.slane %v3669_v30, 1  ;;  %v3794_v35 = vrot.slane %v3669_v30, 2  ;;  %v3957_v30 = vld [vmem:[%s8794_s3 + $0x378] sm:$0xff] }
 0x31a   : > { %v3668_v26 = vsel %vm8154_vm11, %v8175_v17, 0.0 }
 0x31b   : > { %v3736_v53 = vrot.slane %v3668_v26, 1  ;;  %v3792_v56 = vrot.slane %v3668_v26, 2 }
 0x31d   : > { %v8184_v37 = vsel %vm8919_vm0, %v3735_v42, %v3736_v53  ;;  %v8187_v44 = vsel %vm8920_vm13, %v3791_v59, %v3792_v56  ;;  %v8196_v4 = vsel %vm8921_vm6, %v3736_v53, %v3738_v27  ;;  %v8199_v38 = vsel %vm8922_vm9, %v3792_v56, %v3794_v35  ;;  %v3972_v53 = vld [vmem:[%s8794_s3 + $0x3f0] sm:$0xff]  ;;  %v3971_v27 = vld [vmem:[%s8794_s3 + $0x3e8] sm:$0xff] }
 0x31e   : > { %4131 = vmatprep.mubr.f32.mxu1 %v8184_v37  ;;  %4411 = vmatprep.mubr.f32.mxu0 %v8187_v44  ;;  %v3956_v56 = vld [vmem:[%s8794_s3 + $0x370] sm:$0xff]  ;;  %vm8925_vm0 = vcmp.ge.s32.totalorder %v6056_v60, 1 }
 0x31f   : > { %4900 = vmatmul.mubr.msk.f32.gmra.mxu1 %vm8164_vm8, %v8158_v45  ;;  %4412 = vmatmul.mubr.f32.gmra.mxu0 %v8184_v37 }
 0x320   : > { %4136 = vmatprep.mubr.f32.mxu1 %v8196_v4  ;;  %4416 = vmatprep.mubr.f32.mxu0 %v8199_v38 }
 0x323   : > { %4901 = vmatmul.mubr.msk.f32.gmra.mxu1 %vm8154_vm11, %v8175_v17  ;;  %4417 = vmatmul.mubr.f32.gmra.mxu0 %v8196_v4  ;;  %v2587_v41 = vpop.f32.mrf.mxu0 }
 0x324   : > { %4902 = vmatprep.mubr.msk.f32.mxu1 %vm7221_vm1, %v7211_v20  ;;  %v2588_v26 = vadd.f32 %v8072_v52, %v2587_v41  ;;  %v3954_v41 = vld [vmem:[%s8794_s3 + $0x360] sm:$0xff]  ;;  %vm3068_vm1 = vcmp.ge.s32.totalorder %v6837_v9, 8 }
 0x325   : > { %v5383_v42 = vpop.f32.mrf.mxu0 }
 0x326   : > { %v2629_v59 = vmax.f32 %v2588_v26, 0.0  ;;  %v3968_v42 = vld [vmem:[%s8794_s3 + $0x3d0] sm:$0xff] }
 0x327   : > { %4207 = vmatmul.mubr.f32.vlgmr.msra.gmra.mxu1 %v6933_v10  ;;  %v3955_v10 = vld [vmem:[%s8794_s3 + $0x368] sm:$0xff] }
 0x328   : > { %5206 = vmatpush3.msra.mxu1 %v3957_v30  ;;  %4903 = vmatprep.mubr.msk.f32.mxu1 %vm7205_vm12, %v7241_v34  ;;  %v2963_v20 = vcombine.high %v2629_v59, %v2629_v59  ;;  %v2970_v46 = vrot.slane %v2629_v59, %v6068_v3  ;;  %v3969_v30 = vld [vmem:[%s8794_s3 + $0x3d8] sm:$0xff]  ;;  %vm3057_vm12 = vcmp.le.s32.totalorder %v6835_v18, 8 }
 0x329   : > { %5207 = vmatprep.subr.mxu1 %v3972_v53  ;;  %vm8287_vm13 = vmand %vm3057_vm12, %vm3068_vm1  ;;  %vm8928_vm12 = vcmask 1046528   ;;  %vm8930_vm1 = vnez %v8903_v31 }
 0x32a   : > { %5208 = vmatpush3.msra.mxu1 %v3956_v56  ;;  %v2977_v35 = vrot.slane %v2963_v20, %v6068_v3  ;;  %v2978_v34 = vcombine.high %v2970_v46, %v2970_v46  ;;  %v3952_v56 = vld [vmem:[%s8794_s3 + $0x350] sm:$0xff]  ;;  %vm8310_vm6 = vmand %vm8287_vm13, %vm8925_vm0  ;;  %vm8931_vm0 = vnez %v8900_v25 }
 0x32b   : > { %4212 = vmatmul.mubr.f32.gmra.mxu1 %v7062_v7  ;;  %5209 = vmatprep.subr.mxu1 %v3971_v27  ;;  %v3953_v7 = vld [vmem:[%s8794_s3 + $0x358] sm:$0xff] }
 0x32c   : > { %v2979_v26 = vcombine.high %v2977_v35, %v2977_v35  ;;  %4904 = vmatprep.mubr.msk.f32.mxu1 %vm7519_vm2, %v7509_v61  ;;  %5210 = vmatpush3.msra.mxu1 %v3955_v10  ;;  %v3534_v53 = vcombine.low %v2970_v46, %v2978_v34  ;;  %v3967_v46 = vld [vmem:[%s8794_s3 + $0x3c8] sm:$0xff] }
 0x32d   : > { %5211 = vmatprep.subr.mxu1 %v3970_v16  ;;  %v3951_v10 = vld [vmem:[%s8794_s3 + $0x348] sm:$0xff] }
 0x32e   : > { %5212 = vmatpush3.msra.mxu1 %v3954_v41  ;;  %v3535_v20 = vcombine.low %v2977_v35, %v2979_v26  ;;  %v3966_v35 = vld [vmem:[%s8794_s3 + $0x3c0] sm:$0xff]  ;;  %v3542_v34 = vrot.slane %v3534_v53, %v6068_v3 }
 0x32f   : > { %4217 = vmatmul.mubr.f32.gmra.mxu1 %v7288_v50  ;;  %v2592_v59 = vpop.f32.mrf.mxu0  ;;  %5213 = vmatprep.subr.mxu1 %v3969_v30  ;;  %v3950_v41 = vld [vmem:[%s8794_s3 + $0x340] sm:$0xff] }
 0x330   : > { %v2593_v27 = vadd.f32 %v8072_v52, %v2592_v59  ;;  %4905 = vmatprep.mubr.msk.f32.mxu1 %vm7500_vm3, %v7536_v48  ;;  %5214 = vmatpush3.msra.mxu1 %v3953_v7  ;;  %v3549_v26 = vrot.slane %v3535_v20, %v6068_v3  ;;  %v3964_v20 = vld [vmem:[%s8794_s3 + $0x3b0] sm:$0xff] }
 0x331   : > { %5215 = vmatprep.subr.mxu1 %v3968_v42  ;;  %v5386_v50 = vpop.f32.mrf.mxu0  ;;  %v3949_v42 = vld [vmem:[%s8794_s3 + $0x338] sm:$0xff] }
 0x332   : > { %v2630_v16 = vmax.f32 %v2593_v27, 0.0  ;;  %5216 = vmatpush3.msra.mxu1 %v3952_v56  ;;  %v8298_v50 = vcombine.low %v3542_v34, %v3549_v26  ;;  %v3947_v34 = vld [vmem:[%s8794_s3 + $0x328] sm:$0xff] }
 0x333   : > { %4222 = vmatmul.mubr.f32.gmra.mxu1 %v7298_v28  ;;  %5217 = vmatprep.subr.mxu1 %v3967_v46  ;;  %v3965_v28 = vld [vmem:[%s8794_s3 + $0x3b8] sm:$0xff]  ;;  %v3948_v46 = vld [vmem:[%s8794_s3 + $0x330] sm:$0xff] }
 0x334   : > { %v2980_v30 = vcombine.high %v2630_v16, %v2630_v16  ;;  %v2987_v7 = vrot.slane %v2630_v16, %v6068_v3  ;;  %4906 = vmatprep.mubr.msk.f32.mxu1 %vm7653_vm4, %v7644_v54  ;;  %5218 = vmatpush3.msra.mxu1 %v3951_v10 }
 0x335   : > { %5219 = vmatprep.subr.mxu1 %v3966_v35  ;;  %v3963_v35 = vld [vmem:[%s8794_s3 + $0x3a8] sm:$0xff] }
 0x336   : > { %v2994_v53 = vrot.slane %v2980_v30, %v6068_v3  ;;  %v2995_v59 = vcombine.high %v2987_v7, %v2987_v7  ;;  %5220 = vmatpush3.msra.mxu1 %v3950_v41  ;;  %v5015_v27 = vpop.f32.mrf.mxu1 }
 0x337   : > { %4227 = vmatmul.mubr.f32.gmra.mxu1 %v7553_v22  ;;  %5221 = vmatprep.subr.mxu1 %v3965_v28 }
 0x338   : > { %v2996_v10 = vcombine.high %v2994_v53, %v2994_v53  ;;  %v3551_v16 = vcombine.low %v2987_v7, %v2995_v59  ;;  %4907 = vmatprep.mubr.msk.f32.mxu1 %vm7640_vm15, %v7670_v32  ;;  %5222 = vmatpush3.msra.mxu1 %v3949_v42  ;;  %v5016_v41 = vpop.f32.mrf.mxu1  ;;  %v3962_v42 = vld [vmem:[%s8794_s3 + $0x3a0] sm:$0xff] }
 0x339   : > { %5223 = vmatprep.subr.mxu1 %v3964_v20  ;;  %v8318_v28 = vadd.f32 %v5016_v41, %v5015_v27  ;;  %v3946_v20 = vld [vmem:[%s8794_s3 + $0x320] sm:$0xff]  ;;  %v3961_v27 = vld [vmem:[%s8794_s3 + $0x398] sm:$0xff]  ;;  %v3960_v41 = vld [vmem:[%s8794_s3 + $0x390] sm:$0xff] }
 0x33a   : > { %v3552_v26 = vcombine.low %v2994_v53, %v2996_v10  ;;  %v3559_v7 = vrot.slane %v3551_v16, %v6068_v3  ;;  %5224 = vmatpush3.msra.mxu1 %v3948_v46  ;;  %v5018_v59 = vpop.f32.mrf.mxu1  ;;  %v3670_v53 = vsel %vm8310_vm6, %v8298_v50, 0.0  ;;  %v3945_v10 = vld [vmem:[%s8794_s3 + $0x318] sm:$0xff] }
 0x33b   : > { %4232 = vmatmul.mubr.f32.gmra.mxu1 %v7556_v15  ;;  %5225 = vmatprep.subr.mxu1 %v3963_v35 }
 0x33c   : > { %v3566_v43 = vrot.slane %v3552_v26, %v6068_v3  ;;  %4908 = vmatprep.mubr.msk.f32.mxu1 %vm7735_vm14, %v7723_v47  ;;  %5226 = vmatpush3.msra.mxu1 %v3947_v34  ;;  %v5019_v46 = vpop.f32.mrf.mxu1  ;;  %v3822_v34 = vrot.slane %v3670_v53, 2  ;;  %v3815_v26 = vrot.slane %v3670_v53, 1  ;;  %v3943_v53 = vld [vmem:[%s8794_s3 + $0x308] sm:$0xff] }
 0x33d   : > { %5227 = vmatprep.subr.mxu1 %v3962_v42  ;;  %v8342_v35 = vadd.f32 %v5019_v46, %v5018_v59  ;;  %v3944_v42 = vld [vmem:[%s8794_s3 + $0x310] sm:$0xff] }
 0x33e   : > { %v8340_v16 = vcombine.low %v3559_v7, %v3566_v43  ;;  %5228 = vmatpush3.msra.mxu1 %v3946_v20  ;;  %v3959_v7 = vld [vmem:[%s8794_s3 + $0x388] sm:$0xff] }
 0x33f   : > { %4237 = vmatmul.mubr.f32.gmra.mxu1 %v7697_v51  ;;  %5229 = vmatprep.subr.mxu1 %v3961_v27 }
 0x340   : > { %4909 = vmatprep.mubr.msk.f32.mxu1 %vm7719_vm5, %v7744_v36  ;;  %v3671_v43 = vsel %vm8287_vm13, %v8340_v16, 0.0  ;;  %5230 = vmatpush3.msra.mxu1 %v3945_v10  ;;  %v3958_v10 = vld [vmem:[%s8794_s3 + $0x380] sm:$0xff] }
 0x341   : > { %v3823_v59 = vrot.slane %v3671_v43, 2  ;;  %v3816_v20 = vrot.slane %v3671_v43, 1  ;;  %5231 = vmatprep.subr.mxu1 %v3960_v41 }
 0x342   : > { %5232 = vmatpush3.msra.mxu1 %v3944_v42 }
 0x343   : > { %4242 = vmatmul.mubr.f32.gmra.mxu1 %v7710_v11  ;;  %v8365_v27 = vsel %vm8922_vm9, %v3822_v34, %v3823_v59  ;;  %v8368_v46 = vsel %vm8928_vm12, %v3815_v26, %v3816_v20  ;;  %5233 = vmatprep.subr.mxu1 %v3959_v7  ;;  %v3942_v34 = vld [vmem:[%s8794_s3 + $0x300] sm:$0xff]  ;;  %vm8932_vm9 = vcmp.le.s32.totalorder %v6995_v5, 16 }
 0x344   : > { %4910 = vmatprep.mubr.msk.f32.mxu1 %vm7995_vm7, %v7986_v63  ;;  %4421 = vmatprep.mubr.f32.mxu0 %v8365_v27  ;;  %vm3142_vm12 = vmand %vm8287_vm13, %vm8932_vm9 }
 0x345   : > { %v5021_v41 = vpop.f32.mrf.mxu1  ;;  %4422 = vmatmul.mubr.f32.gmra.mxu0 %v8368_v46  ;;  %5234 = vmatpush3.msra.mxu1 %v3943_v53 }
 0x346   : > { %5235 = vmatprep.subr.mxu1 %v3958_v10 }
 0x347   : > { %v5022_v26 = vpop.f32.mrf.mxu1  ;;  %4247 = vmatmul.mubr.f32.gmra.mxu1 %v7947_v57 }
 0x348   : > { %v8382_v42 = vadd.f32 %v5022_v26, %v5021_v41  ;;  %4911 = vmatprep.mubr.msk.f32.mxu1 %vm7978_vm10, %v8009_v62  ;;  %5236 = vmatpush3.msra.mxu1 %v3942_v34 }
 0x34a   : > { %8929 = vst [vmem:[#allocation17_spill] sm:$0xff] %v8382_v42 }
 0x34b   : > { %v2597_v43 = vpop.f32.mrf.mxu0  ;;  %4252 = vmatmul.mubr.f32.gmra.mxu1 %v7964_v40 }
 0x34c   : > { %v2598_v7 = vadd.f32 %v8072_v52, %v2597_v43  ;;  %4912 = vmatprep.mubr.msk.f32.mxu1 %vm8930_vm1, %v8091_v14  ;;  %vm8933_vm1 = vcmask 1045504  }
 0x34d   : > { %v5389_v53 = vpop.f32.mrf.mxu0 }
 0x34e   : > { %v2631_v10 = vmax.f32 %v2598_v7, 0.0 }
 0x34f   : > { %4257 = vmatmul.mubr.f32.gmra.mxu1 %v8027_v6 }
 0x350   : > { %v3004_v41 = vrot.slane %v2631_v10, %v6068_v3  ;;  %4913 = vmatprep.mubr.msk.f32.mxu1 %vm8931_vm0, %v8108_v0  ;;  %vm8934_vm0 = vcmask 1046528  }
 0x352   : > { %v3574_v34 = vrot.slane %v3004_v41, %v6068_v3 }
 0x353   : > { %4262 = vmatmul.mubr.f32.gmra.mxu1 %v8039_v23 }
 0x354   : > { %v3672_v26 = vsel %vm3142_vm12, %v3574_v34, 0.0  ;;  %4914 = vmatprep.mubr.msk.f32.mxu1 %vm8164_vm8, %v8158_v45  ;;  %v2997_v34 = vcombine.high %v2631_v10, %v2631_v10  ;;  %vm8942_vm12 = vcmp.le.s32.totalorder %v6995_v5, 16 }
 0x355   : > { %v3825_v43 = vrot.slane %v3672_v26, 2  ;;  %v3818_v7 = vrot.slane %v3672_v26, 1 }
 0x357   : > { %4267 = vmatmul.mubr.f32.gmra.mxu1 %v8121_v58  ;;  %v8408_v53 = vsel %vm8933_vm1, %v3823_v59, %v3825_v43  ;;  %v8411_v42 = vsel %vm8934_vm0, %v3816_v20, %v3818_v7  ;;  %v3011_v43 = vrot.slane %v2997_v34, %v6068_v3  ;;  %v3012_v7 = vcombine.high %v3004_v41, %v3004_v41 }
 0x358   : > { %4915 = vmatprep.mubr.msk.f32.mxu1 %vm8154_vm11, %v8175_v17  ;;  %4426 = vmatprep.mubr.f32.mxu0 %v8408_v53  ;;  %vm3058_vm1 = vcmp.le.s32.totalorder %v6835_v18, 9  ;;  %vm3069_vm0 = vcmp.ge.s32.totalorder %v6837_v9, 9 }
 0x359   : > { %4427 = vmatmul.mubr.f32.gmra.mxu0 %v8411_v42 }
 0x35a   : > { %5428 = vmatprep.mubr.f32.mxu0 %v7553_v22 }
 0x35b   : > { %4272 = vmatmul.mubr.f32.gmra.mxu1 %v8134_v49 }
 0x35c   : > { %4916 = vmatprep.mubr.msk.f32.mxu1 %vm8310_vm6, %v8298_v50 }
 0x35d   : > { %v2602_v59 = vpop.f32.mrf.mxu0  ;;  %5429 = vmatmul.mubr.f32.vlgmr.msra.gmra.mxu0 %v7556_v15  ;;  %v3013_v15 = vcombine.high %v3011_v43, %v3011_v43 }
 0x35e   : > { %v2603_v20 = vadd.f32 %v8072_v52, %v2602_v59  ;;  %5431 = vmatprep.mubr.f32.mxu0 %v7697_v51 }
 0x35f   : > { %v5392_v26 = vpop.f32.mrf.mxu0  ;;  %4277 = vmatmul.mubr.f32.gmra.mxu1 %v8187_v44 }
 0x360   : > { %v2632_v22 = vmax.f32 %v2603_v20, 0.0  ;;  %4917 = vmatprep.mubr.msk.f32.mxu1 %vm8287_vm13, %v8340_v16 }
 0x361   : > { %5432 = vmatmul.mubr.f32.gmra.mxu0 %v7710_v11 }
 0x362   : > { %5434 = vmatprep.mubr.f32.mxu0 %v7947_v57  ;;  %v3021_v10 = vrot.slane %v2632_v22, %v6068_v3  ;;  %v3014_v34 = vcombine.high %v2632_v22, %v2632_v22 }
 0x363   : > { %4282 = vmatmul.mubr.f32.gmra.mxu1 %v8199_v38 }
 0x364   : > { %4496 = vmatprep.mubr.f32.mxu1 %v7550_v24  ;;  %v3576_v11 = vcombine.low %v3013_v15, %v3021_v10  ;;  %v3575_v24 = vcombine.low %v3012_v7, %v3011_v43  ;;  %v8943_v15 = vld [vmem:[#allocation5_spill] sm:$0xff] }
 0x365   : > { %v5024_v51 = vpop.f32.mrf.mxu1  ;;  %5435 = vmatmul.mubr.f32.gmra.mxu0 %v7964_v40  ;;  %v3028_v40 = vrot.slane %v3014_v34, %v6068_v3 }
 0x366   : > { %5437 = vmatprep.mubr.f32.mxu0 %v8027_v6  ;;  %v3029_v6 = vcombine.high %v3021_v10, %v3021_v10  ;;  %v3590_v29 = vrot.slane %v3576_v11, %v6068_v3  ;;  %v3583_v9 = vrot.slane %v3575_v24, %v6068_v3 }
 0x367   : > { %v5025_v59 = vpop.f32.mrf.mxu1  ;;  %4918 = vmatmul.mubr.msk.f32.vlgmr.msra.gmra.mxu1 %vm7519_vm2, %v7509_v61  ;;  %vm8456_vm2 = vmand %vm3058_vm1, %vm3069_vm0 }
 0x368   : > { %v8441_v57 = vadd.f32 %v5025_v59, %v5024_v51  ;;  %4501 = vmatprep.mubr.f32.mxu1 %v7566_v13  ;;  %v3591_v19 = vcombine.low %v3583_v9, %v3590_v29 }
 0x369   : > { %v2607_v20 = vpop.f32.mrf.mxu0  ;;  %5438 = vmatmul.mubr.f32.gmra.mxu0 %v8039_v23  ;;  %v8935_v23 = vld [vmem:[#allocation3_spill] sm:$0xff] }
 0x36a   : > { %v2608_v41 = vadd.f32 %v8072_v52, %v2607_v20  ;;  %5440 = vmatprep.mubr.f32.mxu0 %v8121_v58  ;;  %v3592_v52 = vcombine.low %v3029_v6, %v3028_v40  ;;  %v3030_v58 = vcombine.high %v3028_v40, %v3028_v40 }
 0x36b   : > { %v5395_v61 = vpop.f32.mrf.mxu0  ;;  %4919 = vmatmul.mubr.msk.f32.gmra.mxu1 %vm7500_vm3, %v7536_v48  ;;  %vm8939_vm3 = vcmp.ge.s32.totalorder %v6056_v60, 1 }
 0x36c   : > { %v2633_v13 = vmax.f32 %v2608_v41, 0.0  ;;  %4506 = vmatprep.mubr.f32.mxu1 %v8935_v23  ;;  %vm8471_vm9 = vmand %vm8456_vm2, %vm8939_vm3 }
 0x36d   : > { %5441 = vmatmul.mubr.f32.gmra.mxu0 %v8134_v49  ;;  %v8938_v49 = vld [vmem:[#allocation4_spill] sm:$0xff]  ;;  %v3673_v5 = vsel %vm8471_vm9, %v3591_v19, 0.0  ;;  %v8544_v8 = vpop.f32.mrf.mxu0 }
 0x36e   : > { %v3037_v26 = vrot.slane %v2633_v13, %v6068_v3  ;;  %5443 = vmatprep.mubr.f32.mxu0 %v8187_v44 }
 0x36f   : > { %4920 = vmatmul.mubr.msk.f32.gmra.mxu1 %vm7653_vm4, %v7644_v54  ;;  %vm3145_vm4 = vmand %vm8456_vm2, %vm8942_vm12  ;;  %v3600_v54 = vrot.slane %v3592_v52, %v6068_v3 }
 0x370   : > { %v3038_v48 = vcombine.high %v3037_v26, %v3037_v26  ;;  %v3593_v43 = vcombine.low %v3030_v58, %v3037_v26  ;;  %4511 = vmatprep.mubr.f32.mxu1 %v8938_v49 }
 0x371   : > { %5444 = vmatmul.mubr.f32.gmra.mxu0 %v8199_v38 }
 0x372   : > { %v3607_v33 = vrot.slane %v3593_v43, %v6068_v3  ;;  %v3615_v44 = vrot.slane %v3038_v48, %v6068_v3  ;;  %5446 = vmatprep.mubr.f32.mxu0 %v8365_v27  ;;  %v3839_v3 = vrot.slane %v3673_v5, 2 }
 0x373   : > { %4921 = vmatmul.mubr.msk.f32.gmra.mxu1 %vm7640_vm15, %v7670_v32  ;;  %v8944_v32 = vld [vmem:[#allocation7_spill] sm:$0xff]  ;;  %vm8945_vm15 = vcmask 1045504  }
 0x374   : > { %v3608_v60 = vcombine.low %v3600_v54, %v3607_v33  ;;  %4516 = vmatprep.mubr.f32.mxu1 %v8943_v15  ;;  %v3675_v38 = vsel %vm3145_vm4, %v3615_v44, 0.0  ;;  %vm8946_vm1 = vmmov %vm8945_vm15 }
 0x375   : > { %5447 = vmatmul.mubr.f32.gmra.mxu0 %v8408_v53  ;;  %v3842_v10 = vrot.slane %v3675_v38, 2  ;;  %v8947_v53 = vld [vmem:[#allocation9_spill] sm:$0xff] }
 0x376   : > { %v3674_v51 = vsel %vm8456_vm2, %v3608_v60, 0.0 }
 0x377   : > { %4922 = vmatmul.mubr.msk.f32.gmra.mxu1 %vm7735_vm14, %v7723_v47  ;;  %v3840_v12 = vrot.slane %v3674_v51, 2  ;;  %v8948_v47 = vld [vmem:[#allocation10_spill] sm:$0xff]  ;;  %vm8950_vm14 = vnez %v8903_v31 }
 0x378   : > { %4521 = vmatprep.mubr.f32.mxu1 %v8944_v32 }
 0x379   : > { %v3841_v27 = vsel %vm8945_vm15, %v3839_v3, %v3840_v12  ;;  %v3843_v7 = vsel %vm8946_vm1, %v3840_v12, %v3842_v10 }
 0x37a   : > { %5449 = vmatprep.mubr.f32.mxu0 %v3841_v27 }
 0x37b   : > { %4923 = vmatmul.mubr.msk.f32.gmra.mxu1 %vm7719_vm5, %v7744_v36  ;;  %5450 = vmatmul.mubr.f32.gmra.mxu0 %v3843_v7  ;;  %vm8952_vm5 = vnez %v8900_v25  ;;  %v3832_v25 = vrot.slane %v3673_v5, 1 }
 0x37c   : > { %4526 = vmatprep.mubr.f32.mxu1 %v8947_v53 }
 0x37f   : > { %4924 = vmatmul.mubr.msk.f32.gmra.mxu1 %vm7995_vm7, %v7986_v63  ;;  %v3833_v63 = vrot.slane %v3674_v51, 1 }
 0x380   : > { %4531 = vmatprep.mubr.f32.mxu1 %v8948_v47 }
 0x383   : > { %4925 = vmatmul.mubr.msk.f32.gmra.mxu1 %vm7978_vm10, %v8009_v62  ;;  %vm8953_vm10 = vcmask 1046528  }
 0x384   : > { %4536 = vmatprep.mubr.f32.mxu1 %v8949_v2  ;;  %v3834_v31 = vsel %vm8953_vm10, %v3832_v25, %v3833_v63  ;;  %vm8955_vm7 = vmmov %vm8953_vm10 }
 0x387   : > { %4926 = vmatmul.mubr.msk.f32.gmra.mxu1 %vm8950_vm14, %v8091_v14 }
 0x388   : > { %4541 = vmatprep.mubr.f32.mxu1 %v8951_v55 }
 0x38b   : > { %4927 = vmatmul.mubr.msk.f32.gmra.mxu1 %vm8952_vm5, %v8108_v0  ;;  %v3835_v0 = vrot.slane %v3675_v38, 1 }
 0x38c   : > { %4546 = vmatprep.mubr.f32.mxu1 %v8184_v37 }
 0x38f   : > { %4928 = vmatmul.mubr.msk.f32.gmra.mxu1 %vm8164_vm8, %v8158_v45  ;;  %v3836_v45 = vsel %vm8955_vm7, %v3833_v63, %v3835_v0 }
 0x390   : > { %4551 = vmatprep.mubr.f32.mxu1 %v8196_v4 }
 0x393   : > { %4929 = vmatmul.mubr.msk.f32.gmra.mxu1 %vm8154_vm11, %v8175_v17  ;;  %v8546_v17 = vpop.f32.mrf.mxu0 }
 0x394   : > { %4556 = vmatprep.mubr.f32.mxu1 %v8368_v46 }
 0x395   : > { %v5027_v36 = vpop.f32.mrf.mxu1  ;;  %v8548_v37 = vpop.f32.mrf.mxu0 }
 0x397   : > { %v5028_v1 = vpop.f32.mrf.mxu1  ;;  %4930 = vmatmul.mubr.msk.f32.gmra.mxu1 %vm8310_vm6, %v8298_v50  ;;  %v8550_v4 = vpop.f32.mrf.mxu0 }
 0x398   : > { %v8530_v21 = vadd.f32 %v5028_v1, %v5027_v36  ;;  %4561 = vmatprep.mubr.f32.mxu1 %v8411_v42 }
 0x399   : > { %v5030_v62 = vpop.f32.mrf.mxu1  ;;  %v8552_v56 = vpop.f32.mrf.mxu0 }
 0x39b   : > { %v5031_v14 = vpop.f32.mrf.mxu1  ;;  %4931 = vmatmul.mubr.msk.f32.gmra.mxu1 %vm8287_vm13, %v8340_v16  ;;  %v8554_v30 = vpop.f32.mrf.mxu0 }
 0x39c   : > { %v8537_v39 = vadd.f32 %v5031_v14, %v5030_v62  ;;  %4566 = vmatprep.mubr.f32.mxu1 %v3834_v31 }
 0x39d   : > { %v8558_v34 = vpop.f32.mrf.mxu0 }
 0x39e   : > { %8954 = vst [vmem:[#allocation3_spill] sm:$0xff] %v8537_v39 }
 0x39f   : > { %4932 = vmatmul.mubr.msk.f32.gmra.mxu1 %vm8471_vm9, %v3591_v19  ;;  %v8562_v20 = vpop.f32.mrf.mxu0 }
 0x3a0   : > { %4571 = vmatprep.mubr.f32.mxu1 %v3836_v45 }
 0x3a1   : > { %v8564_v24 = vpop.f32.mrf.mxu0 }
 0x3a3   : > { %4933 = vmatmul.mubr.msk.f32.gmra.mxu1 %vm8456_vm2, %v3608_v60  ;;  %v8566_v40 = vpop.f32.mrf.mxu0 }
 0x3a5   : > { %v8568_v6 = vpop.f32.mrf.mxu0 }
 0x3a7   : > { %v8570_v41 = vpop.f32.mrf.mxu0 }
 0x3a9   : > { %v8574_v23 = vpop.f32.mrf.mxu0 }
 0x3ab   : > { %v8578_v58 = vpop.f32.mrf.mxu0 }
 0x3ad   : > { %v8580_v48 = vpop.f32.mrf.mxu0 }
 0x3af   : > { %v8582_v22 = vpop.f32.mrf.mxu0 }
 0x3b1   : > { %v8584_v33 = vpop.f32.mrf.mxu0 }
 0x3b3   : > { %v8588_v15 = vpop.f32.mrf.mxu0 }
 0x3b5   : > { %v8592_v10 = vpop.f32.mrf.mxu0 }
 0x3b7   : > { %v8598_v12 = vpop.f32.mrf.mxu0 }
 0x3c6   : > { %v5033_v50 = vpop.f32.mrf.mxu1  ;;  %v8602_v27 = vpop.f32.mrf.mxu0 }
 0x3c7   : > { %8960 = vst [vmem:[#allocation10_spill] sm:$0xff] %v8602_v27 }
 0x3c8   : > { %v5034_v16 = vpop.f32.mrf.mxu1  ;;  %v8608_v47 = vpop.f32.mrf.mxu0 }
 0x3c9   : > { %v8556_v46 = vadd.f32 %v5034_v16, %v5033_v50  ;;  %8961 = vst [vmem:[#allocation13_spill] sm:$0xff] %v8608_v47 }
 0x3ca   : > { %v5036_v42 = vpop.f32.mrf.mxu1  ;;  %v8614_v36 = vpop.f32.mrf.mxu0 }
 0x3cb   : > { %8956 = vst [vmem:[#allocation4_spill] sm:$0xff] %v8556_v46  ;;  %8962 = vst [vmem:[#allocation14_spill] sm:$0xff] %v8614_v36 }
 0x3cc   : > { %v5037_v59 = vpop.f32.mrf.mxu1  ;;  %v8620_v62 = vpop.f32.mrf.mxu0 }
 0x3cd   : > { %v8560_v11 = vadd.f32 %v5037_v59, %v5036_v42  ;;  %8963 = vst [vmem:[#allocation18_spill] sm:$0xff] %v8620_v62 }
 0x3cf   : > { %8957 = vst [vmem:[#allocation5_spill] sm:$0xff] %v8560_v11 }
 0x3df   : > { %v5039_v61 = vpop.f32.mrf.mxu1  ;;  %v8624_v14 = vpop.f32.mrf.mxu0 }
 0x3e0   : > { %8964 = vst [vmem:[#allocation19_spill] sm:$0xff] %v8624_v14 }
 0x3e1   : > { %v5040_v29 = vpop.f32.mrf.mxu1  ;;  %v8630_v45 = vpop.f32.mrf.mxu0 }
 0x3e2   : > { %v8572_v13 = vadd.f32 %v5040_v29, %v5039_v61  ;;  %8965 = vst [vmem:[#allocation20_spill] sm:$0xff] %v8630_v45 }
 0x3e3   : > { %v5042_v18 = vpop.f32.mrf.mxu1  ;;  %v8636_v42 = vpop.f32.mrf.mxu0 }
 0x3e4   : > { %8958 = vst [vmem:[#allocation7_spill] sm:$0xff] %v8572_v13  ;;  %8966 = vst [vmem:[#allocation21_spill] sm:$0xff] %v8636_v42  ;;  %v8659_v42 = vld [vmem:[%s8795_s4] ss:$0 sm:$0xff] }
 0x3e5   : > { %v5043_v9 = vpop.f32.mrf.mxu1  ;;  %v8642_v29 = vpop.f32.mrf.mxu0 }
 0x3e6   : > { %v8576_v52 = vadd.f32 %v5043_v9, %v5042_v18  ;;  %8969 = vst [vmem:[#allocation24_spill] sm:$0xff] %v8642_v29 }
 0x3e7   : > { %v5077_v26 = vpop.f32.mrf.mxu1 }
 0x3e8   : > { %8959 = vst [vmem:[#allocation9_spill] sm:$0xff] %v8576_v52 }
 0x3e9   : > { %v5078_v19 = vpop.f32.mrf.mxu1 }
 0x3ea   : > { %v5079_v62 = vadd.f32 %v5078_v19, %v5077_v26 }
 0x3eb   : > { %v5080_v43 = vpop.f32.mrf.mxu1 }
 0x3ed   : > { %v5081_v49 = vpop.f32.mrf.mxu1 }
 0x3ef   : > { %v5083_v54 = vpop.f32.mrf.mxu1 }
 0x3f1   : > { %v5084_v44 = vpop.f32.mrf.mxu1 }
 0x3f3   : > { %v8586_v60 = vpop.f32.mrf.mxu1 }
 0x3f5   : > { %v5087_v5 = vpop.f32.mrf.mxu1 }
 0x3f7   : > { %v8590_v38 = vpop.f32.mrf.mxu1 }
 0x3f9   : > { %v8594_v51 = vpop.f32.mrf.mxu1 }
 0x3fb   : > { %v8596_v3 = vpop.f32.mrf.mxu1 }
 0x3fd   : > { %v8600_v32 = vpop.f32.mrf.mxu1 }
 0x3ff   : > { %v8604_v7 = vpop.f32.mrf.mxu1 }
 0x401   : > { %v8606_v53 = vpop.f32.mrf.mxu1 }
 0x403   : > { %v8610_v2 = vpop.f32.mrf.mxu1 }
 0x405   : > { %v8612_v55 = vpop.f32.mrf.mxu1  ;;  %v8646_v9 = vpop.f32.mrf.mxu0 }
 0x406   : > { %8971 = vst [vmem:[#allocation26_spill] sm:$0xff] %v8646_v9  ;;  %v8979_v9 = vld [vmem:[#allocation6_spill] sm:$0xff] }
 0x407   : > { %v8616_v1 = vpop.f32.mrf.mxu1  ;;  %v8652_v45 = vpop.f32.mrf.mxu0 }
 0x408   : > { %8974 = vst [vmem:[#allocation29_spill] sm:$0xff] %v8652_v45 }
 0x409   : > { %v8618_v63 = vpop.f32.mrf.mxu1 }
 0x40b   : > { %v8622_v25 = vpop.f32.mrf.mxu1 }
 0x40d   : > { %v8626_v31 = vpop.f32.mrf.mxu1 }
 0x40f   : > { %v8628_v0 = vpop.f32.mrf.mxu1 }
 0x411   : > { %v8632_v50 = vpop.f32.mrf.mxu1 }
 0x413   : > { %v8634_v16 = vpop.f32.mrf.mxu1 }
 0x415   : > { %v8638_v59 = vpop.f32.mrf.mxu1 }
 0x416   : > { %8967 = vst [vmem:[#allocation22_spill] sm:$0xff] %v8638_v59 }
 0x417   : > { %v8640_v61 = vpop.f32.mrf.mxu1 }
 0x418   : > { %8968 = vst [vmem:[#allocation23_spill] sm:$0xff] %v8640_v61 }
 0x419   : > { %v8644_v18 = vpop.f32.mrf.mxu1  ;;  %v8661_v11 = vpop.f32.mrf.mxu0 }
 0x41a   : > { %8970 = vst [vmem:[#allocation25_spill] sm:$0xff] %v8644_v18  ;;  %8976 = vst [vmem:[#allocation31_spill] sm:$0xff] %v8661_v11  ;;  %v8982_v18 = vld [vmem:[#allocation8_spill] sm:$0xff]  ;;  %v5159_v11 = vadd.f32 %v8546_v17, %v8544_v8  ;;  %v5088_v8 = vadd.f32 %v5087_v5, %v8586_v60 }
 0x41b   : > { %v8648_v52 = vpop.f32.mrf.mxu1  ;;  %v8669_v46 = vpop.f32.mrf.mxu0  ;;  %v4069_v61 = vadd.f32 %v8982_v18, %v8659_v42 }
 0x41c   : > { %8972 = vst [vmem:[#allocation27_spill] sm:$0xff] %v8648_v52  ;;  %v4064_v52 = vadd.f32 %v8979_v9, %v8659_v42  ;;  %8980 = vst [vmem:[#allocation6_spill] sm:$0xff] %v8669_v46  ;;  %v8983_v9 = vld [vmem:[#allocation11_spill] sm:$0xff] }
 0x41d   : > { %v8650_v13 = vpop.f32.mrf.mxu1  ;;  %v5430_v26 = vpop.f32.mrf.mxu0 }
 0x41e   : > { %8973 = vst [vmem:[#allocation28_spill] sm:$0xff] %v8650_v13  ;;  %v5082_v13 = vadd.f32 %v5081_v49, %v5080_v43  ;;  %v5162_v43 = vadd.f32 %v8550_v4, %v8548_v37  ;;  %v5165_v37 = vadd.f32 %v8554_v30, %v8552_v56  ;;  %v5168_v56 = vadd.f32 %v8562_v20, %v8558_v34 }
 0x41f   : > { %v8654_v14 = vpop.f32.mrf.mxu1  ;;  %v4643_v46 = vpop.f32.mrf.mxu0 }
 0x420   : > { %8975 = vst [vmem:[#allocation30_spill] sm:$0xff] %v8654_v14  ;;  %v4209_v14 = vadd.f32 %v5079_v62, %v4064_v52  ;;  %v4074_v52 = vadd.f32 %v8983_v9, %v8659_v42 }
 0x421   : > { %v8663_v29 = vpop.f32.mrf.mxu1 }
 0x422   : > { %8977 = vst [vmem:[#allocation32_spill] sm:$0xff] %v8663_v29  ;;  %v4214_v29 = vadd.f32 %v5082_v13, %v4069_v61  ;;  %v4354_v47 = vadd.f32 %v5159_v11, %v4209_v14 }
 0x423   : > { %v8665_v36 = vpop.f32.mrf.mxu1 }
 0x424   : > { %8978 = vst [vmem:[#allocation33_spill] sm:$0xff] %v8665_v36  ;;  %v5085_v36 = vadd.f32 %v5084_v44, %v5083_v54  ;;  %v4359_v18 = vadd.f32 %v5162_v43, %v4214_v29 }
 0x425   : > { %v8671_v45 = vpop.f32.mrf.mxu1 }
 0x426   : > { %8981 = vst [vmem:[#allocation34_spill] sm:$0xff] %v8671_v45  ;;  %v4219_v59 = vadd.f32 %v5085_v36, %v4074_v52  ;;  %v5171_v52 = vadd.f32 %v8566_v40, %v8564_v24  ;;  %v4094_v24 = vadd.f32 %v8318_v28, %v8659_v42  ;;  %v5174_v40 = vadd.f32 %v8570_v41, %v8568_v6 }
 0x427   : > { %v5237_v39 = vpop.f32.mrf.mxu1  ;;  %v5177_v6 = vadd.f32 %v8578_v58, %v8574_v23 }
 0x429   : > { %v5238_v19 = vpop.f32.mrf.mxu1 }
 0x42a   : > { %v5239_v27 = vadd.f32 %v5238_v19, %v5237_v39  ;;  %v8984_v39 = vld [vmem:[#allocation12_spill] sm:$0xff] }
 0x42b   : > { %v5240_v49 = vpop.f32.mrf.mxu1  ;;  %v4079_v11 = vadd.f32 %v8984_v39, %v8659_v42 }
 0x42c   : > { %v4499_v62 = vadd.f32 %v5239_v27, %v4354_v47  ;;  %v5091_v27 = vadd.f32 %v8594_v51, %v8590_v38  ;;  %v5433_v47 = vpop.f32.mrf.mxu0  ;;  %v5094_v51 = vadd.f32 %v8600_v32, %v8596_v3  ;;  %v5097_v3 = vadd.f32 %v8606_v53, %v8604_v7 }
 0x42d   : > { %v5241_v45 = vpop.f32.mrf.mxu1  ;;  %v4224_v36 = vadd.f32 %v5088_v8, %v4079_v11 }
 0x42e   : > { %v4644_v17 = vadd.f32 %v4643_v46, %v4499_v62  ;;  %v5242_v13 = vadd.f32 %v5241_v45, %v5240_v49  ;;  %v4364_v46 = vadd.f32 %v5165_v37, %v4219_v59  ;;  %v8985_v45 = vld [vmem:[#allocation15_spill] sm:$0xff]  ;;  %v4653_v49 = vpop.f32.mrf.mxu0 }
 0x42f   : > { %v5243_v54 = vpop.f32.mrf.mxu1  ;;  %v4084_v61 = vadd.f32 %v8985_v45, %v8659_v42  ;;  %v4369_v59 = vadd.f32 %v5168_v56, %v4224_v36 }
 0x430   : > { %v4722_v4 = vmax.f32 %v4644_v17, 0.0  ;;  %v4504_v44 = vadd.f32 %v5242_v13, %v4359_v18  ;;  %v8986_v18 = vld [vmem:[#allocation16_spill] sm:$0xff]  ;;  %v5436_v17 = vpop.f32.mrf.mxu0 }
 0x431   : > { %v5244_v14 = vpop.f32.mrf.mxu1  ;;  %v4229_v43 = vadd.f32 %v5091_v27, %v4084_v61  ;;  %v4089_v34 = vadd.f32 %v8986_v18, %v8659_v42  ;;  %v5100_v27 = vadd.f32 %v8612_v55, %v8610_v2  ;;  %v5103_v55 = vadd.f32 %v8618_v63, %v8616_v1 }
 0x432   : > { %4738 = vst [vmem:[%s5652_s12] sm:$0xff] %v4722_v4  ;;  %v4649_v60 = vadd.f32 %v5430_v26, %v4504_v44  ;;  %v5245_v5 = vadd.f32 %v5244_v14, %v5243_v54  ;;  %v4663_v14 = vpop.f32.mrf.mxu0  ;;  %v5106_v1 = vadd.f32 %v8626_v31, %v8622_v25 }
 0x433   : > { %v5246_v29 = vpop.f32.mrf.mxu1  ;;  %v4374_v13 = vadd.f32 %v5171_v52, %v4229_v43  ;;  %v4234_v39 = vadd.f32 %v5094_v51, %v4089_v34  ;;  %v8987_v43 = vld [vmem:[#allocation17_spill] sm:$0xff]  ;;  %v5109_v34 = vadd.f32 %v8632_v50, %v8628_v0  ;;  %v8988_v50 = vld [vmem:[#allocation22_spill] sm:$0xff] }
 0x434   : > { %v4723_v30 = vmax.f32 %v4649_v60, 0.0  ;;  %v4509_v19 = vadd.f32 %v5245_v5, %v4364_v46  ;;  %v4239_v60 = vadd.f32 %v5097_v3, %v4094_v24  ;;  %v4099_v46 = vadd.f32 %v8342_v35, %v8659_v42  ;;  %v5439_v61 = vpop.f32.mrf.mxu0 }
 0x435   : > { %v5247_v38 = vpop.f32.mrf.mxu1  ;;  %v4379_v53 = vadd.f32 %v5174_v40, %v4234_v39  ;;  %v5180_v35 = vadd.f32 %v8582_v22, %v8580_v48  ;;  %v4104_v23 = vadd.f32 %v8987_v43, %v8659_v42  ;;  %v4109_v48 = vadd.f32 %v8441_v57, %v8659_v42 }
 0x436   : > { %4739 = vst [vmem:[%s5652_s12 + $0x8] sm:$0xff] %v4723_v30  ;;  %v4654_v26 = vadd.f32 %v4653_v49, %v4509_v19  ;;  %v5248_v9 = vadd.f32 %v5247_v38, %v5246_v29  ;;  %v4244_v45 = vadd.f32 %v5100_v27, %v4099_v46  ;;  %v4384_v56 = vadd.f32 %v5177_v6, %v4239_v60  ;;  %v4673_v38 = vpop.f32.mrf.mxu0  ;;  %v8992_v46 = vld [vmem:[#allocation23_spill] sm:$0xff] }
 0x437   : > { %v5249_v62 = vpop.f32.mrf.mxu1  ;;  %v5183_v22 = vadd.f32 %v8588_v15, %v8584_v33  ;;  %v5186_v33 = vadd.f32 %v8598_v12, %v8592_v10 }
 0x438   : > { %v4724_v20 = vmax.f32 %v4654_v26, 0.0  ;;  %v4514_v8 = vadd.f32 %v5248_v9, %v4369_v59  ;;  %v4389_v51 = vadd.f32 %v5180_v35, %v4244_v45  ;;  %v4249_v59 = vadd.f32 %v5103_v55, %v4104_v23  ;;  %v8994_v45 = vld [vmem:[#allocation4_spill] sm:$0xff]  ;;  %v8996_v55 = vld [vmem:[#allocation18_spill] sm:$0xff]  ;;  %v8997_v35 = vld [vmem:[#allocation27_spill] sm:$0xff] }
 0x439   : > { %v5250_v54 = vpop.f32.mrf.mxu1 }
 0x43a   : > { %4740 = vst [vmem:[%s5652_s12 + $0x10] sm:$0xff] %v4724_v20  ;;  %v4659_v32 = vadd.f32 %v5433_v47, %v4514_v8  ;;  %v5251_v11 = vadd.f32 %v5250_v54, %v5249_v62  ;;  %v5442_v20 = vpop.f32.mrf.mxu0  ;;  %v4394_v31 = vadd.f32 %v5183_v22, %v4249_v59  ;;  %v4114_v54 = vadd.f32 %v8530_v21, %v8659_v42  ;;  %v8999_v59 = vld [vmem:[#allocation5_spill] sm:$0xff] }
 0x43b   : > { %v5252_v37 = vpop.f32.mrf.mxu1 }
 0x43c   : > { %v4725_v4 = vmax.f32 %v4659_v32, 0.0  ;;  %v4519_v44 = vadd.f32 %v5251_v11, %v4374_v13  ;;  %v4259_v3 = vadd.f32 %v5109_v34, %v4114_v54  ;;  %v4683_v32 = vpop.f32.mrf.mxu0  ;;  %v5112_v11 = vadd.f32 %v8988_v50, %v8634_v16  ;;  %v8993_v16 = vld [vmem:[#allocation25_spill] sm:$0xff] }
 0x43d   : > { %v5253_v36 = vpop.f32.mrf.mxu1 }
 0x43e   : > { %4741 = vst [vmem:[%s5652_s12 + $0x18] sm:$0xff] %v4725_v4  ;;  %v4664_v7 = vadd.f32 %v4663_v14, %v4519_v44  ;;  %v5254_v47 = vadd.f32 %v5253_v36, %v5252_v37  ;;  %v8989_v4 = vld [vmem:[#allocation10_spill] sm:$0xff]  ;;  %v8990_v44 = vld [vmem:[#allocation13_spill] sm:$0xff]  ;;  %v8991_v14 = vld [vmem:[#allocation3_spill] sm:$0xff]  ;;  %v5445_v60 = vpop.f32.mrf.mxu0 }
 0x43f   : > { %v5255_v28 = vpop.f32.mrf.mxu1  ;;  %v5189_v21 = vadd.f32 %v8990_v44, %v8989_v4  ;;  %v4119_v10 = vadd.f32 %v8991_v14, %v8659_v42  ;;  %v9007_v4 = vld [vmem:[#allocation33_spill] sm:$0xff]  ;;  %v9008_v44 = vld [vmem:[#allocation34_spill] sm:$0xff] }
 0x440   : > { %v4726_v41 = vmax.f32 %v4664_v7, 0.0  ;;  %v4524_v5 = vadd.f32 %v5254_v47, %v4379_v53  ;;  %v4693_v23 = vpop.f32.mrf.mxu0 }
 0x441   : > { %v5256_v2 = vpop.f32.mrf.mxu1  ;;  %v4404_v7 = vadd.f32 %v5189_v21, %v4259_v3  ;;  %v4264_v47 = vadd.f32 %v5112_v11, %v4119_v10  ;;  %v9006_v3 = vld [vmem:[#allocation7_spill] sm:$0xff]  ;;  %v5124_v21 = vadd.f32 %v9008_v44, %v9007_v4 }
 0x442   : > { %4742 = vst [vmem:[%s5652_s12 + $0x20] sm:$0xff] %v4726_v41  ;;  %v4669_v29 = vadd.f32 %v5436_v17, %v4524_v5  ;;  %v5257_v30 = vadd.f32 %v5256_v2, %v5255_v28  ;;  %v4254_v17 = vadd.f32 %v5106_v1, %v4109_v48  ;;  %v5115_v28 = vadd.f32 %v8993_v16, %v8992_v46  ;;  %v8995_v2 = vld [vmem:[#allocation14_spill] sm:$0xff]  ;;  %v5448_v34 = vpop.f32.mrf.mxu0 }
 0x443   : > { %v5258_v19 = vpop.f32.mrf.mxu1  ;;  %v4129_v1 = vadd.f32 %v8999_v59, %v8659_v42 }
 0x444   : > { %v4727_v58 = vmax.f32 %v4669_v29, 0.0  ;;  %v4529_v49 = vadd.f32 %v5257_v30, %v4384_v56  ;;  %v4399_v24 = vadd.f32 %v5186_v33, %v4254_v17  ;;  %v5192_v29 = vadd.f32 %v8996_v55, %v8995_v2  ;;  %v9003_v17 = vld [vmem:[#allocation32_spill] sm:$0xff]  ;;  %v4703_v11 = vpop.f32.mrf.mxu0  ;;  %v9012_v2 = vld [vmem:[#allocation31_spill] sm:$0xff]  ;;  %v9013_v55 = vld [vmem:[#allocation6_spill] sm:$0xff] }
 0x445   : > { %v5259_v26 = vpop.f32.mrf.mxu1  ;;  %v9005_v33 = vld [vmem:[#allocation24_spill] sm:$0xff] }
 0x446   : > { %4743 = vst [vmem:[%s5652_s12 + $0x28] sm:$0xff] %v4727_v58  ;;  %v4674_v63 = vadd.f32 %v4673_v38, %v4529_v49  ;;  %v5260_v9 = vadd.f32 %v5259_v26, %v5258_v19  ;;  %v8998_v19 = vld [vmem:[#allocation28_spill] sm:$0xff]  ;;  %v5451_v16 = vpop.f32.mrf.mxu0 }
 0x447   : > { %v5261_v52 = vpop.f32.mrf.mxu1  ;;  %v5118_v43 = vadd.f32 %v8998_v19, %v8997_v35 }
 0x448   : > { %v4728_v62 = vmax.f32 %v4674_v63, 0.0  ;;  %v4534_v18 = vadd.f32 %v5260_v9, %v4389_v51  ;;  %v4409_v51 = vadd.f32 %v5192_v29, %v4264_v47  ;;  %v9000_v9 = vld [vmem:[#allocation19_spill] sm:$0xff]  ;;  %v5204_v29 = vadd.f32 %v9013_v55, %v9012_v2 }
 0x449   : > { %v5262_v8 = vpop.f32.mrf.mxu1 }
 0x44a   : > { %4744 = vst [vmem:[%s5652_s12 + $0x30] sm:$0xff] %v4728_v62  ;;  %v4679_v25 = vadd.f32 %v5439_v61, %v4534_v18  ;;  %v5263_v13 = vadd.f32 %v5262_v8, %v5261_v52  ;;  %v4124_v61 = vadd.f32 %v8994_v45, %v8659_v42  ;;  %v9001_v52 = vld [vmem:[#allocation20_spill] sm:$0xff]  ;;  %v4274_v18 = vadd.f32 %v5118_v43, %v4129_v1  ;;  %v9002_v8 = vld [vmem:[#allocation30_spill] sm:$0xff] }
 0x44b   : > { %v5264_v57 = vpop.f32.mrf.mxu1  ;;  %v5195_v48 = vadd.f32 %v9001_v52, %v9000_v9 }
 0x44c   : > { %v4729_v15 = vmax.f32 %v4679_v25, 0.0  ;;  %v4539_v39 = vadd.f32 %v5263_v13, %v4394_v31  ;;  %v4269_v49 = vadd.f32 %v5115_v28, %v4124_v61  ;;  %v5121_v25 = vadd.f32 %v9003_v17, %v9002_v8 }
 0x44d   : > { %v5265_v0 = vpop.f32.mrf.mxu1 }
 0x44e   : > { %4745 = vst [vmem:[%s5652_s12 + $0x38] sm:$0xff] %v4729_v15  ;;  %v4684_v37 = vadd.f32 %v4683_v32, %v4539_v39  ;;  %v5266_v40 = vadd.f32 %v5265_v0, %v5264_v57  ;;  %v4414_v13 = vadd.f32 %v5195_v48, %v4269_v49  ;;  %v9004_v57 = vld [vmem:[#allocation21_spill] sm:$0xff]  ;;  %v4134_v32 = vadd.f32 %v9006_v3, %v8659_v42 }
 0x44f   : > { %v5267_v27 = vpop.f32.mrf.mxu1  ;;  %v5198_v15 = vadd.f32 %v9005_v33, %v9004_v57 }
 0x450   : > { %v4730_v12 = vmax.f32 %v4684_v37, 0.0  ;;  %v4544_v36 = vadd.f32 %v5266_v40, %v4399_v24  ;;  %v4279_v40 = vadd.f32 %v5121_v25, %v4134_v32 }
 0x451   : > { %v5268_v53 = vpop.f32.mrf.mxu1  ;;  %v4419_v37 = vadd.f32 %v5198_v15, %v4274_v18 }
 0x452   : > { %4746 = vst [vmem:[%s5652_s12 + $0x40] sm:$0xff] %v4730_v12  ;;  %v4689_v6 = vadd.f32 %v5442_v20, %v4544_v36  ;;  %v5269_v41 = vadd.f32 %v5268_v53, %v5267_v27  ;;  %v9009_v12 = vld [vmem:[#allocation9_spill] sm:$0xff] }
 0x453   : > { %v5270_v5 = vpop.f32.mrf.mxu1  ;;  %v4139_v36 = vadd.f32 %v9009_v12, %v8659_v42 }
 0x454   : > { %v4731_v56 = vmax.f32 %v4689_v6, 0.0  ;;  %v4549_v30 = vadd.f32 %v5269_v41, %v4404_v7  ;;  %v9011_v7 = vld [vmem:[#allocation29_spill] sm:$0xff] }
 0x455   : > { %v5271_v58 = vpop.f32.mrf.mxu1  ;;  %v4284_v6 = vadd.f32 %v5124_v21, %v4139_v36 }
 0x456   : > { %4747 = vst [vmem:[%s5652_s12 + $0x48] sm:$0xff] %v4731_v56  ;;  %v4694_v38 = vadd.f32 %v4693_v23, %v4549_v30  ;;  %v5272_v26 = vadd.f32 %v5271_v58, %v5270_v5  ;;  %v4713_v30 = vpop.f32.mrf.mxu0 }
 0x457   : > { %v5273_v63 = vpop.f32.mrf.mxu1  ;;  %v4429_v43 = vadd.f32 %v5204_v29, %v4284_v6 }
 0x458   : > { %v4732_v22 = vmax.f32 %v4694_v38, 0.0  ;;  %v4554_v62 = vadd.f32 %v5272_v26, %v4409_v51 }
 0x459   : > { %v5274_v20 = vpop.f32.mrf.mxu1 }
 0x45a   : > { %4748 = vst [vmem:[%s5652_s12 + $0x50] sm:$0xff] %v4732_v22  ;;  %v4699_v31 = vadd.f32 %v5445_v60, %v4554_v62  ;;  %v5275_v54 = vadd.f32 %v5274_v20, %v5273_v63  ;;  %v9010_v60 = vld [vmem:[#allocation26_spill] sm:$0xff] }
 0x45b   : > { %v5276_v39 = vpop.f32.mrf.mxu1  ;;  %v5201_v53 = vadd.f32 %v9011_v7, %v9010_v60 }
 0x45c   : > { %v4733_v0 = vmax.f32 %v4699_v31, 0.0  ;;  %v4559_v50 = vadd.f32 %v5275_v54, %v4414_v13 }
 0x45d   : > { %v5277_v24 = vpop.f32.mrf.mxu1  ;;  %v4424_v5 = vadd.f32 %v5201_v53, %v4279_v40 }
 0x45e   : > { %4749 = vst [vmem:[%s5652_s12 + $0x58] sm:$0xff] %v4733_v0  ;;  %v4704_v27 = vadd.f32 %v4703_v11, %v4559_v50  ;;  %v5278_v14 = vadd.f32 %v5277_v24, %v5276_v39 }
 0x45f   : > { %v5279_v10 = vpop.f32.mrf.mxu1 }
 0x460   : > { %v4734_v47 = vmax.f32 %v4704_v27, 0.0  ;;  %v4564_v46 = vadd.f32 %v5278_v14, %v4419_v37 }
 0x461   : > { %v5280_v28 = vpop.f32.mrf.mxu1 }
 0x462   : > { %4750 = vst [vmem:[%s5652_s12 + $0x60] sm:$0xff] %v4734_v47  ;;  %v4709_v41 = vadd.f32 %v5448_v34, %v4564_v46  ;;  %v5281_v45 = vadd.f32 %v5280_v28, %v5279_v10 }
 0x463   : > { %v5282_v61 = vpop.f32.mrf.mxu1 }
 0x464   : > { %v4735_v42 = vmax.f32 %v4709_v41, 0.0  ;;  %v4569_v56 = vadd.f32 %v5281_v45, %v4424_v5 }
 0x465   : > { %v5283_v35 = vpop.f32.mrf.mxu1 }
 0x466   : > { %4751 = vst [vmem:[%s5652_s12 + $0x68] sm:$0xff] %v4735_v42  ;;  %v4714_v19 = vadd.f32 %v4713_v30, %v4569_v56  ;;  %v5284_v23 = vadd.f32 %v5283_v35, %v5282_v61 }
 0x468   : > { %v4736_v58 = vmax.f32 %v4714_v19, 0.0  ;;  %v4574_v49 = vadd.f32 %v5284_v23, %v4429_v43 }
 0x46a   : > { %4752 = vst [vmem:[%s5652_s12 + $0x70] sm:$0xff] %v4736_v58  ;;  %v4719_v38 = vadd.f32 %v5451_v16, %v4574_v49 }
 0x46c   : > { %v4737_v51 = vmax.f32 %v4719_v38, 0.0 }
 0x46e   : > { %4753 = vst [vmem:[%s5652_s12 + $0x78] sm:$0xff] %v4737_v51 }
 0x46f PF: > { %s15_s22 = sadd.s32 1, %s5563_s22   ;;  %s9014_s18 = smov %s5555_s20 }
 0x470   : > { %p12_p10 = scmp.ge.s32.totalorder %s15_s22, 6   ;;  %s9015_s19 = smov %s5559_s21 }
 0x471   : > { %s9016_s20 = smov %s9019_s23  ;;  %s9017_s21 = smov %s9023_s24 }
 0x472   :  { %14 = sbr.rel (!%p12_p10) target bundleno = 3 (0x3), region = 76 }

</bundles_post_ra>
